<compile_context>
chip_gen: v7x
topology: tpu7x:2x2x1
jax: 0.10.0
libtpu: 0.0.40
codegen_flags: <defaults>
</compile_context>

<pallas_src>
import functools

import jax
import jax.numpy as jnp
from jax.experimental import pallas as pl
from jax.experimental.pallas import tpu as pltpu


TILE_ROWS = 512       # max row tile for the node dimension
TILE_EDGES = 512      # max edge tile (kept a multiple of 128 for lane density)
NUM_EDGE_PARTS = 2    # parallel partial accumulators for the scatter (v7x cores)


def _round_up(n, m):
    return ((n + m - 1) // m) * m


def _cdiv(a, b):
    return -(-a // b)


def _pad_rows_to(x, n_pad):
    n = x.shape[0]
    if n_pad == n:
        return x
    return jnp.pad(x, ((0, n_pad - n), (0, 0)))


def _pick_tile(n, max_tile=TILE_ROWS, min_splits=2):
    # At least `min_splits` grid steps so v7x can shard the "parallel" axis
    # across its two TensorCores and the software pipeline has work to overlap.
    t = _round_up(max(8, _cdiv(n, min_splits)), 8)
    return min(max_tile, t)


# ----------------------------------------------------------------------------
# Shared in-kernel MLP body:
#   (sum_k x_k @ W0_k) + b0 -> ReLU -> ... -> last Linear [-> LayerNorm]
# Matmuls run on the MXU with bf16 operands and f32 accumulation; everything
# else stays f32.  The first-layer weight is split row-wise so the feature
# concat ([x_i, x_j, dpos] / [x, agg]) is never materialized.
# ----------------------------------------------------------------------------
def _mlp_compute(x_chunks, p, num_linear, layer_norm):
    idx = 0
    h = None
    for xc in x_chunks:
        w = p[idx]
        idx += 1
        d = jnp.dot(xc, w, preferred_element_type=jnp.float32)
        h = d if h is None else h + d
    h = h + p[idx]          # bias (1, H) f32
    idx += 1
    if num_linear > 1:
        h = jnp.maximum(h, 0.0)

    for li in range(1, num_linear):
        w = p[idx]
        b = p[idx + 1]
        idx += 2
        h = jnp.dot(h.astype(jnp.bfloat16), w,
                    preferred_element_type=jnp.float32) + b
        if li < num_linear - 1:
            h = jnp.maximum(h, 0.0)

    if layer_norm:
        g = p[idx]
        be = p[idx + 1]
        idx += 2
        mean = jnp.mean(h, axis=-1, keepdims=True)
        var = jnp.mean(jnp.square(h - mean), axis=-1, keepdims=True)
        h = (h - mean) * jax.lax.rsqrt(var + 1e-5) * g + be
    return h


def _mlp_param_operands(mlp, widths):
    """Flatten MLP params into pallas operands + constant-index BlockSpecs."""
    linears = mlp["linears"]
    ln = mlp["layer_norm"]
    w0, b0 = linears[0]
    assert sum(widths) == w0.shape[0]

    def const_spec(a):
        nd = a.ndim
        return pl.BlockSpec(a.shape, lambda *_: (0,) * nd)

    ops, specs = [], []
    off = 0
    for wd in widths:                      # split-K chunks of the first layer
        wp = w0[off:off + wd]
        off += wd
        ops.append(wp)
        specs.append(const_spec(wp))
    b0r = b0.reshape(1, -1)
    ops.append(b0r)
    specs.append(const_spec(b0r))
    for w, b in linears[1:]:
        br = b.reshape(1, -1)
        ops += [w, br]
        specs += [const_spec(w), const_spec(br)]
    if ln is not None:
        g, be = ln
        gr, ber = g.reshape(1, -1), be.reshape(1, -1)
        ops += [gr, ber]
        specs += [const_spec(gr), const_spec(ber)]
    return ops, specs, len(linears), ln is not None


# ----------------------------------------------------------------------------
# Encoder MLP kernel (fused (Linear+ReLU)* + LayerNorm, bf16 output)
# ----------------------------------------------------------------------------
def _encode_kernel(*refs, num_linear, layer_norm):
    x_ref = refs[0]
    out_ref = refs[-1]
    p = [r[...] for r in refs[1:-1]]
    h = _mlp_compute([x_ref[...].astype(jnp.bfloat16)], p, num_linear, layer_norm)
    out_ref[...] = h.astype(out_ref.dtype)


def encode_forward(mlp, node_in_p, tile):
    n_pad, in_dim = node_in_p.shape
    ld = mlp["linears"][-1][0].shape[1]
    ops, specs, num_linear, ln_flag = _mlp_param_operands(mlp, [in_dim])
    return pl.pallas_call(
        functools.partial(_encode_kernel, num_linear=num_linear,
                          layer_norm=ln_flag),
        grid=(n_pad // tile,),
        in_specs=[pl.BlockSpec((tile, in_dim), lambda i: (i, 0))] + specs,
        out_specs=pl.BlockSpec((tile, ld), lambda i: (i, 0)),
        out_shape=jax.ShapeDtypeStruct((n_pad, ld), jnp.bfloat16),
        compiler_params=pltpu.CompilerParams(
            dimension_semantics=("parallel",)),
    )(node_in_p, *ops)


# ----------------------------------------------------------------------------
# Fused edge-MLP + one-hot MXU scatter-add.
# grid = (num_parts, edge_tiles_per_part); each part owns a disjoint slice of
# edges and produces its own partial [N_pad, ld] accumulator slab (summed in
# the node kernel).  The [E, ld] messages never leave VMEM.
# NOTE: the (N_pad, ld) f32 accumulator and the (N_pad, tile_e) one-hot must
# fit scoped VMEM; for very large graphs tile the node axis as well.
# ----------------------------------------------------------------------------
def _edge_gmp_kernel(*refs, num_linear, layer_norm, n_pad_nodes):
    recv_ref, xi_ref, xj_ref, dpos_ref = refs[:4]
    out_ref = refs[-2]
    acc_ref = refs[-1]
    p = [r[...] for r in refs[4:-2]]

    @pl.when(pl.program_id(1) == 0)
    def _init():
        acc_ref[...] = jnp.zeros_like(acc_ref)

    msg = _mlp_compute(
        [xi_ref[...].astype(jnp.bfloat16),
         xj_ref[...].astype(jnp.bfloat16),
         dpos_ref[...].astype(jnp.bfloat16)],
        p, num_linear, layer_norm)                            # [tile_e, ld] f32

    # One-hot scatter-add on the MXU: acc[n, :] += sum_e [recv[e] == n] * msg[e, :]
    recv = recv_ref[...]                                      # (1, tile_e) int32
    node_ids = jax.lax.broadcasted_iota(
        jnp.int32, (n_pad_nodes, recv.shape[-1]), 0)
    onehot = (node_ids == recv).astype(jnp.bfloat16)          # (N_pad, tile_e)
    acc_ref[...] += jnp.dot(onehot, msg.astype(jnp.bfloat16),
                            preferred_element_type=jnp.float32)

    @pl.when(pl.program_id(1) == pl.num_programs(1) - 1)
    def _store():
        out_ref[...] = acc_ref[...].astype(out_ref.dtype)


def edge_mlp_scatter(mlp, x_i, x_j, dpos, receivers, n_pad_nodes,
                     *, num_parts=NUM_EDGE_PARTS, max_tile_e=TILE_EDGES):
    e, ld = x_i.shape
    pos_dim = dpos.shape[1]
    te = max(128, min(max_tile_e, _round_up(_cdiv(e, num_parts), 128)))
    total_tiles = _round_up(_cdiv(e, te), num_parts)
    e_pad = total_tiles * te
    tiles_per_part = total_tiles // num_parts

    x_i_p = _pad_rows_to(x_i, e_pad)
    x_j_p = _pad_rows_to(x_j, e_pad)
    dpos_p = _pad_rows_to(dpos, e_pad)
    # Padded edges get receiver -1 -> all-zero one-hot row (no contribution).
    recv = jnp.pad(receivers.astype(jnp.int32), (0, e_pad - e),
                   constant_values=-1).reshape(1, e_pad)

    ops, specs, num_linear, ln_flag = _mlp_param_operands(mlp, [ld, ld, pos_dim])

    def row_map(p_, t):
        return (p_ * tiles_per_part + t, 0)

    in_specs = ([pl.BlockSpec((1, te),
                              lambda p_, t: (0, p_ * tiles_per_part + t)),
                 pl.BlockSpec((te, ld), row_map),
                 pl.BlockSpec((te, ld), row_map),
                 pl.BlockSpec((te, pos_dim), row_map)] + specs)

    return pl.pallas_call(
        functools.partial(_edge_gmp_kernel, num_linear=num_linear,
                          layer_norm=ln_flag, n_pad_nodes=n_pad_nodes),
        grid=(num_parts, tiles_per_part),
        in_specs=in_specs,
        out_specs=pl.BlockSpec((None, n_pad_nodes, ld),
                               lambda p_, t: (p_, 0, 0)),
        out_shape=jax.ShapeDtypeStruct((num_parts, n_pad_nodes, ld),
                                       jnp.bfloat16),
        scratch_shapes=[pltpu.VMEM((n_pad_nodes, ld), jnp.float32)],
        compiler_params=pltpu.CompilerParams(
            dimension_semantics=("parallel", "arbitrary")),
    )(recv, x_i_p, x_j_p, dpos_p, *ops)


# ----------------------------------------------------------------------------
# Fused node-MLP + residual add (x + MLP([x, sum_parts agg]))
# ----------------------------------------------------------------------------
def _node_gmp_kernel(*refs, num_linear, layer_norm):
    x_ref, agg_ref = refs[:2]
    out_ref = refs[-1]
    p = [r[...] for r in refs[2:-1]]
    x = x_ref[...]
    agg = jnp.sum(agg_ref[...].astype(jnp.float32), axis=0).astype(jnp.bfloat16)
    h = _mlp_compute([x.astype(jnp.bfloat16), agg], p, num_linear, layer_norm)
    out_ref[...] = (x.astype(jnp.float32) + h).astype(out_ref.dtype)


def node_mlp_residual(mlp, x, agg, tile):
    n_pad, ld = x.shape
    num_parts = agg.shape[0]
    ops, specs, num_linear, ln_flag = _mlp_param_operands(mlp, [ld, ld])
    in_specs = ([pl.BlockSpec((tile, ld), lambda i: (i, 0)),
                 pl.BlockSpec((num_parts, tile, ld), lambda i: (0, i, 0))]
                + specs)
    return pl.pallas_call(
        functools.partial(_node_gmp_kernel, num_linear=num_linear,
                          layer_norm=ln_flag),
        grid=(n_pad // tile,),
        in_specs=in_specs,
        out_specs=pl.BlockSpec((tile, ld), lambda i: (i, 0)),
        out_shape=jax.ShapeDtypeStruct((n_pad, ld), jnp.bfloat16),
        compiler_params=pltpu.CompilerParams(
            dimension_semantics=("parallel",)),
    )(x, agg, *ops)


# ----------------------------------------------------------------------------
# Fused decode-MLP + masked sum-of-squared-errors (ones mask, padded rows
# excluded via a row-index mask).  SSE accumulates in an SMEM scalar.
# ----------------------------------------------------------------------------
def _decode_sse_kernel(*refs, num_linear, layer_norm, n_valid, tile):
    x_ref, tar_ref = refs[:2]
    out_ref = refs[-3]
    sse_ref = refs[-2]
    acc_ref = refs[-1]
    p = [r[...] for r in refs[2:-3]]

    t = pl.program_id(0)

    @pl.when(t == 0)
    def _init():
        acc_ref[0] = jnp.float32(0.0)

    h = _mlp_compute([x_ref[...].astype(jnp.bfloat16)], p, num_linear, layer_norm)
    out_ref[...] = h.astype(out_ref.dtype)

    rows = t * tile + jax.lax.broadcasted_iota(jnp.int32, (h.shape[0], 1), 0)
    diff = jnp.where(rows < n_valid, h - tar_ref[...], 0.0)
    acc_ref[0] += jnp.sum(diff * diff)

    @pl.when(t == pl.num_programs(0) - 1)
    def _store():
        sse_ref[0] = acc_ref[0]


def decode_and_sse(mlp, x, tar_p, n_valid, tile):
    n_pad, ld = x.shape
    out_dim = mlp["linears"][-1][0].shape[1]
    ops, specs, num_linear, ln_flag = _mlp_param_operands(mlp, [ld])
    in_specs = ([pl.BlockSpec((tile, ld), lambda i: (i, 0)),
                 pl.BlockSpec((tile, out_dim), lambda i: (i, 0))] + specs)
    out_p, sse = pl.pallas_call(
        functools.partial(_decode_sse_kernel, num_linear=num_linear,
                          layer_norm=ln_flag, n_valid=n_valid, tile=tile),
        grid=(n_pad // tile,),
        in_specs=in_specs,
        out_specs=(pl.BlockSpec((tile, out_dim), lambda i: (i, 0)),
                   pl.BlockSpec((1,), lambda i: (0,),
                                memory_space=pltpu.MemorySpace.SMEM)),
        out_shape=(jax.ShapeDtypeStruct((n_pad, out_dim), jnp.float32),
                   jax.ShapeDtypeStruct((1,), jnp.float32)),
        scratch_shapes=[pltpu.SMEM((1,), jnp.float32)],
        compiler_params=pltpu.CompilerParams(
            dimension_semantics=("arbitrary",)),
    )(x, tar_p, *ops)
    return out_p, sse[0]


# ----------------------------------------------------------------------------
# Parameter init (deterministic, in-script).  Matmul weights are pre-cast to
# bf16 once (MXU operands); biases / LayerNorm params stay f32.
# ----------------------------------------------------------------------------
def init_mlp(key, in_dim, hidden_dim, out_dim, hidden_layer, layer_norm):
    dims = [in_dim] + [hidden_dim] * hidden_layer + [out_dim]
    linears = []
    for a, b in zip(dims[:-1], dims[1:]):
        key, k1, k2 = jax.random.split(key, 3)
        scale = 1.0 / jnp.sqrt(float(a))
        w = jax.random.uniform(k1, (a, b), jnp.float32, -scale, scale)
        bb = jax.random.uniform(k2, (b,), jnp.float32, -scale, scale)
        linears.append((w.astype(jnp.bfloat16), bb))
    ln = (jnp.ones((out_dim,), jnp.float32),
          jnp.zeros((out_dim,), jnp.float32)) if layer_norm else None
    return {"linears": linears, "layer_norm": ln}


def init_gmp(key, ld, pos_dim, mlp_hidden_layer):
    k1, k2 = jax.random.split(key)
    return {
        "edge_mlp": init_mlp(k1, 2 * ld + pos_dim, ld, ld, mlp_hidden_layer, True),
        "node_mlp": init_mlp(k2, 2 * ld, ld, ld, mlp_hidden_layer, True),
    }


def init_model(key, pos_dim, in_dim, out_dim, ld, mlp_hidden_layer,
               edge_set_num):
    k_enc, k_proc, k_dec = jax.random.split(key, 3)
    gmp_keys = jax.random.split(k_proc, edge_set_num)
    return {
        "encode": init_mlp(k_enc, in_dim, ld, ld, mlp_hidden_layer, True),
        "process": {"gmps": [init_gmp(k, ld, pos_dim, mlp_hidden_layer)
                             for k in gmp_keys]},
        "decode": init_mlp(k_dec, ld, ld, out_dim, mlp_hidden_layer, False),
    }


# ----------------------------------------------------------------------------
# Model forward (mirrors ModelGeneral.forward)
# ----------------------------------------------------------------------------
def apply_gmp(gmp, x, edge_index, pos, n_pad, tile_n):
    senders, receivers = edge_index[0], edge_index[1]
    # Gathers stay in plain JAX (glue); the feature concat is avoided by the
    # split-K first layer inside the fused edge kernel.
    x_i = x[receivers]
    x_j = x[senders]
    dpos = (pos[receivers] - pos[senders]).astype(jnp.bfloat16)
    agg = edge_mlp_scatter(gmp["edge_mlp"], x_i, x_j, dpos, receivers, n_pad)
    return node_mlp_residual(gmp["node_mlp"], x, agg, tile_n)


def apply_process(proc_params, x, m_ids, m_gs, pos, n_pad, tile_n):
    # TODO(synk): BSGMP bi-stride pooling over m_ids not reproduced (source
    #             unavailable); single-scale GMP per edge set instead.
    del m_ids
    for es, gmp_params in enumerate(proc_params["gmps"]):
        x = apply_gmp(gmp_params, x, m_gs[es], pos, n_pad, tile_n)
    return x


def model_forward(params, m_idx, m_gs, node_in, node_tar,
                  *, pos_dim, MP_times, pen_coeff=None):
    n = node_in.shape[0]
    d_out = node_tar.shape[1]
    # _get_pos_type
    node_pos = node_in[..., -(1 + pos_dim):-1]
    _node_type = node_in[..., -1]
    # _pre / _get_nodal_latent_input are identity

    tile_n = _pick_tile(n)
    n_pad = _round_up(n, tile_n)
    node_in_p = _pad_rows_to(node_in, n_pad)

    x = encode_forward(params["encode"], node_in_p, tile_n)   # [n_pad, ld] bf16
    for _ in range(MP_times):
        x = apply_process(params["process"], x, m_idx, m_gs, node_pos,
                          n_pad, tile_n)

    tar_p = _pad_rows_to(node_tar, n_pad)
    out_p, sse = decode_and_sse(params["decode"], x, tar_p, n, tile_n)
    out = out_p[:n]

    # _update_states is identity; _mask -> ones mask, so non_zero = N * D
    non_zero = jnp.asarray(n * d_out, dtype=jnp.float32)
    if pen_coeff is None:
        loss_sum = sse
    else:
        # _penalize path (unused in demo): plain-JAX weighted sum.
        pc = pen_coeff
        if pc.ndim == 2:
            pc = pc[:, None, :]
        loss_sum = jnp.sum(jnp.square(out - node_tar) * pc)
    mse_loss_val = loss_sum / non_zero
    return mse_loss_val, out, non_zero


# ----------------------------------------------------------------------------
# Demo
# ----------------------------------------------------------------------------
if __name__ == "__main__":
    # small, forward-consistent shapes
    N, E = 128, 256
    pos_dim, in_dim, out_dim, ld = 2, 7, 2, 32
    layer_num, mlp_hidden_layer, MP_times, edge_set_num = 1, 2, 2, 1

    key = jax.random.PRNGKey(0)
    k_params, k_in, k_tar, k_edge = jax.random.split(key, 4)

    params = init_model(k_params, pos_dim, in_dim, out_dim, ld,
                        mlp_hidden_layer, edge_set_num)

    node_in = jax.random.normal(k_in, (N, in_dim), jnp.float32)
    node_tar = jax.random.normal(k_tar, (N, out_dim), jnp.float32)
    edge_index = jax.random.randint(k_edge, (2, E), 0, N)

    m_idx = []              # bi-stride pooling ids (unused in single-level)
    m_gs = [edge_index]     # one edge set

    fwd = jax.jit(functools.partial(model_forward,
                                    pos_dim=pos_dim, MP_times=MP_times))
    mse_loss_val, out, non_zero = fwd(params, m_idx, m_gs, node_in, node_tar)

    jax.block_until_ready((mse_loss_val, out, non_zero))
    assert out.shape == (N, out_dim)
    assert jnp.isfinite(mse_loss_val)
    print("KERNEL_OK")
</pallas_src>

<mosaic_0001>
module attributes {stable_mosaic.version = 11 : i64} {
  func.func @_encode_kernel(%arg0: i32, %arg1: memref<64x7xf32, #tpu.memory_space<vmem>>, %arg2: memref<7x32xbf16, #tpu.memory_space<vmem>>, %arg3: memref<1x32xf32, #tpu.memory_space<vmem>>, %arg4: memref<32x32xbf16, #tpu.memory_space<vmem>>, %arg5: memref<1x32xf32, #tpu.memory_space<vmem>>, %arg6: memref<32x32xbf16, #tpu.memory_space<vmem>>, %arg7: memref<1x32xf32, #tpu.memory_space<vmem>>, %arg8: memref<1x32xf32, #tpu.memory_space<vmem>>, %arg9: memref<1x32xf32, #tpu.memory_space<vmem>>, %arg10: memref<64x32xbf16, #tpu.memory_space<vmem>>) attributes {dimension_semantics = [#tpu.dimension_semantics<parallel>], iteration_bounds = array<i64: 2>, scalar_prefetch = 0 : i64, scratch_operands = 0 : i64, tpu.core_type = #tpu.core_type<tc>, window_params = [{transform_indices = @transform_0, window_bounds = array<i64: 64, 7>}, {pipeline_mode = #tpu.pipeline_mode<synchronous>, transform_indices = @transform_1, window_bounds = array<i64: 7, 32>}, {pipeline_mode = #tpu.pipeline_mode<synchronous>, transform_indices = @transform_2, window_bounds = array<i64: 1, 32>}, {pipeline_mode = #tpu.pipeline_mode<synchronous>, transform_indices = @transform_3, window_bounds = array<i64: 32, 32>}, {pipeline_mode = #tpu.pipeline_mode<synchronous>, transform_indices = @transform_4, window_bounds = array<i64: 1, 32>}, {pipeline_mode = #tpu.pipeline_mode<synchronous>, transform_indices = @transform_5, window_bounds = array<i64: 32, 32>}, {pipeline_mode = #tpu.pipeline_mode<synchronous>, transform_indices = @transform_6, window_bounds = array<i64: 1, 32>}, {pipeline_mode = #tpu.pipeline_mode<synchronous>, transform_indices = @transform_7, window_bounds = array<i64: 1, 32>}, {pipeline_mode = #tpu.pipeline_mode<synchronous>, transform_indices = @transform_8, window_bounds = array<i64: 1, 32>}, {transform_indices = @transform_9, window_bounds = array<i64: 64, 32>}]} {
    %c0 = arith.constant 0 : index
    %c0_0 = arith.constant 0 : index
    %0 = vector.load %arg2[%c0, %c0_0] : memref<7x32xbf16, #tpu.memory_space<vmem>>, vector<7x32xbf16>
    %c0_1 = arith.constant 0 : index
    %c0_2 = arith.constant 0 : index
    %1 = vector.load %arg3[%c0_1, %c0_2] : memref<1x32xf32, #tpu.memory_space<vmem>>, vector<1x32xf32>
    %c0_3 = arith.constant 0 : index
    %c0_4 = arith.constant 0 : index
    %2 = vector.load %arg4[%c0_3, %c0_4] : memref<32x32xbf16, #tpu.memory_space<vmem>>, vector<32x32xbf16>
    %c0_5 = arith.constant 0 : index
    %c0_6 = arith.constant 0 : index
    %3 = vector.load %arg5[%c0_5, %c0_6] : memref<1x32xf32, #tpu.memory_space<vmem>>, vector<1x32xf32>
    %c0_7 = arith.constant 0 : index
    %c0_8 = arith.constant 0 : index
    %4 = vector.load %arg6[%c0_7, %c0_8] : memref<32x32xbf16, #tpu.memory_space<vmem>>, vector<32x32xbf16>
    %c0_9 = arith.constant 0 : index
    %c0_10 = arith.constant 0 : index
    %5 = vector.load %arg7[%c0_9, %c0_10] : memref<1x32xf32, #tpu.memory_space<vmem>>, vector<1x32xf32>
    %c0_11 = arith.constant 0 : index
    %c0_12 = arith.constant 0 : index
    %6 = vector.load %arg8[%c0_11, %c0_12] : memref<1x32xf32, #tpu.memory_space<vmem>>, vector<1x32xf32>
    %c0_13 = arith.constant 0 : index
    %c0_14 = arith.constant 0 : index
    %7 = vector.load %arg9[%c0_13, %c0_14] : memref<1x32xf32, #tpu.memory_space<vmem>>, vector<1x32xf32>
    %c0_15 = arith.constant 0 : index
    %c0_16 = arith.constant 0 : index
    %8 = vector.load %arg1[%c0_15, %c0_16] : memref<64x7xf32, #tpu.memory_space<vmem>>, vector<64x7xf32>
    %9 = arith.truncf %8 : vector<64x7xf32> to vector<64x7xbf16>
    %cst = arith.constant dense<0.000000e+00> : vector<64x32xf32>
    %10 = tpu.matmul %9, %0, %cst {dimension_numbers = #tpu.dot_dimension_numbers<[1], [0], [0], [1], [0, 0, 1, 1], [], []>} : vector<64x7xbf16>, vector<7x32xbf16>, vector<64x32xf32> -> vector<64x32xf32>
    %11 = vector.broadcast %1 : vector<1x32xf32> to vector<64x32xf32>
    %12 = arith.addf %10, %11 : vector<64x32xf32>
    %cst_17 = arith.constant 0.000000e+00 : f32
    %13 = vector.broadcast %cst_17 : f32 to vector<64x32xf32>
    %14 = arith.maximumf %12, %13 : vector<64x32xf32>
    %15 = arith.truncf %14 : vector<64x32xf32> to vector<64x32xbf16>
    %cst_18 = arith.constant dense<0.000000e+00> : vector<64x32xf32>
    %16 = tpu.matmul %15, %2, %cst_18 {dimension_numbers = #tpu.dot_dimension_numbers<[1], [0], [0], [1], [0, 0, 1, 1], [], []>} : vector<64x32xbf16>, vector<32x32xbf16>, vector<64x32xf32> -> vector<64x32xf32>
    %17 = vector.broadcast %3 : vector<1x32xf32> to vector<64x32xf32>
    %18 = arith.addf %16, %17 : vector<64x32xf32>
    %cst_19 = arith.constant 0.000000e+00 : f32
    %19 = vector.broadcast %cst_19 : f32 to vector<64x32xf32>
    %20 = arith.maximumf %18, %19 : vector<64x32xf32>
    %21 = arith.truncf %20 : vector<64x32xf32> to vector<64x32xbf16>
    %cst_20 = arith.constant dense<0.000000e+00> : vector<64x32xf32>
    %22 = tpu.matmul %21, %4, %cst_20 {dimension_numbers = #tpu.dot_dimension_numbers<[1], [0], [0], [1], [0, 0, 1, 1], [], []>} : vector<64x32xbf16>, vector<32x32xbf16>, vector<64x32xf32> -> vector<64x32xf32>
    %23 = vector.broadcast %5 : vector<1x32xf32> to vector<64x32xf32>
    %24 = arith.addf %22, %23 : vector<64x32xf32>
    %cst_21 = arith.constant dense<0.000000e+00> : vector<64xf32>
    %25 = vector.multi_reduction <add>, %24, %cst_21 [1] : vector<64x32xf32> to vector<64xf32>
    %26 = vector.shape_cast %25 : vector<64xf32> to vector<64x1xf32>
    %cst_22 = arith.constant 3.200000e+01 : f32
    %27 = vector.broadcast %cst_22 : f32 to vector<64x1xf32>
    %28 = arith.divf %26, %27 : vector<64x1xf32>
    %29 = vector.broadcast %28 : vector<64x1xf32> to vector<64x32xf32>
    %30 = arith.subf %24, %29 : vector<64x32xf32>
    %31 = arith.mulf %30, %30 : vector<64x32xf32>
    %cst_23 = arith.constant dense<0.000000e+00> : vector<64xf32>
    %32 = vector.multi_reduction <add>, %31, %cst_23 [1] : vector<64x32xf32> to vector<64xf32>
    %33 = vector.shape_cast %32 : vector<64xf32> to vector<64x1xf32>
    %cst_24 = arith.constant 3.200000e+01 : f32
    %34 = vector.broadcast %cst_24 : f32 to vector<64x1xf32>
    %35 = arith.divf %33, %34 : vector<64x1xf32>
    %36 = vector.broadcast %28 : vector<64x1xf32> to vector<64x32xf32>
    %37 = arith.subf %24, %36 : vector<64x32xf32>
    %cst_25 = arith.constant 9.99999974E-6 : f32
    %38 = vector.broadcast %cst_25 : f32 to vector<64x1xf32>
    %39 = arith.addf %35, %38 : vector<64x1xf32>
    %40 = math.rsqrt %39 : vector<64x1xf32>
    %41 = vector.broadcast %40 : vector<64x1xf32> to vector<64x32xf32>
    %42 = arith.mulf %37, %41 : vector<64x32xf32>
    %43 = vector.broadcast %6 : vector<1x32xf32> to vector<64x32xf32>
    %44 = arith.mulf %42, %43 : vector<64x32xf32>
    %45 = vector.broadcast %7 : vector<1x32xf32> to vector<64x32xf32>
    %46 = arith.addf %44, %45 : vector<64x32xf32>
    %47 = arith.truncf %46 : vector<64x32xf32> to vector<64x32xbf16>
    %c0_26 = arith.constant 0 : index
    %c0_27 = arith.constant 0 : index
    %48 = vector.load %arg10[%c0_26, %c0_27] : memref<64x32xbf16, #tpu.memory_space<vmem>>, vector<64x32xbf16>
    tpu.vector_store %arg10[%c0_26, %c0_27], %47 {strides = array<i32>} : memref<64x32xbf16, #tpu.memory_space<vmem>>, vector<64x32xbf16>,
    return
  }
  func.func @transform_0(%arg0: i32) -> (i32, i32) {
    %c0_i32 = arith.constant 0 : i32
    %c0_i32_0 = arith.constant 0 : i32
    return %arg0, %c0_i32 : i32, i32
  }
  func.func @transform_1(%arg0: i32) -> (i32, i32) {
    %c0_i32 = arith.constant 0 : i32
    %c0_i32_0 = arith.constant 0 : i32
    %c0_i32_1 = arith.constant 0 : i32
    return %c0_i32, %c0_i32_0 : i32, i32
  }
  func.func @transform_2(%arg0: i32) -> (i32, i32) {
    %c0_i32 = arith.constant 0 : i32
    %c0_i32_0 = arith.constant 0 : i32
    %c0_i32_1 = arith.constant 0 : i32
    return %c0_i32, %c0_i32_0 : i32, i32
  }
  func.func @transform_3(%arg0: i32) -> (i32, i32) {
    %c0_i32 = arith.constant 0 : i32
    %c0_i32_0 = arith.constant 0 : i32
    %c0_i32_1 = arith.constant 0 : i32
    return %c0_i32, %c0_i32_0 : i32, i32
  }
  func.func @transform_4(%arg0: i32) -> (i32, i32) {
    %c0_i32 = arith.constant 0 : i32
    %c0_i32_0 = arith.constant 0 : i32
    %c0_i32_1 = arith.constant 0 : i32
    return %c0_i32, %c0_i32_0 : i32, i32
  }
  func.func @transform_5(%arg0: i32) -> (i32, i32) {
    %c0_i32 = arith.constant 0 : i32
    %c0_i32_0 = arith.constant 0 : i32
    %c0_i32_1 = arith.constant 0 : i32
    return %c0_i32, %c0_i32_0 : i32, i32
  }
  func.func @transform_6(%arg0: i32) -> (i32, i32) {
    %c0_i32 = arith.constant 0 : i32
    %c0_i32_0 = arith.constant 0 : i32
    %c0_i32_1 = arith.constant 0 : i32
    return %c0_i32, %c0_i32_0 : i32, i32
  }
  func.func @transform_7(%arg0: i32) -> (i32, i32) {
    %c0_i32 = arith.constant 0 : i32
    %c0_i32_0 = arith.constant 0 : i32
    %c0_i32_1 = arith.constant 0 : i32
    return %c0_i32, %c0_i32_0 : i32, i32
  }
  func.func @transform_8(%arg0: i32) -> (i32, i32) {
    %c0_i32 = arith.constant 0 : i32
    %c0_i32_0 = arith.constant 0 : i32
    %c0_i32_1 = arith.constant 0 : i32
    return %c0_i32, %c0_i32_0 : i32, i32
  }
  func.func @transform_9(%arg0: i32) -> (i32, i32) {
    %c0_i32 = arith.constant 0 : i32
    %c0_i32_0 = arith.constant 0 : i32
    return %arg0, %c0_i32 : i32, i32
  }
}

module attributes {stable_mosaic.version = 11 : i64} {
  func.func @_node_gmp_kernel(%arg0: i32, %arg1: memref<64x32xbf16, #tpu.memory_space<vmem>>, %arg2: memref<2x64x32xbf16, #tpu.memory_space<vmem>>, %arg3: memref<32x32xbf16, #tpu.memory_space<vmem>>, %arg4: memref<32x32xbf16, #tpu.memory_space<vmem>>, %arg5: memref<1x32xf32, #tpu.memory_space<vmem>>, %arg6: memref<32x32xbf16, #tpu.memory_space<vmem>>, %arg7: memref<1x32xf32, #tpu.memory_space<vmem>>, %arg8: memref<32x32xbf16, #tpu.memory_space<vmem>>, %arg9: memref<1x32xf32, #tpu.memory_space<vmem>>, %arg10: memref<1x32xf32, #tpu.memory_space<vmem>>, %arg11: memref<1x32xf32, #tpu.memory_space<vmem>>, %arg12: memref<64x32xbf16, #tpu.memory_space<vmem>>) attributes {dimension_semantics = [#tpu.dimension_semantics<parallel>], iteration_bounds = array<i64: 2>, scalar_prefetch = 0 : i64, scratch_operands = 0 : i64, tpu.core_type = #tpu.core_type<tc>, window_params = [{transform_indices = @transform_0, window_bounds = array<i64: 64, 32>}, {transform_indices = @transform_1, window_bounds = array<i64: 2, 64, 32>}, {pipeline_mode = #tpu.pipeline_mode<synchronous>, transform_indices = @transform_2, window_bounds = array<i64: 32, 32>}, {pipeline_mode = #tpu.pipeline_mode<synchronous>, transform_indices = @transform_3, window_bounds = array<i64: 32, 32>}, {pipeline_mode = #tpu.pipeline_mode<synchronous>, transform_indices = @transform_4, window_bounds = array<i64: 1, 32>}, {pipeline_mode = #tpu.pipeline_mode<synchronous>, transform_indices = @transform_5, window_bounds = array<i64: 32, 32>}, {pipeline_mode = #tpu.pipeline_mode<synchronous>, transform_indices = @transform_6, window_bounds = array<i64: 1, 32>}, {pipeline_mode = #tpu.pipeline_mode<synchronous>, transform_indices = @transform_7, window_bounds = array<i64: 32, 32>}, {pipeline_mode = #tpu.pipeline_mode<synchronous>, transform_indices = @transform_8, window_bounds = array<i64: 1, 32>}, {pipeline_mode = #tpu.pipeline_mode<synchronous>, transform_indices = @transform_9, window_bounds = array<i64: 1, 32>}, {pipeline_mode = #tpu.pipeline_mode<synchronous>, transform_indices = @transform_10, window_bounds = array<i64: 1, 32>}, {transform_indices = @transform_11, window_bounds = array<i64: 64, 32>}]} {
    %c0 = arith.constant 0 : index
    %c0_0 = arith.constant 0 : index
    %0 = vector.load %arg3[%c0, %c0_0] : memref<32x32xbf16, #tpu.memory_space<vmem>>, vector<32x32xbf16>
    %c0_1 = arith.constant 0 : index
    %c0_2 = arith.constant 0 : index
    %1 = vector.load %arg4[%c0_1, %c0_2] : memref<32x32xbf16, #tpu.memory_space<vmem>>, vector<32x32xbf16>
    %c0_3 = arith.constant 0 : index
    %c0_4 = arith.constant 0 : index
    %2 = vector.load %arg5[%c0_3, %c0_4] : memref<1x32xf32, #tpu.memory_space<vmem>>, vector<1x32xf32>
    %c0_5 = arith.constant 0 : index
    %c0_6 = arith.constant 0 : index
    %3 = vector.load %arg6[%c0_5, %c0_6] : memref<32x32xbf16, #tpu.memory_space<vmem>>, vector<32x32xbf16>
    %c0_7 = arith.constant 0 : index
    %c0_8 = arith.constant 0 : index
    %4 = vector.load %arg7[%c0_7, %c0_8] : memref<1x32xf32, #tpu.memory_space<vmem>>, vector<1x32xf32>
    %c0_9 = arith.constant 0 : index
    %c0_10 = arith.constant 0 : index
    %5 = vector.load %arg8[%c0_9, %c0_10] : memref<32x32xbf16, #tpu.memory_space<vmem>>, vector<32x32xbf16>
    %c0_11 = arith.constant 0 : index
    %c0_12 = arith.constant 0 : index
    %6 = vector.load %arg9[%c0_11, %c0_12] : memref<1x32xf32, #tpu.memory_space<vmem>>, vector<1x32xf32>
    %c0_13 = arith.constant 0 : index
    %c0_14 = arith.constant 0 : index
    %7 = vector.load %arg10[%c0_13, %c0_14] : memref<1x32xf32, #tpu.memory_space<vmem>>, vector<1x32xf32>
    %c0_15 = arith.constant 0 : index
    %c0_16 = arith.constant 0 : index
    %8 = vector.load %arg11[%c0_15, %c0_16] : memref<1x32xf32, #tpu.memory_space<vmem>>, vector<1x32xf32>
    %c0_17 = arith.constant 0 : index
    %c0_18 = arith.constant 0 : index
    %9 = vector.load %arg1[%c0_17, %c0_18] : memref<64x32xbf16, #tpu.memory_space<vmem>>, vector<64x32xbf16>
    %c0_19 = arith.constant 0 : index
    %c0_20 = arith.constant 0 : index
    %c0_21 = arith.constant 0 : index
    %10 = vector.load %arg2[%c0_19, %c0_20, %c0_21] : memref<2x64x32xbf16, #tpu.memory_space<vmem>>, vector<2x64x32xbf16>
    %11 = arith.extf %10 : vector<2x64x32xbf16> to vector<2x64x32xf32>
    %cst = arith.constant dense<0.000000e+00> : vector<64x32xf32>
    %12 = vector.multi_reduction <add>, %11, %cst [0] : vector<2x64x32xf32> to vector<64x32xf32>
    %13 = arith.truncf %12 : vector<64x32xf32> to vector<64x32xbf16>
    %cst_22 = arith.constant dense<0.000000e+00> : vector<64x32xf32>
    %14 = tpu.matmul %9, %0, %cst_22 {dimension_numbers = #tpu.dot_dimension_numbers<[1], [0], [0], [1], [0, 0, 1, 1], [], []>} : vector<64x32xbf16>, vector<32x32xbf16>, vector<64x32xf32> -> vector<64x32xf32>
    %cst_23 = arith.constant dense<0.000000e+00> : vector<64x32xf32>
    %15 = tpu.matmul %13, %1, %cst_23 {dimension_numbers = #tpu.dot_dimension_numbers<[1], [0], [0], [1], [0, 0, 1, 1], [], []>} : vector<64x32xbf16>, vector<32x32xbf16>, vector<64x32xf32> -> vector<64x32xf32>
    %16 = arith.addf %14, %15 : vector<64x32xf32>
    %17 = vector.broadcast %2 : vector<1x32xf32> to vector<64x32xf32>
    %18 = arith.addf %16, %17 : vector<64x32xf32>
    %cst_24 = arith.constant 0.000000e+00 : f32
    %19 = vector.broadcast %cst_24 : f32 to vector<64x32xf32>
    %20 = arith.maximumf %18, %19 : vector<64x32xf32>
    %21 = arith.truncf %20 : vector<64x32xf32> to vector<64x32xbf16>
    %cst_25 = arith.constant dense<0.000000e+00> : vector<64x32xf32>
    %22 = tpu.matmul %21, %3, %cst_25 {dimension_numbers = #tpu.dot_dimension_numbers<[1], [0], [0], [1], [0, 0, 1, 1], [], []>} : vector<64x32xbf16>, vector<32x32xbf16>, vector<64x32xf32> -> vector<64x32xf32>
    %23 = vector.broadcast %4 : vector<1x32xf32> to vector<64x32xf32>
    %24 = arith.addf %22, %23 : vector<64x32xf32>
    %cst_26 = arith.constant 0.000000e+00 : f32
    %25 = vector.broadcast %cst_26 : f32 to vector<64x32xf32>
    %26 = arith.maximumf %24, %25 : vector<64x32xf32>
    %27 = arith.truncf %26 : vector<64x32xf32> to vector<64x32xbf16>
    %cst_27 = arith.constant dense<0.000000e+00> : vector<64x32xf32>
    %28 = tpu.matmul %27, %5, %cst_27 {dimension_numbers = #tpu.dot_dimension_numbers<[1], [0], [0], [1], [0, 0, 1, 1], [], []>} : vector<64x32xbf16>, vector<32x32xbf16>, vector<64x32xf32> -> vector<64x32xf32>
    %29 = vector.broadcast %6 : vector<1x32xf32> to vector<64x32xf32>
    %30 = arith.addf %28, %29 : vector<64x32xf32>
    %cst_28 = arith.constant dense<0.000000e+00> : vector<64xf32>
    %31 = vector.multi_reduction <add>, %30, %cst_28 [1] : vector<64x32xf32> to vector<64xf32>
    %32 = vector.shape_cast %31 : vector<64xf32> to vector<64x1xf32>
    %cst_29 = arith.constant 3.200000e+01 : f32
    %33 = vector.broadcast %cst_29 : f32 to vector<64x1xf32>
    %34 = arith.divf %32, %33 : vector<64x1xf32>
    %35 = vector.broadcast %34 : vector<64x1xf32> to vector<64x32xf32>
    %36 = arith.subf %30, %35 : vector<64x32xf32>
    %37 = arith.mulf %36, %36 : vector<64x32xf32>
    %cst_30 = arith.constant dense<0.000000e+00> : vector<64xf32>
    %38 = vector.multi_reduction <add>, %37, %cst_30 [1] : vector<64x32xf32> to vector<64xf32>
    %39 = vector.shape_cast %38 : vector<64xf32> to vector<64x1xf32>
    %cst_31 = arith.constant 3.200000e+01 : f32
    %40 = vector.broadcast %cst_31 : f32 to vector<64x1xf32>
    %41 = arith.divf %39, %40 : vector<64x1xf32>
    %42 = vector.broadcast %34 : vector<64x1xf32> to vector<64x32xf32>
    %43 = arith.subf %30, %42 : vector<64x32xf32>
    %cst_32 = arith.constant 9.99999974E-6 : f32
    %44 = vector.broadcast %cst_32 : f32 to vector<64x1xf32>
    %45 = arith.addf %41, %44 : vector<64x1xf32>
    %46 = math.rsqrt %45 : vector<64x1xf32>
    %47 = vector.broadcast %46 : vector<64x1xf32> to vector<64x32xf32>
    %48 = arith.mulf %43, %47 : vector<64x32xf32>
    %49 = vector.broadcast %7 : vector<1x32xf32> to vector<64x32xf32>
    %50 = arith.mulf %48, %49 : vector<64x32xf32>
    %51 = vector.broadcast %8 : vector<1x32xf32> to vector<64x32xf32>
    %52 = arith.addf %50, %51 : vector<64x32xf32>
    %53 = arith.extf %9 : vector<64x32xbf16> to vector<64x32xf32>
    %54 = arith.addf %53, %52 : vector<64x32xf32>
    %55 = arith.truncf %54 : vector<64x32xf32> to vector<64x32xbf16>
    %c0_33 = arith.constant 0 : index
    %c0_34 = arith.constant 0 : index
    %56 = vector.load %arg12[%c0_33, %c0_34] : memref<64x32xbf16, #tpu.memory_space<vmem>>, vector<64x32xbf16>
    tpu.vector_store %arg12[%c0_33, %c0_34], %55 {strides = array<i32>} : memref<64x32xbf16, #tpu.memory_space<vmem>>, vector<64x32xbf16>,
    return
  }
  func.func @transform_0(%arg0: i32) -> (i32, i32) {
    %c0_i32 = arith.constant 0 : i32
    %c0_i32_0 = arith.constant 0 : i32
    return %arg0, %c0_i32 : i32, i32
  }
  func.func @transform_1(%arg0: i32) -> (i32, i32, i32) {
    %c0_i32 = arith.constant 0 : i32
    %c0_i32_0 = arith.constant 0 : i32
    %c0_i32_1 = arith.constant 0 : i32
    return %c0_i32, %arg0, %c0_i32_0 : i32, i32, i32
  }
  func.func @transform_2(%arg0: i32) -> (i32, i32) {
    %c0_i32 = arith.constant 0 : i32
    %c0_i32_0 = arith.constant 0 : i32
    %c0_i32_1 = arith.constant 0 : i32
    return %c0_i32, %c0_i32_0 : i32, i32
  }
  func.func @transform_3(%arg0: i32) -> (i32, i32) {
    %c0_i32 = arith.constant 0 : i32
    %c0_i32_0 = arith.constant 0 : i32
    %c0_i32_1 = arith.constant 0 : i32
    return %c0_i32, %c0_i32_0 : i32, i32
  }
  func.func @transform_4(%arg0: i32) -> (i32, i32) {
    %c0_i32 = arith.constant 0 : i32
    %c0_i32_0 = arith.constant 0 : i32
    %c0_i32_1 = arith.constant 0 : i32
    return %c0_i32, %c0_i32_0 : i32, i32
  }
  func.func @transform_5(%arg0: i32) -> (i32, i32) {
    %c0_i32 = arith.constant 0 : i32
    %c0_i32_0 = arith.constant 0 : i32
    %c0_i32_1 = arith.constant 0 : i32
    return %c0_i32, %c0_i32_0 : i32, i32
  }
  func.func @transform_6(%arg0: i32) -> (i32, i32) {
    %c0_i32 = arith.constant 0 : i32
    %c0_i32_0 = arith.constant 0 : i32
    %c0_i32_1 = arith.constant 0 : i32
    return %c0_i32, %c0_i32_0 : i32, i32
  }
  func.func @transform_7(%arg0: i32) -> (i32, i32) {
    %c0_i32 = arith.constant 0 : i32
    %c0_i32_0 = arith.constant 0 : i32
    %c0_i32_1 = arith.constant 0 : i32
    return %c0_i32, %c0_i32_0 : i32, i32
  }
  func.func @transform_8(%arg0: i32) -> (i32, i32) {
    %c0_i32 = arith.constant 0 : i32
    %c0_i32_0 = arith.constant 0 : i32
    %c0_i32_1 = arith.constant 0 : i32
    return %c0_i32, %c0_i32_0 : i32, i32
  }
  func.func @transform_9(%arg0: i32) -> (i32, i32) {
    %c0_i32 = arith.constant 0 : i32
    %c0_i32_0 = arith.constant 0 : i32
    %c0_i32_1 = arith.constant 0 : i32
    return %c0_i32, %c0_i32_0 : i32, i32
  }
  func.func @transform_10(%arg0: i32) -> (i32, i32) {
    %c0_i32 = arith.constant 0 : i32
    %c0_i32_0 = arith.constant 0 : i32
    %c0_i32_1 = arith.constant 0 : i32
    return %c0_i32, %c0_i32_0 : i32, i32
  }
  func.func @transform_11(%arg0: i32) -> (i32, i32) {
    %c0_i32 = arith.constant 0 : i32
    %c0_i32_0 = arith.constant 0 : i32
    return %arg0, %c0_i32 : i32, i32
  }
}

module attributes {stable_mosaic.version = 11 : i64} {
  func.func @_edge_gmp_kernel(%arg0: i32, %arg1: i32, %arg2: memref<1x128xi32, #tpu.memory_space<vmem>>, %arg3: memref<128x32xbf16, #tpu.memory_space<vmem>>, %arg4: memref<128x32xbf16, #tpu.memory_space<vmem>>, %arg5: memref<128x2xbf16, #tpu.memory_space<vmem>>, %arg6: memref<32x32xbf16, #tpu.memory_space<vmem>>, %arg7: memref<32x32xbf16, #tpu.memory_space<vmem>>, %arg8: memref<2x32xbf16, #tpu.memory_space<vmem>>, %arg9: memref<1x32xf32, #tpu.memory_space<vmem>>, %arg10: memref<32x32xbf16, #tpu.memory_space<vmem>>, %arg11: memref<1x32xf32, #tpu.memory_space<vmem>>, %arg12: memref<32x32xbf16, #tpu.memory_space<vmem>>, %arg13: memref<1x32xf32, #tpu.memory_space<vmem>>, %arg14: memref<1x32xf32, #tpu.memory_space<vmem>>, %arg15: memref<1x32xf32, #tpu.memory_space<vmem>>, %arg16: memref<1x128x32xbf16, #tpu.memory_space<vmem>>, %arg17: memref<128x32xf32, #tpu.memory_space<vmem>>) attributes {dimension_semantics = [#tpu.dimension_semantics<parallel>, #tpu.dimension_semantics<arbitrary>], iteration_bounds = array<i64: 2, 1>, scalar_prefetch = 0 : i64, scratch_operands = 1 : i64, tpu.core_type = #tpu.core_type<tc>, window_params = [{transform_indices = @transform_0, window_bounds = array<i64: 1, 128>}, {transform_indices = @transform_1, window_bounds = array<i64: 128, 32>}, {transform_indices = @transform_2, window_bounds = array<i64: 128, 32>}, {transform_indices = @transform_3, window_bounds = array<i64: 128, 2>}, {pipeline_mode = #tpu.pipeline_mode<synchronous>, transform_indices = @transform_4, window_bounds = array<i64: 32, 32>}, {pipeline_mode = #tpu.pipeline_mode<synchronous>, transform_indices = @transform_5, window_bounds = array<i64: 32, 32>}, {pipeline_mode = #tpu.pipeline_mode<synchronous>, transform_indices = @transform_6, window_bounds = array<i64: 2, 32>}, {pipeline_mode = #tpu.pipeline_mode<synchronous>, transform_indices = @transform_7, window_bounds = array<i64: 1, 32>}, {pipeline_mode = #tpu.pipeline_mode<synchronous>, transform_indices = @transform_8, window_bounds = array<i64: 32, 32>}, {pipeline_mode = #tpu.pipeline_mode<synchronous>, transform_indices = @transform_9, window_bounds = array<i64: 1, 32>}, {pipeline_mode = #tpu.pipeline_mode<synchronous>, transform_indices = @transform_10, window_bounds = array<i64: 32, 32>}, {pipeline_mode = #tpu.pipeline_mode<synchronous>, transform_indices = @transform_11, window_bounds = array<i64: 1, 32>}, {pipeline_mode = #tpu.pipeline_mode<synchronous>, transform_indices = @transform_12, window_bounds = array<i64: 1, 32>}, {pipeline_mode = #tpu.pipeline_mode<synchronous>, transform_indices = @transform_13, window_bounds = array<i64: 1, 32>}, {transform_indices = @transform_14, window_bounds = array<i64: 1, 128, 32>}]} {
    %c0 = arith.constant 0 : index
    %c0_0 = arith.constant 0 : index
    %0 = vector.load %arg6[%c0, %c0_0] : memref<32x32xbf16, #tpu.memory_space<vmem>>, vector<32x32xbf16>
    %c0_1 = arith.constant 0 : index
    %c0_2 = arith.constant 0 : index
    %1 = vector.load %arg7[%c0_1, %c0_2] : memref<32x32xbf16, #tpu.memory_space<vmem>>, vector<32x32xbf16>
    %c0_3 = arith.constant 0 : index
    %c0_4 = arith.constant 0 : index
    %2 = vector.load %arg8[%c0_3, %c0_4] : memref<2x32xbf16, #tpu.memory_space<vmem>>, vector<2x32xbf16>
    %c0_5 = arith.constant 0 : index
    %c0_6 = arith.constant 0 : index
    %3 = vector.load %arg9[%c0_5, %c0_6] : memref<1x32xf32, #tpu.memory_space<vmem>>, vector<1x32xf32>
    %c0_7 = arith.constant 0 : index
    %c0_8 = arith.constant 0 : index
    %4 = vector.load %arg10[%c0_7, %c0_8] : memref<32x32xbf16, #tpu.memory_space<vmem>>, vector<32x32xbf16>
    %c0_9 = arith.constant 0 : index
    %c0_10 = arith.constant 0 : index
    %5 = vector.load %arg11[%c0_9, %c0_10] : memref<1x32xf32, #tpu.memory_space<vmem>>, vector<1x32xf32>
    %c0_11 = arith.constant 0 : index
    %c0_12 = arith.constant 0 : index
    %6 = vector.load %arg12[%c0_11, %c0_12] : memref<32x32xbf16, #tpu.memory_space<vmem>>, vector<32x32xbf16>
    %c0_13 = arith.constant 0 : index
    %c0_14 = arith.constant 0 : index
    %7 = vector.load %arg13[%c0_13, %c0_14] : memref<1x32xf32, #tpu.memory_space<vmem>>, vector<1x32xf32>
    %c0_15 = arith.constant 0 : index
    %c0_16 = arith.constant 0 : index
    %8 = vector.load %arg14[%c0_15, %c0_16] : memref<1x32xf32, #tpu.memory_space<vmem>>, vector<1x32xf32>
    %c0_17 = arith.constant 0 : index
    %c0_18 = arith.constant 0 : index
    %9 = vector.load %arg15[%c0_17, %c0_18] : memref<1x32xf32, #tpu.memory_space<vmem>>, vector<1x32xf32>
    %c0_i32 = arith.constant 0 : i32
    %10 = arith.cmpi eq, %arg1, %c0_i32 : i32
    %11 = arith.extui %10 : i1 to i32
    %c0_i32_19 = arith.constant 0 : i32
    %12 = arith.cmpi ne, %11, %c0_i32_19 : i32
    scf.if %12 {
      %cst_46 = arith.constant 0.000000e+00 : f32
      %72 = vector.broadcast %cst_46 : f32 to vector<128x32xf32>
      %c0_47 = arith.constant 0 : index
      %c0_48 = arith.constant 0 : index
      %73 = vector.load %arg17[%c0_47, %c0_48] : memref<128x32xf32, #tpu.memory_space<vmem>>, vector<128x32xf32>
      tpu.vector_store %arg17[%c0_47, %c0_48], %72 {strides = array<i32>} : memref<128x32xf32, #tpu.memory_space<vmem>>, vector<128x32xf32>,
    } else {
    }
    %c0_20 = arith.constant 0 : index
    %c0_21 = arith.constant 0 : index
    %13 = vector.load %arg3[%c0_20, %c0_21] : memref<128x32xbf16, #tpu.memory_space<vmem>>, vector<128x32xbf16>
    %c0_22 = arith.constant 0 : index
    %c0_23 = arith.constant 0 : index
    %14 = vector.load %arg4[%c0_22, %c0_23] : memref<128x32xbf16, #tpu.memory_space<vmem>>, vector<128x32xbf16>
    %c0_24 = arith.constant 0 : index
    %c0_25 = arith.constant 0 : index
    %15 = vector.load %arg5[%c0_24, %c0_25] : memref<128x2xbf16, #tpu.memory_space<vmem>>, vector<128x2xbf16>
    %cst = arith.constant dense<0.000000e+00> : vector<128x32xf32>
    %16 = tpu.matmul %13, %0, %cst {dimension_numbers = #tpu.dot_dimension_numbers<[1], [0], [0], [1], [0, 0, 1, 1], [], []>} : vector<128x32xbf16>, vector<32x32xbf16>, vector<128x32xf32> -> vector<128x32xf32>
    %cst_26 = arith.constant dense<0.000000e+00> : vector<128x32xf32>
    %17 = tpu.matmul %14, %1, %cst_26 {dimension_numbers = #tpu.dot_dimension_numbers<[1], [0], [0], [1], [0, 0, 1, 1], [], []>} : vector<128x32xbf16>, vector<32x32xbf16>, vector<128x32xf32> -> vector<128x32xf32>
    %18 = arith.addf %16, %17 : vector<128x32xf32>
    %cst_27 = arith.constant dense<0.000000e+00> : vector<128x32xf32>
    %19 = tpu.matmul %15, %2, %cst_27 {dimension_numbers = #tpu.dot_dimension_numbers<[1], [0], [0], [1], [0, 0, 1, 1], [], []>} : vector<128x2xbf16>, vector<2x32xbf16>, vector<128x32xf32> -> vector<128x32xf32>
    %20 = arith.addf %18, %19 : vector<128x32xf32>
    %21 = vector.broadcast %3 : vector<1x32xf32> to vector<128x32xf32>
    %22 = arith.addf %20, %21 : vector<128x32xf32>
    %cst_28 = arith.constant 0.000000e+00 : f32
    %23 = vector.broadcast %cst_28 : f32 to vector<128x32xf32>
    %24 = arith.maximumf %22, %23 : vector<128x32xf32>
    %25 = arith.truncf %24 : vector<128x32xf32> to vector<128x32xbf16>
    %cst_29 = arith.constant dense<0.000000e+00> : vector<128x32xf32>
    %26 = tpu.matmul %25, %4, %cst_29 {dimension_numbers = #tpu.dot_dimension_numbers<[1], [0], [0], [1], [0, 0, 1, 1], [], []>} : vector<128x32xbf16>, vector<32x32xbf16>, vector<128x32xf32> -> vector<128x32xf32>
    %27 = vector.broadcast %5 : vector<1x32xf32> to vector<128x32xf32>
    %28 = arith.addf %26, %27 : vector<128x32xf32>
    %cst_30 = arith.constant 0.000000e+00 : f32
    %29 = vector.broadcast %cst_30 : f32 to vector<128x32xf32>
    %30 = arith.maximumf %28, %29 : vector<128x32xf32>
    %31 = arith.truncf %30 : vector<128x32xf32> to vector<128x32xbf16>
    %cst_31 = arith.constant dense<0.000000e+00> : vector<128x32xf32>
    %32 = tpu.matmul %31, %6, %cst_31 {dimension_numbers = #tpu.dot_dimension_numbers<[1], [0], [0], [1], [0, 0, 1, 1], [], []>} : vector<128x32xbf16>, vector<32x32xbf16>, vector<128x32xf32> -> vector<128x32xf32>
    %33 = vector.broadcast %7 : vector<1x32xf32> to vector<128x32xf32>
    %34 = arith.addf %32, %33 : vector<128x32xf32>
    %cst_32 = arith.constant dense<0.000000e+00> : vector<128xf32>
    %35 = vector.multi_reduction <add>, %34, %cst_32 [1] : vector<128x32xf32> to vector<128xf32>
    %36 = vector.shape_cast %35 : vector<128xf32> to vector<128x1xf32>
    %cst_33 = arith.constant 3.200000e+01 : f32
    %37 = vector.broadcast %cst_33 : f32 to vector<128x1xf32>
    %38 = arith.divf %36, %37 : vector<128x1xf32>
    %39 = vector.broadcast %38 : vector<128x1xf32> to vector<128x32xf32>
    %40 = arith.subf %34, %39 : vector<128x32xf32>
    %41 = arith.mulf %40, %40 : vector<128x32xf32>
    %cst_34 = arith.constant dense<0.000000e+00> : vector<128xf32>
    %42 = vector.multi_reduction <add>, %41, %cst_34 [1] : vector<128x32xf32> to vector<128xf32>
    %43 = vector.shape_cast %42 : vector<128xf32> to vector<128x1xf32>
    %cst_35 = arith.constant 3.200000e+01 : f32
    %44 = vector.broadcast %cst_35 : f32 to vector<128x1xf32>
    %45 = arith.divf %43, %44 : vector<128x1xf32>
    %46 = vector.broadcast %38 : vector<128x1xf32> to vector<128x32xf32>
    %47 = arith.subf %34, %46 : vector<128x32xf32>
    %cst_36 = arith.constant 9.99999974E-6 : f32
    %48 = vector.broadcast %cst_36 : f32 to vector<128x1xf32>
    %49 = arith.addf %45, %48 : vector<128x1xf32>
    %50 = math.rsqrt %49 : vector<128x1xf32>
    %51 = vector.broadcast %50 : vector<128x1xf32> to vector<128x32xf32>
    %52 = arith.mulf %47, %51 : vector<128x32xf32>
    %53 = vector.broadcast %8 : vector<1x32xf32> to vector<128x32xf32>
    %54 = arith.mulf %52, %53 : vector<128x32xf32>
    %55 = vector.broadcast %9 : vector<1x32xf32> to vector<128x32xf32>
    %56 = arith.addf %54, %55 : vector<128x32xf32>
    %c0_37 = arith.constant 0 : index
    %c0_38 = arith.constant 0 : index
    %57 = vector.load %arg2[%c0_37, %c0_38] : memref<1x128xi32, #tpu.memory_space<vmem>>, vector<1x128xi32>
    %58 = tpu.iota {dimensions = array<i32: 0>} : vector<128x128xi32>
    %59 = vector.broadcast %57 : vector<1x128xi32> to vector<128x128xi32>
    %60 = arith.cmpi eq, %58, %59 : vector<128x128xi32>
    %61 = arith.extui %60 : vector<128x128xi1> to vector<128x128xi32>
    %62 = arith.sitofp %61 : vector<128x128xi32> to vector<128x128xf32>
    %63 = arith.truncf %62 : vector<128x128xf32> to vector<128x128xbf16>
    %c0_39 = arith.constant 0 : index
    %c0_40 = arith.constant 0 : index
    %64 = vector.load %arg17[%c0_39, %c0_40] : memref<128x32xf32, #tpu.memory_space<vmem>>, vector<128x32xf32>
    %65 = arith.truncf %56 : vector<128x32xf32> to vector<128x32xbf16>
    %cst_41 = arith.constant dense<0.000000e+00> : vector<128x32xf32>
    %66 = tpu.matmul %63, %65, %cst_41 {dimension_numbers = #tpu.dot_dimension_numbers<[1], [0], [0], [1], [0, 0, 1, 1], [], []>} : vector<128x128xbf16>, vector<128x32xbf16>, vector<128x32xf32> -> vector<128x32xf32>
    %67 = arith.addf %64, %66 : vector<128x32xf32>
    %c0_42 = arith.constant 0 : index
    %c0_43 = arith.constant 0 : index
    %68 = vector.load %arg17[%c0_42, %c0_43] : memref<128x32xf32, #tpu.memory_space<vmem>>, vector<128x32xf32>
    tpu.vector_store %arg17[%c0_42, %c0_43], %67 {strides = array<i32>} : memref<128x32xf32, #tpu.memory_space<vmem>>, vector<128x32xf32>,
    %c0_i32_44 = arith.constant 0 : i32
    %69 = arith.cmpi eq, %arg1, %c0_i32_44 : i32
    %70 = arith.extui %69 : i1 to i32
    %c0_i32_45 = arith.constant 0 : i32
    %71 = arith.cmpi ne, %70, %c0_i32_45 : i32
    scf.if %71 {
      %c0_46 = arith.constant 0 : index
      %c0_47 = arith.constant 0 : index
      %72 = vector.load %arg17[%c0_46, %c0_47] : memref<128x32xf32, #tpu.memory_space<vmem>>, vector<128x32xf32>
      %73 = arith.truncf %72 : vector<128x32xf32> to vector<128x32xbf16>
      %c0_48 = arith.constant 0 : index
      %c0_49 = arith.constant 0 : index
      %c0_50 = arith.constant 0 : index
      %74 = vector.load %arg16[%c0_48, %c0_49, %c0_50] : memref<1x128x32xbf16, #tpu.memory_space<vmem>>, vector<1x128x32xbf16>
      %75 = vector.shape_cast %74 : vector<1x128x32xbf16> to vector<128x32xbf16>
      %76 = vector.shape_cast %73 : vector<128x32xbf16> to vector<1x128x32xbf16>
      tpu.vector_store %arg16[%c0_48, %c0_49, %c0_50], %76 {strides = array<i32>} : memref<1x128x32xbf16, #tpu.memory_space<vmem>>, vector<1x128x32xbf16>,
    } else {
    }
    return
  }
  func.func @transform_0(%arg0: i32, %arg1: i32) -> (i32, i32) {
    %c1_i32 = arith.constant 1 : i32
    %0 = arith.muli %arg0, %c1_i32 : i32
    %1 = arith.addi %0, %arg1 : i32
    %c0_i32 = arith.constant 0 : i32
    %c0_i32_0 = arith.constant 0 : i32
    return %c0_i32, %1 : i32, i32
  }
  func.func @transform_1(%arg0: i32, %arg1: i32) -> (i32, i32) {
    %c1_i32 = arith.constant 1 : i32
    %0 = arith.muli %arg0, %c1_i32 : i32
    %1 = arith.addi %0, %arg1 : i32
    %c0_i32 = arith.constant 0 : i32
    %c0_i32_0 = arith.constant 0 : i32
    return %1, %c0_i32 : i32, i32
  }
  func.func @transform_2(%arg0: i32, %arg1: i32) -> (i32, i32) {
    %c1_i32 = arith.constant 1 : i32
    %0 = arith.muli %arg0, %c1_i32 : i32
    %1 = arith.addi %0, %arg1 : i32
    %c0_i32 = arith.constant 0 : i32
    %c0_i32_0 = arith.constant 0 : i32
    return %1, %c0_i32 : i32, i32
  }
  func.func @transform_3(%arg0: i32, %arg1: i32) -> (i32, i32) {
    %c1_i32 = arith.constant 1 : i32
    %0 = arith.muli %arg0, %c1_i32 : i32
    %1 = arith.addi %0, %arg1 : i32
    %c0_i32 = arith.constant 0 : i32
    %c0_i32_0 = arith.constant 0 : i32
    return %1, %c0_i32 : i32, i32
  }
  func.func @transform_4(%arg0: i32, %arg1: i32) -> (i32, i32) {
    %c0_i32 = arith.constant 0 : i32
    %c0_i32_0 = arith.constant 0 : i32
    %c0_i32_1 = arith.constant 0 : i32
    return %c0_i32, %c0_i32_0 : i32, i32
  }
  func.func @transform_5(%arg0: i32, %arg1: i32) -> (i32, i32) {
    %c0_i32 = arith.constant 0 : i32
    %c0_i32_0 = arith.constant 0 : i32
    %c0_i32_1 = arith.constant 0 : i32
    return %c0_i32, %c0_i32_0 : i32, i32
  }
  func.func @transform_6(%arg0: i32, %arg1: i32) -> (i32, i32) {
    %c0_i32 = arith.constant 0 : i32
    %c0_i32_0 = arith.constant 0 : i32
    %c0_i32_1 = arith.constant 0 : i32
    return %c0_i32, %c0_i32_0 : i32, i32
  }
  func.func @transform_7(%arg0: i32, %arg1: i32) -> (i32, i32) {
    %c0_i32 = arith.constant 0 : i32
    %c0_i32_0 = arith.constant 0 : i32
    %c0_i32_1 = arith.constant 0 : i32
    return %c0_i32, %c0_i32_0 : i32, i32
  }
  func.func @transform_8(%arg0: i32, %arg1: i32) -> (i32, i32) {
    %c0_i32 = arith.constant 0 : i32
    %c0_i32_0 = arith.constant 0 : i32
    %c0_i32_1 = arith.constant 0 : i32
    return %c0_i32, %c0_i32_0 : i32, i32
  }
  func.func @transform_9(%arg0: i32, %arg1: i32) -> (i32, i32) {
    %c0_i32 = arith.constant 0 : i32
    %c0_i32_0 = arith.constant 0 : i32
    %c0_i32_1 = arith.constant 0 : i32
    return %c0_i32, %c0_i32_0 : i32, i32
  }
  func.func @transform_10(%arg0: i32, %arg1: i32) -> (i32, i32) {
    %c0_i32 = arith.constant 0 : i32
    %c0_i32_0 = arith.constant 0 : i32
    %c0_i32_1 = arith.constant 0 : i32
    return %c0_i32, %c0_i32_0 : i32, i32
  }
  func.func @transform_11(%arg0: i32, %arg1: i32) -> (i32, i32) {
    %c0_i32 = arith.constant 0 : i32
    %c0_i32_0 = arith.constant 0 : i32
    %c0_i32_1 = arith.constant 0 : i32
    return %c0_i32, %c0_i32_0 : i32, i32
  }
  func.func @transform_12(%arg0: i32, %arg1: i32) -> (i32, i32) {
    %c0_i32 = arith.constant 0 : i32
    %c0_i32_0 = arith.constant 0 : i32
    %c0_i32_1 = arith.constant 0 : i32
    return %c0_i32, %c0_i32_0 : i32, i32
  }
  func.func @transform_13(%arg0: i32, %arg1: i32) -> (i32, i32) {
    %c0_i32 = arith.constant 0 : i32
    %c0_i32_0 = arith.constant 0 : i32
    %c0_i32_1 = arith.constant 0 : i32
    return %c0_i32, %c0_i32_0 : i32, i32
  }
  func.func @transform_14(%arg0: i32, %arg1: i32) -> (i32, i32, i32) {
    %c0_i32 = arith.constant 0 : i32
    %c0_i32_0 = arith.constant 0 : i32
    %c0_i32_1 = arith.constant 0 : i32
    return %arg0, %c0_i32, %c0_i32_0 : i32, i32, i32
  }
}

module attributes {stable_mosaic.version = 11 : i64} {
  func.func @_decode_sse_kernel(%arg0: i32, %arg1: memref<64x32xbf16, #tpu.memory_space<vmem>>, %arg2: memref<64x2xf32, #tpu.memory_space<vmem>>, %arg3: memref<32x32xbf16, #tpu.memory_space<vmem>>, %arg4: memref<1x32xf32, #tpu.memory_space<vmem>>, %arg5: memref<32x32xbf16, #tpu.memory_space<vmem>>, %arg6: memref<1x32xf32, #tpu.memory_space<vmem>>, %arg7: memref<32x2xbf16, #tpu.memory_space<vmem>>, %arg8: memref<1x2xf32, #tpu.memory_space<vmem>>, %arg9: memref<64x2xf32, #tpu.memory_space<vmem>>, %arg10: memref<1xf32, #tpu.memory_space<smem>>, %arg11: memref<1xf32, #tpu.memory_space<smem>>) attributes {dimension_semantics = [#tpu.dimension_semantics<arbitrary>], iteration_bounds = array<i64: 2>, scalar_prefetch = 0 : i64, scratch_operands = 1 : i64, tpu.core_type = #tpu.core_type<tc>, window_params = [{transform_indices = @transform_0, window_bounds = array<i64: 64, 32>}, {transform_indices = @transform_1, window_bounds = array<i64: 64, 2>}, {pipeline_mode = #tpu.pipeline_mode<synchronous>, transform_indices = @transform_2, window_bounds = array<i64: 32, 32>}, {pipeline_mode = #tpu.pipeline_mode<synchronous>, transform_indices = @transform_3, window_bounds = array<i64: 1, 32>}, {pipeline_mode = #tpu.pipeline_mode<synchronous>, transform_indices = @transform_4, window_bounds = array<i64: 32, 32>}, {pipeline_mode = #tpu.pipeline_mode<synchronous>, transform_indices = @transform_5, window_bounds = array<i64: 1, 32>}, {pipeline_mode = #tpu.pipeline_mode<synchronous>, transform_indices = @transform_6, window_bounds = array<i64: 32, 2>}, {pipeline_mode = #tpu.pipeline_mode<synchronous>, transform_indices = @transform_7, window_bounds = array<i64: 1, 2>}, {transform_indices = @transform_8, window_bounds = array<i64: 64, 2>}, {transform_indices = @transform_9, window_bounds = array<i64: 1>}]} {
    %c0 = arith.constant 0 : index
    %c0_0 = arith.constant 0 : index
    %0 = vector.load %arg3[%c0, %c0_0] : memref<32x32xbf16, #tpu.memory_space<vmem>>, vector<32x32xbf16>
    %c0_1 = arith.constant 0 : index
    %c0_2 = arith.constant 0 : index
    %1 = vector.load %arg4[%c0_1, %c0_2] : memref<1x32xf32, #tpu.memory_space<vmem>>, vector<1x32xf32>
    %c0_3 = arith.constant 0 : index
    %c0_4 = arith.constant 0 : index
    %2 = vector.load %arg5[%c0_3, %c0_4] : memref<32x32xbf16, #tpu.memory_space<vmem>>, vector<32x32xbf16>
    %c0_5 = arith.constant 0 : index
    %c0_6 = arith.constant 0 : index
    %3 = vector.load %arg6[%c0_5, %c0_6] : memref<1x32xf32, #tpu.memory_space<vmem>>, vector<1x32xf32>
    %c0_7 = arith.constant 0 : index
    %c0_8 = arith.constant 0 : index
    %4 = vector.load %arg7[%c0_7, %c0_8] : memref<32x2xbf16, #tpu.memory_space<vmem>>, vector<32x2xbf16>
    %c0_9 = arith.constant 0 : index
    %c0_10 = arith.constant 0 : index
    %5 = vector.load %arg8[%c0_9, %c0_10] : memref<1x2xf32, #tpu.memory_space<vmem>>, vector<1x2xf32>
    %c0_i32 = arith.constant 0 : i32
    %6 = arith.cmpi eq, %arg0, %c0_i32 : i32
    %7 = arith.extui %6 : i1 to i32
    %c0_i32_11 = arith.constant 0 : i32
    %8 = arith.cmpi ne, %7, %c0_i32_11 : i32
    scf.if %8 {
      %cst_27 = arith.constant 0.000000e+00 : f32
      %c0_28 = arith.constant 0 : index
      %49 = memref.load %arg11[%c0_28] : memref<1xf32, #tpu.memory_space<smem>>
      memref.store %cst_27, %arg11[%c0_28] : memref<1xf32, #tpu.memory_space<smem>>
    } else {
    }
    %c0_12 = arith.constant 0 : index
    %c0_13 = arith.constant 0 : index
    %9 = vector.load %arg1[%c0_12, %c0_13] : memref<64x32xbf16, #tpu.memory_space<vmem>>, vector<64x32xbf16>
    %cst = arith.constant dense<0.000000e+00> : vector<64x32xf32>
    %10 = tpu.matmul %9, %0, %cst {dimension_numbers = #tpu.dot_dimension_numbers<[1], [0], [0], [1], [0, 0, 1, 1], [], []>} : vector<64x32xbf16>, vector<32x32xbf16>, vector<64x32xf32> -> vector<64x32xf32>
    %11 = vector.broadcast %1 : vector<1x32xf32> to vector<64x32xf32>
    %12 = arith.addf %10, %11 : vector<64x32xf32>
    %cst_14 = arith.constant 0.000000e+00 : f32
    %13 = vector.broadcast %cst_14 : f32 to vector<64x32xf32>
    %14 = arith.maximumf %12, %13 : vector<64x32xf32>
    %15 = arith.truncf %14 : vector<64x32xf32> to vector<64x32xbf16>
    %cst_15 = arith.constant dense<0.000000e+00> : vector<64x32xf32>
    %16 = tpu.matmul %15, %2, %cst_15 {dimension_numbers = #tpu.dot_dimension_numbers<[1], [0], [0], [1], [0, 0, 1, 1], [], []>} : vector<64x32xbf16>, vector<32x32xbf16>, vector<64x32xf32> -> vector<64x32xf32>
    %17 = vector.broadcast %3 : vector<1x32xf32> to vector<64x32xf32>
    %18 = arith.addf %16, %17 : vector<64x32xf32>
    %cst_16 = arith.constant 0.000000e+00 : f32
    %19 = vector.broadcast %cst_16 : f32 to vector<64x32xf32>
    %20 = arith.maximumf %18, %19 : vector<64x32xf32>
    %21 = arith.truncf %20 : vector<64x32xf32> to vector<64x32xbf16>
    %cst_17 = arith.constant dense<0.000000e+00> : vector<64x2xf32>
    %22 = tpu.matmul %21, %4, %cst_17 {dimension_numbers = #tpu.dot_dimension_numbers<[1], [0], [0], [1], [0, 0, 1, 1], [], []>} : vector<64x32xbf16>, vector<32x2xbf16>, vector<64x2xf32> -> vector<64x2xf32>
    %23 = vector.broadcast %5 : vector<1x2xf32> to vector<64x2xf32>
    %24 = arith.addf %22, %23 : vector<64x2xf32>
    %c0_18 = arith.constant 0 : index
    %c0_19 = arith.constant 0 : index
    %25 = vector.load %arg9[%c0_18, %c0_19] : memref<64x2xf32, #tpu.memory_space<vmem>>, vector<64x2xf32>
    tpu.vector_store %arg9[%c0_18, %c0_19], %24 {strides = array<i32>} : memref<64x2xf32, #tpu.memory_space<vmem>>, vector<64x2xf32>,
    %c64_i32 = arith.constant 64 : i32
    %26 = arith.muli %arg0, %c64_i32 : i32
    %27 = tpu.iota {dimensions = array<i32: 0>} : vector<64x1xi32>
    %28 = vector.broadcast %26 : i32 to vector<64x1xi32>
    %29 = arith.addi %28, %27 : vector<64x1xi32>
    %c128_i32 = arith.constant 128 : i32
    %30 = vector.broadcast %c128_i32 : i32 to vector<64x1xi32>
    %31 = arith.cmpi slt, %29, %30 : vector<64x1xi32>
    %c0_20 = arith.constant 0 : index
    %c0_21 = arith.constant 0 : index
    %32 = vector.load %arg2[%c0_20, %c0_21] : memref<64x2xf32, #tpu.memory_space<vmem>>, vector<64x2xf32>
    %33 = arith.subf %24, %32 : vector<64x2xf32>
    %cst_22 = arith.constant 0.000000e+00 : f32
    %34 = vector.shape_cast %31 : vector<64x1xi1> to vector<64x1xi1>
    %35 = vector.broadcast %34 : vector<64x1xi1> to vector<64x2xi1>
    %36 = vector.broadcast %cst_22 : f32 to vector<64x2xf32>
    %37 = arith.select %35, %33, %36 : vector<64x2xi1>, vector<64x2xf32>
    %c0_23 = arith.constant 0 : index
    %38 = memref.load %arg11[%c0_23] : memref<1xf32, #tpu.memory_space<smem>>
    %39 = arith.mulf %37, %37 : vector<64x2xf32>
    %40 = vector.shape_cast %39 : vector<64x2xf32> to vector<1x64x2xf32>
    %cst_24 = arith.constant dense<0.000000e+00> : vector<1xf32>
    %41 = vector.multi_reduction <add>, %40, %cst_24 [1, 2] : vector<1x64x2xf32> to vector<1xf32>
    %42 = vector.shape_cast %41 : vector<1xf32> to vector<1x1x1xf32>
    %43 = vector.extract %42[0, 0, 0] : f32 from vector<1x1x1xf32>
    %44 = arith.addf %38, %43 : f32
    %c0_25 = arith.constant 0 : index
    %45 = memref.load %arg11[%c0_25] : memref<1xf32, #tpu.memory_space<smem>>
    memref.store %44, %arg11[%c0_25] : memref<1xf32, #tpu.memory_space<smem>>
    %c1_i32 = arith.constant 1 : i32
    %46 = arith.cmpi eq, %arg0, %c1_i32 : i32
    %47 = arith.extui %46 : i1 to i32
    %c0_i32_26 = arith.constant 0 : i32
    %48 = arith.cmpi ne, %47, %c0_i32_26 : i32
    scf.if %48 {
      %c0_27 = arith.constant 0 : index
      %49 = memref.load %arg11[%c0_27] : memref<1xf32, #tpu.memory_space<smem>>
      %c0_28 = arith.constant 0 : index
      %50 = memref.load %arg10[%c0_28] : memref<1xf32, #tpu.memory_space<smem>>
      memref.store %49, %arg10[%c0_28] : memref<1xf32, #tpu.memory_space<smem>>
    } else {
    }
    return
  }
  func.func @transform_0(%arg0: i32) -> (i32, i32) {
    %c0_i32 = arith.constant 0 : i32
    %c0_i32_0 = arith.constant 0 : i32
    return %arg0, %c0_i32 : i32, i32
  }
  func.func @transform_1(%arg0: i32) -> (i32, i32) {
    %c0_i32 = arith.constant 0 : i32
    %c0_i32_0 = arith.constant 0 : i32
    return %arg0, %c0_i32 : i32, i32
  }
  func.func @transform_2(%arg0: i32) -> (i32, i32) {
    %c0_i32 = arith.constant 0 : i32
    %c0_i32_0 = arith.constant 0 : i32
    %c0_i32_1 = arith.constant 0 : i32
    return %c0_i32, %c0_i32_0 : i32, i32
  }
  func.func @transform_3(%arg0: i32) -> (i32, i32) {
    %c0_i32 = arith.constant 0 : i32
    %c0_i32_0 = arith.constant 0 : i32
    %c0_i32_1 = arith.constant 0 : i32
    return %c0_i32, %c0_i32_0 : i32, i32
  }
  func.func @transform_4(%arg0: i32) -> (i32, i32) {
    %c0_i32 = arith.constant 0 : i32
    %c0_i32_0 = arith.constant 0 : i32
    %c0_i32_1 = arith.constant 0 : i32
    return %c0_i32, %c0_i32_0 : i32, i32
  }
  func.func @transform_5(%arg0: i32) -> (i32, i32) {
    %c0_i32 = arith.constant 0 : i32
    %c0_i32_0 = arith.constant 0 : i32
    %c0_i32_1 = arith.constant 0 : i32
    return %c0_i32, %c0_i32_0 : i32, i32
  }
  func.func @transform_6(%arg0: i32) -> (i32, i32) {
    %c0_i32 = arith.constant 0 : i32
    %c0_i32_0 = arith.constant 0 : i32
    %c0_i32_1 = arith.constant 0 : i32
    return %c0_i32, %c0_i32_0 : i32, i32
  }
  func.func @transform_7(%arg0: i32) -> (i32, i32) {
    %c0_i32 = arith.constant 0 : i32
    %c0_i32_0 = arith.constant 0 : i32
    %c0_i32_1 = arith.constant 0 : i32
    return %c0_i32, %c0_i32_0 : i32, i32
  }
  func.func @transform_8(%arg0: i32) -> (i32, i32) {
    %c0_i32 = arith.constant 0 : i32
    %c0_i32_0 = arith.constant 0 : i32
    return %arg0, %c0_i32 : i32, i32
  }
  func.func @transform_9(%arg0: i32) -> i32 {
    %c0_i32 = arith.constant 0 : i32
    %c0_i32_0 = arith.constant 0 : i32
    return %c0_i32 : i32
  }
}

</mosaic_0001>

<bundles_post_ra>
// kernel: model_forward.6
= control target key start
LH: loop header
LB: loop body
LE: loop exit
PB: predicated region body
PF: predicated region fallthrough
CT: control target
= control target key end

     0   :  { %s1088_s30 = smov 0   ;;  %s1221_s0 = inlined_call_operand.vmem [shape: f32[128,7], index: 0, kind: input, shape index: {}]   ;;  %s1222_s1 = inlined_call_operand.vmem [shape: bf16[7,32], index: 1, kind: input, shape index: {}]   ;;  %s1223_s2 = inlined_call_operand.vmem [shape: f32[1,32], index: 2, kind: input, shape index: {}]   ;;  %s1224_s3 = inlined_call_operand.vmem [shape: bf16[32,32], index: 3, kind: input, shape index: {}]   ;;  %s1225_s4 = inlined_call_operand.vmem [shape: f32[1,32], index: 4, kind: input, shape index: {}]   ;;  %s1226_s5 = inlined_call_operand.vmem [shape: bf16[32,32], index: 5, kind: input, shape index: {}]   ;;  %s1227_s6 = inlined_call_operand.vmem [shape: f32[1,32], index: 6, kind: input, shape index: {}]   ;;  %s1228_s7 = inlined_call_operand.vmem [shape: f32[1,32], index: 7, kind: input, shape index: {}]   ;;  %s1229_s8 = inlined_call_operand.vmem [shape: f32[1,32], index: 8, kind: input, shape index: {}]   ;;  %s1230_s9 = inlined_call_operand.vmem [shape: bf16[128,32], index: 9, kind: output, shape index: {}]  }
   0x1 LB: > { %s899_s10 = sadd.s32 4294967295, %s1035_s30   ;;  %p903_p0 = scmp.ge.s32.totalorder %s1035_s30, 1  ;;  %s1035_s30 = sphi %s1088_s30, %s19_s30  }
   0x2   : > { %p288_p1 = scmp.lt.s32.totalorder %s1035_s30, 3 }
   0x4   : > { %p289_p2 = pnand %p903_p0, %p288_p1 }
   0x5   : > { %v337_v0 = vld [vmem:[%s1222_s1] sm:$0xf] (!%p289_p2)  ;;  %vm382_vm0 = vcmask (!%p289_p2), 1042432   ;;  %vm383_vm1 = vcmask (!%p289_p2), 1043456   ;;  %s904_s13 = sshll.u32 (!%p289_p2), %s899_s10, 3  ;;  %v1037_v1 = vmov (!%p289_p2), 65535  }
   0x6   : > { %292 = sbr.rel (%p289_p2) target bundleno = 1010 (0x3f2), region = 56  ;;  %v384_v2 = vsel (!%p289_p2), %vm382_vm0, 4294967295, %v1037_v1  ;;  %p325_p3 = scmp.lt.s32.totalorder (!%p289_p2), %s904_s13, 15  ;;  %vm369_vm2 = vcmask (!%p289_p2), 56320   ;;  %v1009_v17 = vld [vmem:[%s1224_s3] sm:$0xff] (!%p289_p2)   ;;  %v1010_v18 = vld [vmem:[%s1224_s3 + $0x8] sm:$0xff] (!%p289_p2)  }
   0x7   : > { %v385_v3 = vsel (!%p289_p2), %vm383_vm1, %v384_v2, 0  ;;  %v908_v19 = vld [vmem:[%s1223_s2] ss:$0 sm:$0xff] (!%p289_p2)  ;;  %vm484_vm3 = vcmask (!%p289_p2), 261120   ;;  %v1012_v49 = vld [vmem:[%s1226_s5 + $0x8] sm:$0xff] (!%p289_p2)   ;;  %vm834_vm4 = vcmask (!%p289_p2), 257024  }
   0x8   : > { %v387_v4 = vand.u32 (!%p289_p2), %v385_v3, %v337_v0  ;;  %v1011_v48 = vld [vmem:[%s1226_s5] sm:$0xff] (!%p289_p2)  }
   0x9   : > { %v913_v50 = vld [vmem:[%s1225_s4] ss:$0 sm:$0xff] (!%p289_p2) }
   0xa   : > { %964 = vmatprep.subr.bf16.mxu0 (!%p289_p2), %v387_v4  ;;  %998 = vmatprep.subr.bf16.mxu1 (!%p289_p2), %v387_v4 }
   0xb   : > { %965 = vmatpush3.bf16.msra.mxu0 (!%p289_p2), %v387_v4  ;;  %999 = vmatpush3.bf16.msra.mxu1 (!%p289_p2), %v387_v4 }
   0xc   : > { %974 = vmatprep.subr.bf16.mxu1 (!%p289_p2), %v1009_v17  ;;  %986 = vmatprep.subr.bf16.mxu0 (!%p289_p2), %v1011_v48 }
   0xd   : > { %s1232_s13 = smov (!%p325_p3, %s904_s13), 15 }
   0xe   : > { %s905_s14 = sshll.u32 %s1232_s13, 3 }
   0xf   : > { %s328_s17 = scalar_lea.vmem %s1221_s0, %s905_s14 }
  0x10   : > { %v351_v5 = vld [vmem:[%s328_s17] sm:$0xff]  ;;  %v352_v6 = vld [vmem:[%s328_s17 + $0x8] sm:$0xff]  ;;  %v353_v7 = vld [vmem:[%s328_s17 + $0x10] sm:$0xff] }
  0x11   : > { %v359_v8 = vpack.c.bf16 %v352_v6, %v351_v5  ;;  %v354_v9 = vld [vmem:[%s328_s17 + $0x18] sm:$0xff]  ;;  %v355_v10 = vld [vmem:[%s328_s17 + $0x20] sm:$0xff]  ;;  %v356_v11 = vld [vmem:[%s328_s17 + $0x28] sm:$0xff] }
  0x12   : > { %v360_v12 = vpack.c.bf16 %v354_v9, %v353_v7  ;;  %v361_v13 = vpack.c.bf16 %v356_v11, %v355_v10  ;;  %v357_v14 = vld [vmem:[%s328_s17 + $0x30] sm:$0xff]  ;;  %v358_v15 = vld [vmem:[%s328_s17 + $0x38] sm:$0xff]  ;;  %s907_s17 = sshll.u32 %s1232_s13, 2 }
  0x13   : > { %966 = vmatprep.mubr.msk.bf16.mxu0 %vm369_vm2, %v359_v8  ;;  %v362_v16 = vpack.c.bf16 %v358_v15, %v357_v14  ;;  %v920_v15 = vld [vmem:[%s1227_s6] ss:$0 sm:$0xff]  ;;  %s1194_s20 = scalar_lea.vmem %s1230_s9, %s907_s17 }
  0x14   : > { %967 = vmatmul.mubr.msk.bf16.vlgmr.msra.gmra.mrb[0].mxu0 %vm369_vm2, %v360_v12  ;;  %970 = vmatprep.mubr.msk.bf16.mxu1 %vm369_vm2, %v361_v13 }
  0x15   : > { %971 = vmatmul.mubr.msk.bf16.vlgmr.msra.gmra.mrb[0].mxu1 %vm369_vm2, %v362_v16  ;;  %987 = vmatpush3.bf16.msra.mxu0 %v1011_v48 }
  0x16   : > { %975 = vmatpush3.bf16.msra.mxu1 %v1009_v17  ;;  %988 = vmatprep.subr.bf16.mxu0 %v1012_v49 }
  0x17   : > { %976 = vmatprep.subr.bf16.mxu1 %v1010_v18 }
  0x19   : > { %989 = vmatpush3.bf16.msra.mxu0 %v1012_v49 }
  0x1a   : > { %977 = vmatpush3.bf16.msra.mxu1 %v1010_v18 }
  0xe7   : > { %v968_v20 = vpop.f32.mrb[0].mxu0 }
  0xe8   : > { %v432_v21 = vadd.f32 %v968_v20, %v908_v19  ;;  %v423_v22 = vpop.f32.mrb[1].mxu0  ;;  %v972_v23 = vpop.f32.mrb[0].mxu1 }
  0xe9   : > { %v424_v24 = vadd.f32 %v908_v19, %v423_v22  ;;  %v969_v25 = vpop.f32.mrb[2].mxu0  ;;  %v448_v26 = vadd.f32 %v972_v23, %v908_v19  ;;  %v439_v27 = vpop.f32.mrb[1].mxu1 }
  0xea   : > { %v435_v28 = vadd.f32 %v969_v25, %v908_v19  ;;  %v426_v29 = vpop.f32.mrb[3].mxu0  ;;  %v440_v30 = vadd.f32 %v908_v19, %v439_v27  ;;  %v973_v31 = vpop.f32.mrb[2].mxu1  ;;  %v456_v36 = vmax.f32 %v432_v21, 0.0 }
  0xeb   : > { %v427_v32 = vadd.f32 %v908_v19, %v426_v29  ;;  %v460_v33 = vmax.f32 %v448_v26, 0.0  ;;  %v451_v34 = vadd.f32 %v973_v31, %v908_v19  ;;  %v442_v35 = vpop.f32.mrb[3].mxu1  ;;  %v454_v40 = vmax.f32 %v424_v24, 0.0 }
  0xec   : > { %v457_v37 = vmax.f32 %v435_v28, 0.0  ;;  %v458_v38 = vmax.f32 %v440_v30, 0.0  ;;  %v443_v39 = vadd.f32 %v908_v19, %v442_v35 }
  0xed   : > { %v455_v41 = vmax.f32 %v427_v32, 0.0  ;;  %v461_v42 = vmax.f32 %v451_v34, 0.0 }
  0xee   : > { %v463_v43 = vpack.c.bf16 %v457_v37, %v456_v36  ;;  %v459_v44 = vmax.f32 %v443_v39, 0.0 }
  0xef   : > { %v462_v45 = vpack.c.bf16 %v455_v41, %v454_v40  ;;  %v465_v46 = vpack.c.bf16 %v461_v42, %v460_v33 }
  0xf0   : > { %v464_v47 = vpack.c.bf16 %v459_v44, %v458_v38 }
  0xf1   : > { %978 = vmatprep.mubr.msk.bf16.mxu1 %vm484_vm3, %v462_v45 }
  0xf2   : > { %979 = vmatmul.mubr.msk.bf16.vlgmr.msra.gmra.mrb[4].mxu1 %vm484_vm3, %v463_v43 }
  0xf3   : > { %982 = vmatprep.mubr.msk.bf16.mxu1 %vm484_vm3, %v464_v47 }
  0xfa   : > { %983 = vmatmul.mubr.msk.bf16.gmra.mrb[8].mxu1 %vm484_vm3, %v465_v46 }
 0x1c5   : > { %v980_v51 = vpop.f32.mrb[4].mxu1 }
 0x1c6   : > { %v540_v52 = vadd.f32 %v980_v51, %v913_v50  ;;  %v531_v53 = vpop.f32.mrb[5].mxu1 }
 0x1c7   : > { %v532_v54 = vadd.f32 %v913_v50, %v531_v53  ;;  %v981_v55 = vpop.f32.mrb[6].mxu1 }
 0x1c8   : > { %v543_v56 = vadd.f32 %v981_v55, %v913_v50  ;;  %v534_v57 = vpop.f32.mrb[7].mxu1  ;;  %v564_v59 = vmax.f32 %v540_v52, 0.0 }
 0x1c9   : > { %v535_v58 = vadd.f32 %v913_v50, %v534_v57  ;;  %v562_v61 = vmax.f32 %v532_v54, 0.0 }
 0x1ca   : > { %v565_v60 = vmax.f32 %v543_v56, 0.0 }
 0x1cb   : > { %v563_v62 = vmax.f32 %v535_v58, 0.0 }
 0x1cc   : > { %v571_v63 = vpack.c.bf16 %v565_v60, %v564_v59 }
 0x1cd   : > { %v570_v0 = vpack.c.bf16 %v563_v62, %v562_v61  ;;  %v984_v1 = vpop.f32.mrb[8].mxu1 }
 0x1ce   : > { %v556_v2 = vadd.f32 %v984_v1, %v913_v50  ;;  %v547_v3 = vpop.f32.mrb[9].mxu1 }
 0x1cf   : > { %v548_v4 = vadd.f32 %v913_v50, %v547_v3  ;;  %v985_v5 = vpop.f32.mrb[10].mxu1  ;;  %990 = vmatprep.mubr.msk.bf16.mxu0 %vm484_vm3, %v570_v0 }
 0x1d0   : > { %v559_v6 = vadd.f32 %v985_v5, %v913_v50  ;;  %v550_v7 = vpop.f32.mrb[11].mxu1  ;;  %991 = vmatmul.mubr.msk.bf16.vlgmr.msra.gmra.mrb[4].mxu0 %vm484_vm3, %v571_v63  ;;  %v568_v9 = vmax.f32 %v556_v2, 0.0 }
 0x1d1   : > { %v551_v8 = vadd.f32 %v913_v50, %v550_v7  ;;  %v566_v11 = vmax.f32 %v548_v4, 0.0 }
 0x1d2   : > { %v569_v10 = vmax.f32 %v559_v6, 0.0 }
 0x1d3   : > { %v567_v12 = vmax.f32 %v551_v8, 0.0 }
 0x1d4   : > { %v573_v13 = vpack.c.bf16 %v569_v10, %v568_v9 }
 0x1d5   : > { %v572_v14 = vpack.c.bf16 %v567_v12, %v566_v11 }
 0x1d7   : > { %994 = vmatprep.mubr.msk.bf16.mxu0 %vm484_vm3, %v572_v14 }
 0x1d8   : > { %995 = vmatmul.mubr.msk.bf16.gmra.mrb[8].mxu0 %vm484_vm3, %v573_v13 }
 0x2a3   : > { %v992_v16 = vpop.f32.mrb[4].mxu0 }
 0x2a4   : > { %v647_v17 = vadd.f32 %v992_v16, %v920_v15  ;;  %v638_v18 = vpop.f32.mrb[5].mxu0 }
 0x2a5   : > { %v639_v19 = vadd.f32 %v920_v15, %v638_v18  ;;  %v993_v20 = vpop.f32.mrb[6].mxu0 }
 0x2a6   : > { %v650_v21 = vadd.f32 %v993_v20, %v920_v15  ;;  %v641_v22 = vpop.f32.mrb[7].mxu0  ;;  %v675_v23 = vsel %vm484_vm3, %v647_v17, 0.0 }
 0x2a7   : > { %v642_v24 = vadd.f32 %v920_v15, %v641_v22  ;;  %676 = vadd.xlane.f32.xlu1 %v675_v23  ;;  %v669_v25 = vsel %vm484_vm3, %v639_v19, 0.0 }
 0x2a8   : > { %670 = vadd.xlane.f32.xlu0 %v669_v25  ;;  %v678_v26 = vsel %vm484_vm3, %v650_v21, 0.0 }
 0x2a9   : > { %v672_v28 = vsel %vm484_vm3, %v642_v24, 0.0 }
 0x2ab   : > { %679 = vadd.xlane.f32.xlu1 %v678_v26  ;;  %v996_v27 = vpop.f32.mrb[8].mxu0 }
 0x2ac   : > { %v654_v29 = vpop.f32.mrb[9].mxu0  ;;  %673 = vadd.xlane.f32.xlu0 %v672_v28  ;;  %v663_v33 = vadd.f32 %v996_v27, %v920_v15 }
 0x2ad   : > { %v655_v30 = vadd.f32 %v920_v15, %v654_v29  ;;  %v997_v31 = vpop.f32.mrb[10].mxu0 }
 0x2ae   : > { %v657_v32 = vpop.f32.mrb[11].mxu0  ;;  %v666_v36 = vadd.f32 %v997_v31, %v920_v15  ;;  %v687_v38 = vsel %vm484_vm3, %v663_v33, 0.0 }
 0x2af   : > { %v658_v34 = vadd.f32 %v920_v15, %v657_v32  ;;  %v681_v35 = vsel %vm484_vm3, %v655_v30, 0.0 }
 0x2b0   : > { %682 = vadd.xlane.f32.xlu0 %v681_v35  ;;  %v690_v39 = vsel %vm484_vm3, %v666_v36, 0.0 }
 0x2b1   : > { %v684_v37 = vsel %vm484_vm3, %v658_v34, 0.0 }
 0x2b2   : > { %685 = vadd.xlane.f32.xlu1 %v684_v37 }
 0x2b4   : > { %688 = vadd.xlane.f32.xlu0 %v687_v38 }
 0x2b6   : > { %691 = vadd.xlane.f32.xlu1 %v690_v39 }
 0x334   : > { %v677_v40 = vpop.xlane.xlu1 %676 }
 0x335   : > { %v696_v41 = vmul.f32 0.03125, %v677_v40  ;;  %v671_v42 = vpop.xlane.xlu0 %670 }
 0x336   : > { %v694_v43 = vmul.f32 0.03125, %v671_v42 }
 0x337   : > { %v1142_v44 = vsub.f32 %v647_v17, %v696_v41  ;;  %v928_v41 = vld [vmem:[%s1229_s8] ss:$0 sm:$0xff] }
 0x338   : > { %v1144_v45 = vsub.f32 %v639_v19, %v694_v43  ;;  %v680_v46 = vpop.xlane.xlu1 %679 }
 0x339   : > { %v697_v47 = vmul.f32 0.03125, %v680_v46  ;;  %v674_v48 = vpop.xlane.xlu0 %673  ;;  %v712_v49 = vmul.f32 %v1142_v44, %v1142_v44 }
 0x33a   : > { %v695_v50 = vmul.f32 0.03125, %v674_v48  ;;  %v710_v53 = vmul.f32 %v1144_v45, %v1144_v45 }
 0x33b   : > { %v1148_v51 = vsub.f32 %v650_v21, %v697_v47  ;;  %v724_v52 = vsel %vm484_vm3, %v712_v49, 0.0 }
 0x33c   : > { %v1153_v54 = vsub.f32 %v642_v24, %v695_v50  ;;  %725 = vadd.xlane.f32.xlu0 %v724_v52  ;;  %v718_v60 = vsel %vm484_vm3, %v710_v53, 0.0 }
 0x33d   : > { %v683_v55 = vpop.xlane.xlu0 %682  ;;  %v713_v56 = vmul.f32 %v1148_v51, %v1148_v51 }
 0x33e   : > { %v698_v57 = vmul.f32 0.03125, %v683_v55  ;;  %v711_v61 = vmul.f32 %v1153_v54, %v1153_v54 }
 0x33f   : > { %v686_v58 = vpop.xlane.xlu1 %685  ;;  %v727_v59 = vsel %vm484_vm3, %v713_v56, 0.0 }
 0x340   : > { %v1161_v62 = vsub.f32 %v655_v30, %v698_v57  ;;  %v699_v63 = vmul.f32 0.03125, %v686_v58  ;;  %728 = vadd.xlane.f32.xlu1 %v727_v59  ;;  %719 = vadd.xlane.f32.xlu0 %v718_v60  ;;  %v721_v5 = vsel %vm484_vm3, %v711_v61, 0.0 }
 0x341   : > { %v689_v0 = vpop.xlane.xlu0 %688 }
 0x342   : > { %v1163_v1 = vsub.f32 %v658_v34, %v699_v63  ;;  %v700_v2 = vmul.f32 0.03125, %v689_v0  ;;  %v714_v3 = vmul.f32 %v1161_v62, %v1161_v62 }
 0x343   : > { %v692_v4 = vpop.xlane.xlu1 %691 }
 0x344   : > { %v1168_v6 = vsub.f32 %v663_v33, %v700_v2  ;;  %v701_v7 = vmul.f32 0.03125, %v692_v4  ;;  %722 = vadd.xlane.f32.xlu1 %v721_v5  ;;  %v730_v8 = vsel %vm484_vm3, %v714_v3, 0.0  ;;  %v715_v9 = vmul.f32 %v1163_v1, %v1163_v1 }
 0x345   : > { %731 = vadd.xlane.f32.xlu0 %v730_v8 }
 0x346   : > { %v1173_v10 = vsub.f32 %v666_v36, %v701_v7  ;;  %v733_v11 = vsel %vm484_vm3, %v715_v9, 0.0  ;;  %v716_v12 = vmul.f32 %v1168_v6, %v1168_v6  ;;  %v927_v36 = vld [vmem:[%s1228_s7] ss:$0 sm:$0xff] }
 0x348   : > { %734 = vadd.xlane.f32.xlu1 %v733_v11  ;;  %v736_v13 = vsel %vm484_vm3, %v716_v12, 0.0  ;;  %v717_v14 = vmul.f32 %v1173_v10, %v1173_v10 }
 0x349   : > { %737 = vadd.xlane.f32.xlu0 %v736_v13 }
 0x34a   : > { %v739_v15 = vsel %vm484_vm3, %v717_v14, 0.0 }
 0x34c   : > { %740 = vadd.xlane.f32.xlu1 %v739_v15 }
 0x3c9   : > { %v726_v16 = vpop.xlane.xlu0 %725 }
 0x3ca   : > { %v744_v17 = vmul.f32 0.03125, %v726_v16 }
 0x3cc   : > { %v752_v18 = vadd.f32 1e-05, %v744_v17 }
 0x3cd   : > { %v729_v19 = vpop.xlane.xlu1 %728  ;;  %v720_v20 = vpop.xlane.xlu0 %719 }
 0x3ce   : > { %1013 = vrsqrt.f32 %v752_v18  ;;  %v745_v21 = vmul.f32 0.03125, %v729_v19  ;;  %v742_v22 = vmul.f32 0.03125, %v720_v20 }
 0x3d0   : > { %v753_v23 = vadd.f32 1e-05, %v745_v21  ;;  %v750_v24 = vadd.f32 1e-05, %v742_v22 }
 0x3d1   : > { %v723_v25 = vpop.xlane.xlu1 %722 }
 0x3d2   : > { %1015 = vrsqrt.f32 %v753_v23  ;;  %v743_v26 = vmul.f32 0.03125, %v723_v25  ;;  %v732_v27 = vpop.xlane.xlu0 %731 }
 0x3d3   : > { %1017 = vrsqrt.f32 %v750_v24  ;;  %v746_v28 = vmul.f32 0.03125, %v732_v27 }
 0x3d4   : > { %v751_v29 = vadd.f32 1e-05, %v743_v26 }
 0x3d5   : > { %v754_v30 = vadd.f32 1e-05, %v746_v28  ;;  %v735_v31 = vpop.xlane.xlu1 %734 }
 0x3d6   : > { %1019 = vrsqrt.f32 %v751_v29  ;;  %v747_v32 = vmul.f32 0.03125, %v735_v31  ;;  %v738_v33 = vpop.xlane.xlu0 %737 }
 0x3d7   : > { %1021 = vrsqrt.f32 %v754_v30  ;;  %v748_v34 = vmul.f32 0.03125, %v738_v33 }
 0x3d8   : > { %v1014_v35 = vpop.eup %1013  ;;  %v755_v37 = vadd.f32 1e-05, %v747_v32 }
 0x3d9   : > { %v768_v38 = vmul.f32 %v1014_v35, %v1142_v44  ;;  %v756_v39 = vadd.f32 1e-05, %v748_v34  ;;  %v741_v40 = vpop.xlane.xlu1 %740 }
 0x3da   : > { %1023 = vrsqrt.f32 %v755_v37  ;;  %v749_v42 = vmul.f32 0.03125, %v741_v40 }
 0x3db   : > { %v782_v43 = vmul.f32 %v927_v36, %v768_v38  ;;  %1025 = vrsqrt.f32 %v756_v39 }
 0x3dc   : > { %v1016_v46 = vpop.eup %1015  ;;  %v757_v47 = vadd.f32 1e-05, %v749_v42 }
 0x3dd   : > { %v1018_v48 = vpop.eup %1017  ;;  %v796_v49 = vadd.f32 %v928_v41, %v782_v43  ;;  %v769_v50 = vmul.f32 %v1016_v46, %v1148_v51 }
 0x3de   : > { %v766_v44 = vmul.f32 %v1018_v48, %v1144_v45  ;;  %1027 = vrsqrt.f32 %v757_v47 }
 0x3df   : > { %v941_v52 = vpack.c.bf16 %v796_v49, %v796_v49  ;;  %v783_v53 = vmul.f32 %v927_v36, %v769_v50 }
 0x3e0   : > { %v1020_v55 = vpop.eup %1019  ;;  %v780_v56 = vmul.f32 %v927_v36, %v766_v44 }
 0x3e1   : > { %v1022_v57 = vpop.eup %1021  ;;  %837 = vst.msk [vmem:[%s1194_s20 + $0x8] sm:$0xf] %vm834_vm4, %v941_v52  ;;  %v797_v51 = vadd.f32 %v928_v41, %v783_v53  ;;  %v767_v58 = vmul.f32 %v1020_v55, %v1153_v54 }
 0x3e2   : > { %v794_v59 = vadd.f32 %v928_v41, %v780_v56  ;;  %v770_v60 = vmul.f32 %v1022_v57, %v1161_v62 }
 0x3e3   : > { %v942_v61 = vpack.c.bf16 %v797_v51, %v797_v51  ;;  %v781_v63 = vmul.f32 %v927_v36, %v767_v58 }
 0x3e4   : > { %v1024_v45 = vpop.eup %1023  ;;  %v939_v0 = vpack.c.bf16 %v794_v59, %v794_v59  ;;  %v784_v2 = vmul.f32 %v927_v36, %v770_v60 }
 0x3e5   : > { %v1026_v3 = vpop.eup %1025  ;;  %838 = vst.msk [vmem:[%s1194_s20 + $0xc] sm:$0xf] %vm834_vm4, %v942_v61  ;;  %v795_v4 = vadd.f32 %v928_v41, %v781_v63  ;;  %v771_v5 = vmul.f32 %v1024_v45, %v1163_v1 }
 0x3e6   : > { %835 = vst.msk [vmem:[%s1194_s20] sm:$0xf] %vm834_vm4, %v939_v0  ;;  %v798_v54 = vadd.f32 %v928_v41, %v784_v2  ;;  %v772_v7 = vmul.f32 %v1026_v3, %v1168_v6 }
 0x3e7   : > { %v940_v62 = vpack.c.bf16 %v795_v4, %v795_v4  ;;  %v785_v8 = vmul.f32 %v927_v36, %v771_v5 }
 0x3e8   : > { %v1028_v9 = vpop.eup %1027  ;;  %v943_v11 = vpack.c.bf16 %v798_v54, %v798_v54  ;;  %v786_v12 = vmul.f32 %v927_v36, %v772_v7 }
 0x3e9   : > { %836 = vst.msk [vmem:[%s1194_s20 + $0x4] sm:$0xf] %vm834_vm4, %v940_v62  ;;  %v799_v13 = vadd.f32 %v928_v41, %v785_v8  ;;  %v773_v14 = vmul.f32 %v1028_v9, %v1173_v10 }
 0x3ea   : > { %839 = vst.msk [vmem:[%s1194_s20 + $0x10] sm:$0xf] %vm834_vm4, %v943_v11  ;;  %v800_v1 = vadd.f32 %v928_v41, %v786_v12 }
 0x3eb   : > { %v944_v15 = vpack.c.bf16 %v799_v13, %v799_v13  ;;  %v787_v16 = vmul.f32 %v927_v36, %v773_v14 }
 0x3ec   : > { %v945_v17 = vpack.c.bf16 %v800_v1, %v800_v1 }
 0x3ed   : > { %840 = vst.msk [vmem:[%s1194_s20 + $0x14] sm:$0xf] %vm834_vm4, %v944_v15  ;;  %v801_v6 = vadd.f32 %v928_v41, %v787_v16 }
 0x3ee   : > { %841 = vst.msk [vmem:[%s1194_s20 + $0x18] sm:$0xf] %vm834_vm4, %v945_v17 }
 0x3ef   : > { %v946_v18 = vpack.c.bf16 %v801_v6, %v801_v6 }
 0x3f1   : > { %842 = vst.msk [vmem:[%s1194_s20 + $0x1c] sm:$0xf] %vm834_vm4, %v946_v18 }
 0x3f2 PF: > { %s19_s30 = sadd.s32 1, %s1035_s30  }
 0x3f3   : > { %p16_p4 = scmp.ge.s32.totalorder %s19_s30, 4  }
 0x3f5   :  { %18 = sbr.rel (!%p16_p4) target bundleno = 1 (0x1), region = 86 }

// kernel: model_forward.8
= control target key start
LH: loop header
LB: loop body
LE: loop exit
PB: predicated region body
PF: predicated region fallthrough
CT: control target
= control target key end

     0   :  { %s1618_s17 = smov 0   ;;  %s1620_s18 = smov 0   ;;  %s1866_s0 = inlined_call_operand.vmem [shape: bf16[128,32], index: 0, kind: input, shape index: {}]   ;;  %s1867_s1 = inlined_call_operand.vmem [shape: bf16[2,128,32], index: 1, kind: input, shape index: {}]   ;;  %s1868_s2 = inlined_call_operand.vmem [shape: bf16[32,32], index: 2, kind: input, shape index: {}]   ;;  %s1869_s3 = inlined_call_operand.vmem [shape: bf16[32,32], index: 3, kind: input, shape index: {}]   ;;  %s1870_s4 = inlined_call_operand.vmem [shape: f32[1,32], index: 4, kind: input, shape index: {}]   ;;  %s1871_s5 = inlined_call_operand.vmem [shape: bf16[32,32], index: 5, kind: input, shape index: {}]   ;;  %s1872_s6 = inlined_call_operand.vmem [shape: f32[1,32], index: 6, kind: input, shape index: {}]   ;;  %s1873_s7 = inlined_call_operand.vmem [shape: bf16[32,32], index: 7, kind: input, shape index: {}]   ;;  %s1874_s8 = inlined_call_operand.vmem [shape: f32[1,32], index: 8, kind: input, shape index: {}]   ;;  %s1875_s9 = inlined_call_operand.vmem [shape: f32[1,32], index: 9, kind: input, shape index: {}]   ;;  %s1876_s10 = inlined_call_operand.vmem [shape: f32[1,32], index: 10, kind: input, shape index: {}]   ;;  %s1877_s11 = inlined_call_operand.vmem [shape: bf16[128,32], index: 11, kind: output, shape index: {}]  }
   0x1   :  { %s1622_s19 = smov 0  }
   0x2 LB: > { %s1294_s20 = sadd.s32 4294967295, %s1556_s19   ;;  %s1635_s21 = sadd.s32 1, %s1556_s19   ;;  %s1556_s19 = sphi %s1622_s19, %s1880_s19   ;;  %s1552_s18 = sphi %s1620_s18, %s1879_s18   ;;  %s1548_s17 = sphi %s1618_s17, %s1878_s17  }
   0x3   : > { %s51_s22 = ssub.s32 %s1556_s19, %s1635_s21  ;;  %s54_s23 = sadd.s32 1, %s1552_s18 }
   0x4   : > { %p52_p0 = scmp.eq.s32.totalorder %s51_s22, 0  ;;  %p61_p1 = scmp.ne.s32.totalorder %s1552_s18, %s1548_s17 }
   0x5   : > { %p62_p2 = scmp.eq.s32.totalorder %s1556_s19, 0  ;;  %p1297_p4 = scmp.ge.s32.totalorder %s1556_s19, 2 }
   0x6   : > { %s1644_s24 = scalar_select %p52_p0, %s1552_s18, %s54_s23  }
   0x7   : > { %p63_p3 = por %p62_p2, %p61_p1  ;;  %329 = sbr.rel (%p1297_p4) target bundleno = 22 (0x16), region = 52 }
   0xe   : > { %341 = sbr.rel (!%p63_p3) target bundleno = 22 (0x16), region = 60  ;;  %s343_s25 = sand.u32 (%p63_p3), 1, %s1552_s18  }
   0xf   : > { %s1350_s26 = sshll.u32 (%p63_p3), %s1556_s19, 5  ;;  %s1298_s27 = sshll.u32 (%p63_p3), %s343_s25, 6 }
  0x10   : > { %s348_s30 = scalar_lea.vmem (%p63_p3), %s1867_s1, %s1350_s26  ;;  %s345_s12 = scalar_lea.vmem (%p63_p3), [#allocation2], %s1298_s27 }
  0x11   : > { %v364_v0 = vld [vmem:[%s348_s30] sm:$0xff] (%p63_p3)   ;;  %v368_v1 = vld [vmem:[%s348_s30 + $0x8] sm:$0xff] (%p63_p3)   ;;  %v372_v2 = vld [vmem:[%s348_s30 + $0x10] sm:$0xff] (%p63_p3)  }
  0x12   : > { %365 = vst [vmem:[%s345_s12] sm:$0xff] (%p63_p3), %v364_v0   ;;  %369 = vst [vmem:[%s345_s12 + $0x8] sm:$0xff] (%p63_p3), %v368_v1   ;;  %v376_v3 = vld [vmem:[%s348_s30 + $0x18] sm:$0xff] (%p63_p3)   ;;  %v380_v4 = vld [vmem:[%s348_s30 + $0x40] sm:$0xff] (%p63_p3)  }
  0x13   : > { %373 = vst [vmem:[%s345_s12 + $0x10] sm:$0xff] (%p63_p3), %v372_v2   ;;  %v384_v5 = vld [vmem:[%s348_s30 + $0x48] sm:$0xff] (%p63_p3)   ;;  %377 = vst [vmem:[%s345_s12 + $0x18] sm:$0xff] (%p63_p3), %v376_v3   ;;  %v388_v6 = vld [vmem:[%s348_s30 + $0x50] sm:$0xff] (%p63_p3)  }
  0x14   : > { %381 = vst [vmem:[%s345_s12 + $0x20] sm:$0xff] (%p63_p3), %v380_v4   ;;  %385 = vst [vmem:[%s345_s12 + $0x28] sm:$0xff] (%p63_p3), %v384_v5   ;;  %v392_v7 = vld [vmem:[%s348_s30 + $0x58] sm:$0xff] (%p63_p3)  }
  0x15   : > { %389 = vst [vmem:[%s345_s12 + $0x30] sm:$0xff] %v388_v6   ;;  %393 = vst [vmem:[%s345_s12 + $0x38] sm:$0xff] %v392_v7  }
  0x16 PF: > { %p1301_p5 = scmp.ge.s32.totalorder %s1556_s19, 1  ;;  %p449_p6 = scmp.lt.s32.totalorder %s1556_s19, 3 }
  0x18   : > { %p450_p7 = pnand %p1301_p5, %p449_p6 }
  0x19   : > { %v1502_v8 = vld [vmem:[%s1869_s3] sm:$0xff] (!%p450_p7)   ;;  %s456_s15 = sand.u32 (!%p450_p7), 1, %s1548_s17   ;;  %v1503_v9 = vld [vmem:[%s1869_s3 + $0x8] sm:$0xff] (!%p450_p7)   ;;  %vm575_vm0 = vcmask (!%p450_p7), 261120   ;;  %s1303_s26 = sshll.u32 (!%p450_p7), %s1294_s20, 3  ;;  %vm1211_vm1 = vcmask (!%p450_p7), 257024  }
  0x1a   : > { %453 = sbr.rel (%p450_p7) target bundleno = 1046 (0x416), region = 101  ;;  %s1302_s23 = sshll.u32 (!%p450_p7), %s456_s15, 6  ;;  %1422 = vmatprep.subr.bf16.mxu0 (!%p450_p7), %v1502_v8  ;;  %v1504_v16 = vld [vmem:[%s1868_s2] sm:$0xff] (!%p450_p7)   ;;  %v1505_v50 = vld [vmem:[%s1868_s2 + $0x8] sm:$0xff] (!%p450_p7)  }
  0x1b   : > { %1423 = vmatpush3.bf16.msra.mxu0 (!%p450_p7), %v1502_v8  ;;  %s458_s25 = scalar_lea.vmem (!%p450_p7), [#allocation2], %s1302_s23  ;;  %p501_p8 = scmp.lt.s32.totalorder (!%p450_p7), %s1303_s26, 15  ;;  %v1510_v4 = vld [vmem:[%s1871_s5] sm:$0xff] (!%p450_p7)   ;;  %v1511_v5 = vld [vmem:[%s1871_s5 + $0x8] sm:$0xff] (!%p450_p7)  }
  0x1c   : > { %v1360_v10 = vld [vmem:[%s458_s25] sm:$0xff] (!%p450_p7)   ;;  %1424 = vmatprep.subr.bf16.mxu0 (!%p450_p7), %v1503_v9  ;;  %v1391_v17 = vld [vmem:[%s458_s25 + $0x8] sm:$0xff] (!%p450_p7)   ;;  %v1392_v23 = vld [vmem:[%s458_s25 + $0x10] sm:$0xff] (!%p450_p7)   ;;  %1446 = vmatprep.subr.bf16.mxu1 (!%p450_p7), %v1510_v4 }
  0x1d   : > { %v1394_v11 = vld [vmem:[%s458_s25 + $0x20] sm:$0xff] (!%p450_p7)   ;;  %v1361_v12 = vunpack.c.l.bf16 (!%p450_p7), %v1360_v10  ;;  %v1362_v13 = vunpack.c.h.bf16 (!%p450_p7), %v1360_v10  ;;  %v1395_v18 = vld [vmem:[%s458_s25 + $0x28] sm:$0xff] (!%p450_p7)   ;;  %v1365_v19 = vunpack.c.l.bf16 (!%p450_p7), %v1391_v17  ;;  %v1366_v20 = vunpack.c.h.bf16 (!%p450_p7), %v1391_v17  ;;  %v1396_v28 = vld [vmem:[%s458_s25 + $0x30] sm:$0xff] (!%p450_p7)   ;;  %1447 = vmatpush3.bf16.msra.mxu1 (!%p450_p7), %v1510_v4 }
  0x1e   : > { %v1377_v14 = vunpack.c.l.bf16 (!%p450_p7), %v1394_v11  ;;  %v1378_v15 = vunpack.c.h.bf16 (!%p450_p7), %v1394_v11  ;;  %v1381_v21 = vunpack.c.l.bf16 (!%p450_p7), %v1395_v18  ;;  %v1382_v22 = vunpack.c.h.bf16 (!%p450_p7), %v1395_v18  ;;  %v1393_v33 = vld [vmem:[%s458_s25 + $0x18] sm:$0xff] (!%p450_p7)   ;;  %1448 = vmatprep.subr.bf16.mxu1 (!%p450_p7), %v1511_v5  ;;  %v1512_v6 = vld [vmem:[%s1873_s7] sm:$0xff] (!%p450_p7)  }
  0x1f   : > { %v576_v24 = vsel (!%p450_p7), %vm575_vm0, %v1361_v12, 0.0  ;;  %v579_v26 = vsel (!%p450_p7), %vm575_vm0, %v1362_v13, 0.0  ;;  %1425 = vmatpush3.bf16.msra.mxu0 (!%p450_p7), %v1503_v9  ;;  %v582_v31 = vsel (!%p450_p7), %vm575_vm0, %v1365_v19, 0.0  ;;  %v1397_v34 = vld [vmem:[%s458_s25 + $0x38] sm:$0xff] (!%p450_p7)   ;;  %v585_v36 = vsel (!%p450_p7), %vm575_vm0, %v1366_v20, 0.0 }
  0x20   : > { %v577_v25 = vsel (!%p450_p7), %vm575_vm0, %v1377_v14, 0.0  ;;  %v580_v27 = vsel (!%p450_p7), %vm575_vm0, %v1378_v15, 0.0  ;;  %v583_v32 = vsel (!%p450_p7), %vm575_vm0, %v1381_v21, 0.0  ;;  %1434 = vmatprep.subr.bf16.mxu0 (!%p450_p7), %v1504_v16  ;;  %v586_v37 = vsel (!%p450_p7), %vm575_vm0, %v1382_v22, 0.0  ;;  %v1323_v7 = vld [vmem:[%s1870_s4] ss:$0 sm:$0xff] (!%p450_p7) }
  0x21   : > { %v578_v29 = vadd.f32 %v577_v25, %v576_v24  ;;  %v581_v30 = vadd.f32 %v580_v27, %v579_v26  ;;  %s1882_s26 = smov (!%p501_p8, %s1303_s26), 15  ;;  %v584_v35 = vadd.f32 %v583_v32, %v582_v31  ;;  %v1369_v38 = vunpack.c.l.bf16 %v1392_v23  ;;  %1449 = vmatpush3.bf16.msra.mxu1 %v1511_v5 }
  0x22   : > { %v587_v40 = vadd.f32 %v586_v37, %v585_v36  ;;  %v1370_v41 = vunpack.c.h.bf16 %v1392_v23  ;;  %v1385_v42 = vunpack.c.l.bf16 %v1396_v28  ;;  %s1304_s19 = sshll.u32 %s1882_s26, 2  ;;  %v1386_v43 = vunpack.c.h.bf16 %v1396_v28  ;;  %1458 = vmatprep.subr.bf16.mxu1 %v1512_v6  ;;  %v1513_v36 = vld [vmem:[%s1873_s7 + $0x8] sm:$0xff]   ;;  %v1324_v37 = vld [vmem:[%s1872_s6] ss:$0 sm:$0xff] }
  0x23   : > { %v600_v39 = vpack.c.bf16 %v581_v30, %v578_v29  ;;  %v588_v44 = vsel %vm575_vm0, %v1369_v38, 0.0  ;;  %v1373_v45 = vunpack.c.l.bf16 %v1393_v33  ;;  %v1374_v46 = vunpack.c.h.bf16 %v1393_v33  ;;  %s504_s12 = scalar_lea.vmem %s1866_s0, %s1304_s19  ;;  %s1814_s25 = scalar_lea.vmem %s1877_s11, %s1304_s19 }
  0x24   : > { %v601_v47 = vpack.c.bf16 %v587_v40, %v584_v35  ;;  %v589_v48 = vsel %vm575_vm0, %v1385_v42, 0.0  ;;  %v591_v49 = vsel %vm575_vm0, %v1370_v41, 0.0  ;;  %v1389_v51 = vunpack.c.l.bf16 %v1397_v34  ;;  %v1696_v63 = vld [vmem:[%s504_s12] sm:$0xff]   ;;  %v1702_v1 = vld [vmem:[%s504_s12 + $0x8] sm:$0xff]   ;;  %v1704_v2 = vld [vmem:[%s504_s12 + $0x10] sm:$0xff]  }
  0x25   : > { %1426 = vmatprep.mubr.msk.bf16.mxu0 %vm575_vm0, %v600_v39  ;;  %v590_v52 = vadd.f32 %v589_v48, %v588_v44  ;;  %v592_v53 = vsel %vm575_vm0, %v1386_v43, 0.0  ;;  %v1390_v54 = vunpack.c.h.bf16 %v1397_v34  ;;  %v594_v55 = vsel %vm575_vm0, %v1373_v45, 0.0  ;;  %v1710_v3 = vld [vmem:[%s504_s12 + $0x18] sm:$0xff]  }
  0x26   : > { %1427 = vmatmul.mubr.msk.bf16.vlgmr.msra.gmra.mrb[0].mxu0 %vm575_vm0, %v601_v47  ;;  %v593_v56 = vadd.f32 %v592_v53, %v591_v49  ;;  %v595_v57 = vsel %vm575_vm0, %v1389_v51, 0.0  ;;  %v597_v58 = vsel %vm575_vm0, %v1374_v46, 0.0 }
  0x27   : > { %1435 = vmatpush3.bf16.msra.mxu0 %v1504_v16  ;;  %v596_v59 = vadd.f32 %v595_v57, %v594_v55  ;;  %v598_v60 = vsel %vm575_vm0, %v1390_v54, 0.0 }
  0x28   : > { %v602_v61 = vpack.c.bf16 %v593_v56, %v590_v52  ;;  %1436 = vmatprep.subr.bf16.mxu0 %v1505_v50  ;;  %v599_v62 = vadd.f32 %v598_v60, %v597_v58 }
  0x2a   : > { %1430 = vmatprep.mubr.msk.bf16.mxu0 %vm575_vm0, %v602_v61  ;;  %v603_v0 = vpack.c.bf16 %v599_v62, %v596_v59 }
  0x2b   : > { %1437 = vmatpush3.bf16.msra.mxu0 %v1505_v50 }
  0x2e   : > { %1431 = vmatmul.mubr.msk.bf16.gmra.mrb[4].mxu0 %vm575_vm0, %v603_v0 }
  0x2f   : > { %1438 = vmatprep.mubr.msk.bf16.mxu0 %vm575_vm0, %v1696_v63 }
  0x36   : > { %1439 = vmatmul.mubr.msk.bf16.vlgmr.msra.gmra.mrb[0].mxu0 %vm575_vm0, %v1702_v1 }
  0x37   : > { %1442 = vmatprep.mubr.msk.bf16.mxu0 %vm575_vm0, %v1704_v2 }
  0x3e   : > { %1443 = vmatmul.mubr.msk.bf16.gmra.mrb[4].mxu0 %vm575_vm0, %v1710_v3 }
 0x109   : > { %v1440_v8 = vpop.f32.mrb[0].mxu0 }
 0x10a   : > { %v810_v9 = vadd.f32 %v1440_v8, %v1323_v7  ;;  %v771_v10 = vpop.f32.mrb[1].mxu0 }
 0x10b   : > { %v808_v11 = vadd.f32 %v1323_v7, %v771_v10  ;;  %v1441_v12 = vpop.f32.mrb[2].mxu0 }
 0x10c   : > { %v811_v13 = vadd.f32 %v1441_v12, %v1323_v7  ;;  %v774_v14 = vpop.f32.mrb[3].mxu0  ;;  %v818_v16 = vmax.f32 %v810_v9, 0.0 }
 0x10d   : > { %v809_v15 = vadd.f32 %v1323_v7, %v774_v14  ;;  %v816_v18 = vmax.f32 %v808_v11, 0.0 }
 0x10e   : > { %v819_v17 = vmax.f32 %v811_v13, 0.0 }
 0x10f   : > { %v817_v19 = vmax.f32 %v809_v15, 0.0 }
 0x110   : > { %v825_v20 = vpack.c.bf16 %v819_v17, %v818_v16 }
 0x111   : > { %v1444_v21 = vpop.f32.mrb[4].mxu0  ;;  %v824_v22 = vpack.c.bf16 %v817_v19, %v816_v18 }
 0x112   : > { %v814_v23 = vadd.f32 %v1444_v21, %v1323_v7  ;;  %v787_v24 = vpop.f32.mrb[5].mxu0 }
 0x113   : > { %v812_v25 = vadd.f32 %v1323_v7, %v787_v24  ;;  %v1445_v26 = vpop.f32.mrb[6].mxu0  ;;  %1450 = vmatprep.mubr.msk.bf16.mxu1 %vm575_vm0, %v824_v22 }
 0x114   : > { %v815_v27 = vadd.f32 %v1445_v26, %v1323_v7  ;;  %v790_v28 = vpop.f32.mrb[7].mxu0  ;;  %1451 = vmatmul.mubr.msk.bf16.vlgmr.msra.gmra.mrb[0].mxu1 %vm575_vm0, %v825_v20  ;;  %v822_v30 = vmax.f32 %v814_v23, 0.0 }
 0x115   : > { %v813_v29 = vadd.f32 %v1323_v7, %v790_v28  ;;  %1459 = vmatpush3.bf16.msra.mxu1 %v1512_v6  ;;  %v820_v32 = vmax.f32 %v812_v25, 0.0  ;;  %v1331_v6 = vld [vmem:[%s1874_s8] ss:$0 sm:$0xff] }
 0x116   : > { %v823_v31 = vmax.f32 %v815_v27, 0.0  ;;  %1460 = vmatprep.subr.bf16.mxu1 %v1513_v36 }
 0x117   : > { %v821_v33 = vmax.f32 %v813_v29, 0.0 }
 0x118   : > { %v827_v34 = vpack.c.bf16 %v823_v31, %v822_v30 }
 0x119   : > { %v826_v35 = vpack.c.bf16 %v821_v33, %v820_v32  ;;  %1461 = vmatpush3.bf16.msra.mxu1 %v1513_v36 }
 0x11b   : > { %1454 = vmatprep.mubr.msk.bf16.mxu1 %vm575_vm0, %v826_v35 }
 0x11c   : > { %1455 = vmatmul.mubr.msk.bf16.gmra.mrb[4].mxu1 %vm575_vm0, %v827_v34 }
 0x1e7   : > { %v1452_v38 = vpop.f32.mrb[0].mxu1 }
 0x1e8   : > { %v901_v39 = vadd.f32 %v1452_v38, %v1324_v37  ;;  %v892_v40 = vpop.f32.mrb[1].mxu1 }
 0x1e9   : > { %v893_v41 = vadd.f32 %v1324_v37, %v892_v40  ;;  %v1453_v42 = vpop.f32.mrb[2].mxu1 }
 0x1ea   : > { %v904_v43 = vadd.f32 %v1453_v42, %v1324_v37  ;;  %v895_v44 = vpop.f32.mrb[3].mxu1  ;;  %v925_v46 = vmax.f32 %v901_v39, 0.0 }
 0x1eb   : > { %v896_v45 = vadd.f32 %v1324_v37, %v895_v44  ;;  %v923_v48 = vmax.f32 %v893_v41, 0.0 }
 0x1ec   : > { %v926_v47 = vmax.f32 %v904_v43, 0.0 }
 0x1ed   : > { %v924_v49 = vmax.f32 %v896_v45, 0.0 }
 0x1ee   : > { %v932_v50 = vpack.c.bf16 %v926_v47, %v925_v46 }
 0x1ef   : > { %v931_v51 = vpack.c.bf16 %v924_v49, %v923_v48  ;;  %v1456_v52 = vpop.f32.mrb[4].mxu1 }
 0x1f0   : > { %v917_v53 = vadd.f32 %v1456_v52, %v1324_v37  ;;  %v908_v54 = vpop.f32.mrb[5].mxu1 }
 0x1f1   : > { %v909_v55 = vadd.f32 %v1324_v37, %v908_v54  ;;  %v1457_v56 = vpop.f32.mrb[6].mxu1  ;;  %1462 = vmatprep.mubr.msk.bf16.mxu1 %vm575_vm0, %v931_v51 }
 0x1f2   : > { %v920_v57 = vadd.f32 %v1457_v56, %v1324_v37  ;;  %v911_v58 = vpop.f32.mrb[7].mxu1  ;;  %1463 = vmatmul.mubr.msk.bf16.vlgmr.msra.gmra.mrb[8].mxu1 %vm575_vm0, %v932_v50  ;;  %v929_v60 = vmax.f32 %v917_v53, 0.0 }
 0x1f3   : > { %v912_v59 = vadd.f32 %v1324_v37, %v911_v58  ;;  %v927_v62 = vmax.f32 %v909_v55, 0.0 }
 0x1f4   : > { %v930_v61 = vmax.f32 %v920_v57, 0.0 }
 0x1f5   : > { %v928_v0 = vmax.f32 %v912_v59, 0.0 }
 0x1f6   : > { %v934_v4 = vpack.c.bf16 %v930_v61, %v929_v60 }
 0x1f7   : > { %v933_v5 = vpack.c.bf16 %v928_v0, %v927_v62 }
 0x1f9   : > { %1466 = vmatprep.mubr.msk.bf16.mxu1 %vm575_vm0, %v933_v5 }
 0x1fa   : > { %1467 = vmatmul.mubr.msk.bf16.gmra.mrb[12].mxu1 %vm575_vm0, %v934_v4 }
 0x2c5   : > { %v1464_v7 = vpop.f32.mrb[8].mxu1 }
 0x2c6   : > { %v1008_v8 = vadd.f32 %v1464_v7, %v1331_v6  ;;  %v999_v9 = vpop.f32.mrb[9].mxu1 }
 0x2c7   : > { %v1000_v10 = vadd.f32 %v1331_v6, %v999_v9  ;;  %v1465_v11 = vpop.f32.mrb[10].mxu1 }
 0x2c8   : > { %v1011_v12 = vadd.f32 %v1465_v11, %v1331_v6  ;;  %v1002_v13 = vpop.f32.mrb[11].mxu1  ;;  %v1036_v14 = vsel %vm575_vm0, %v1008_v8, 0.0 }
 0x2c9   : > { %v1003_v15 = vadd.f32 %v1331_v6, %v1002_v13  ;;  %1037 = vadd.xlane.f32.xlu1 %v1036_v14  ;;  %v1030_v16 = vsel %vm575_vm0, %v1000_v10, 0.0 }
 0x2ca   : > { %1031 = vadd.xlane.f32.xlu0 %v1030_v16  ;;  %v1039_v17 = vsel %vm575_vm0, %v1011_v12, 0.0 }
 0x2cb   : > { %v1033_v19 = vsel %vm575_vm0, %v1003_v15, 0.0 }
 0x2cd   : > { %1040 = vadd.xlane.f32.xlu1 %v1039_v17  ;;  %v1468_v18 = vpop.f32.mrb[12].mxu1 }
 0x2ce   : > { %1034 = vadd.xlane.f32.xlu0 %v1033_v19  ;;  %v1015_v20 = vpop.f32.mrb[13].mxu1  ;;  %v1024_v24 = vadd.f32 %v1468_v18, %v1331_v6 }
 0x2cf   : > { %v1016_v21 = vadd.f32 %v1331_v6, %v1015_v20  ;;  %v1469_v22 = vpop.f32.mrb[14].mxu1 }
 0x2d0   : > { %v1018_v23 = vpop.f32.mrb[15].mxu1  ;;  %v1027_v27 = vadd.f32 %v1469_v22, %v1331_v6  ;;  %v1048_v29 = vsel %vm575_vm0, %v1024_v24, 0.0 }
 0x2d1   : > { %v1019_v25 = vadd.f32 %v1331_v6, %v1018_v23  ;;  %v1042_v26 = vsel %vm575_vm0, %v1016_v21, 0.0 }
 0x2d2   : > { %1043 = vadd.xlane.f32.xlu0 %v1042_v26  ;;  %v1051_v30 = vsel %vm575_vm0, %v1027_v27, 0.0 }
 0x2d3   : > { %v1045_v28 = vsel %vm575_vm0, %v1019_v25, 0.0 }
 0x2d4   : > { %1046 = vadd.xlane.f32.xlu1 %v1045_v28 }
 0x2d6   : > { %1049 = vadd.xlane.f32.xlu0 %v1048_v29 }
 0x2d8   : > { %1052 = vadd.xlane.f32.xlu1 %v1051_v30 }
 0x356   : > { %v1038_v31 = vpop.xlane.xlu1 %1037 }
 0x357   : > { %v1057_v32 = vmul.f32 0.03125, %v1038_v31  ;;  %v1032_v33 = vpop.xlane.xlu0 %1031  ;;  %v1794_v31 = vld [vmem:[%s1875_s9] ss:$0 sm:$0xff] }
 0x358   : > { %v1055_v34 = vmul.f32 0.03125, %v1032_v33 }
 0x359   : > { %v1751_v35 = vsub.f32 %v1008_v8, %v1057_v32 }
 0x35a   : > { %v1753_v36 = vsub.f32 %v1000_v10, %v1055_v34  ;;  %v1041_v37 = vpop.xlane.xlu1 %1040 }
 0x35b   : > { %v1058_v38 = vmul.f32 0.03125, %v1041_v37  ;;  %v1035_v39 = vpop.xlane.xlu0 %1034  ;;  %v1073_v40 = vmul.f32 %v1751_v35, %v1751_v35 }
 0x35c   : > { %v1056_v41 = vmul.f32 0.03125, %v1035_v39  ;;  %v1071_v44 = vmul.f32 %v1753_v36, %v1753_v36 }
 0x35d   : > { %v1757_v42 = vsub.f32 %v1011_v12, %v1058_v38  ;;  %v1085_v43 = vsel %vm575_vm0, %v1073_v40, 0.0  ;;  %v1800_v38 = vld [vmem:[%s1876_s10] ss:$0 sm:$0xff]  ;;  %v1165_v40 = vunpack.c.l.bf16 %v1702_v1 }
 0x35e   : > { %v1762_v45 = vsub.f32 %v1003_v15, %v1056_v41  ;;  %1086 = vadd.xlane.f32.xlu0 %v1085_v43  ;;  %v1079_v51 = vsel %vm575_vm0, %v1071_v44, 0.0 }
 0x35f   : > { %v1044_v46 = vpop.xlane.xlu0 %1043  ;;  %v1074_v47 = vmul.f32 %v1757_v42, %v1757_v42 }
 0x360   : > { %v1059_v48 = vmul.f32 0.03125, %v1044_v46  ;;  %v1072_v52 = vmul.f32 %v1762_v45, %v1762_v45 }
 0x361   : > { %v1047_v49 = vpop.xlane.xlu1 %1046  ;;  %v1088_v50 = vsel %vm575_vm0, %v1074_v47, 0.0 }
 0x362   : > { %v1770_v53 = vsub.f32 %v1016_v21, %v1059_v48  ;;  %v1060_v54 = vmul.f32 0.03125, %v1047_v49  ;;  %1089 = vadd.xlane.f32.xlu1 %v1088_v50  ;;  %1080 = vadd.xlane.f32.xlu0 %v1079_v51  ;;  %v1082_v60 = vsel %vm575_vm0, %v1072_v52, 0.0  ;;  %v1166_v49 = vunpack.c.h.bf16 %v1702_v1 }
 0x363   : > { %v1050_v55 = vpop.xlane.xlu0 %1049 }
 0x364   : > { %v1772_v56 = vsub.f32 %v1019_v25, %v1060_v54  ;;  %v1061_v57 = vmul.f32 0.03125, %v1050_v55  ;;  %v1075_v58 = vmul.f32 %v1770_v53, %v1770_v53  ;;  %v1163_v54 = vunpack.c.l.bf16 %v1696_v63 }
 0x365   : > { %v1053_v59 = vpop.xlane.xlu1 %1052 }
 0x366   : > { %v1777_v61 = vsub.f32 %v1024_v24, %v1061_v57  ;;  %v1062_v62 = vmul.f32 0.03125, %v1053_v59  ;;  %1083 = vadd.xlane.f32.xlu1 %v1082_v60  ;;  %v1091_v0 = vsel %vm575_vm0, %v1075_v58, 0.0  ;;  %v1076_v4 = vmul.f32 %v1772_v56, %v1772_v56 }
 0x367   : > { %1092 = vadd.xlane.f32.xlu0 %v1091_v0  ;;  %v1164_v60 = vunpack.c.h.bf16 %v1696_v63 }
 0x368   : > { %v1782_v5 = vsub.f32 %v1027_v27, %v1062_v62  ;;  %v1094_v6 = vsel %vm575_vm0, %v1076_v4, 0.0  ;;  %v1077_v7 = vmul.f32 %v1777_v61, %v1777_v61 }
 0x36a   : > { %1095 = vadd.xlane.f32.xlu1 %v1094_v6  ;;  %v1097_v8 = vsel %vm575_vm0, %v1077_v7, 0.0  ;;  %v1078_v9 = vmul.f32 %v1782_v5, %v1782_v5  ;;  %v1167_v6 = vunpack.c.l.bf16 %v1704_v2 }
 0x36b   : > { %1098 = vadd.xlane.f32.xlu0 %v1097_v8 }
 0x36c   : > { %v1100_v10 = vsel %vm575_vm0, %v1078_v9, 0.0 }
 0x36e   : > { %1101 = vadd.xlane.f32.xlu1 %v1100_v10 }
 0x3eb   : > { %v1087_v11 = vpop.xlane.xlu0 %1086 }
 0x3ec   : > { %v1105_v12 = vmul.f32 0.03125, %v1087_v11 }
 0x3ee   : > { %v1113_v13 = vadd.f32 1e-05, %v1105_v12 }
 0x3ef   : > { %v1090_v14 = vpop.xlane.xlu1 %1089  ;;  %v1081_v15 = vpop.xlane.xlu0 %1080 }
 0x3f0   : > { %1518 = vrsqrt.f32 %v1113_v13  ;;  %v1106_v16 = vmul.f32 0.03125, %v1090_v14  ;;  %v1103_v17 = vmul.f32 0.03125, %v1081_v15  ;;  %v1168_v13 = vunpack.c.h.bf16 %v1704_v2 }
 0x3f2   : > { %v1114_v18 = vadd.f32 1e-05, %v1106_v16  ;;  %v1111_v19 = vadd.f32 1e-05, %v1103_v17  ;;  %v1169_v17 = vunpack.c.l.bf16 %v1710_v3 }
 0x3f3   : > { %v1084_v20 = vpop.xlane.xlu1 %1083 }
 0x3f4   : > { %1520 = vrsqrt.f32 %v1114_v18  ;;  %v1104_v21 = vmul.f32 0.03125, %v1084_v20  ;;  %v1093_v22 = vpop.xlane.xlu0 %1092 }
 0x3f5   : > { %1522 = vrsqrt.f32 %v1111_v19  ;;  %v1107_v23 = vmul.f32 0.03125, %v1093_v22  ;;  %v1170_v22 = vunpack.c.h.bf16 %v1710_v3 }
 0x3f6   : > { %v1112_v24 = vadd.f32 1e-05, %v1104_v21 }
 0x3f7   : > { %v1115_v25 = vadd.f32 1e-05, %v1107_v23  ;;  %v1096_v26 = vpop.xlane.xlu1 %1095 }
 0x3f8   : > { %1524 = vrsqrt.f32 %v1112_v24  ;;  %v1108_v27 = vmul.f32 0.03125, %v1096_v26  ;;  %v1099_v28 = vpop.xlane.xlu0 %1098 }
 0x3f9   : > { %1526 = vrsqrt.f32 %v1115_v25  ;;  %v1109_v29 = vmul.f32 0.03125, %v1099_v28 }
 0x3fa   : > { %v1519_v30 = vpop.eup %1518  ;;  %v1116_v32 = vadd.f32 1e-05, %v1108_v27 }
 0x3fb   : > { %v1129_v33 = vmul.f32 %v1519_v30, %v1751_v35  ;;  %v1117_v34 = vadd.f32 1e-05, %v1109_v29  ;;  %v1102_v37 = vpop.xlane.xlu1 %1101 }
 0x3fc   : > { %1528 = vrsqrt.f32 %v1116_v32  ;;  %v1110_v39 = vmul.f32 0.03125, %v1102_v37 }
 0x3fd   : > { %v1143_v41 = vmul.f32 %v1794_v31, %v1129_v33  ;;  %1530 = vrsqrt.f32 %v1117_v34 }
 0x3fe   : > { %v1521_v43 = vpop.eup %1520  ;;  %v1118_v44 = vadd.f32 1e-05, %v1110_v39 }
 0x3ff   : > { %v1523_v46 = vpop.eup %1522  ;;  %v1157_v35 = vadd.f32 %v1800_v38, %v1143_v41  ;;  %v1130_v47 = vmul.f32 %v1521_v43, %v1757_v42 }
 0x400   : > { %v1127_v48 = vmul.f32 %v1523_v46, %v1753_v36  ;;  %1532 = vrsqrt.f32 %v1118_v44 }
 0x401   : > { %v1173_v50 = vadd.f32 %v1165_v40, %v1157_v35  ;;  %v1144_v51 = vmul.f32 %v1794_v31, %v1130_v47 }
 0x402   : > { %v1525_v52 = vpop.eup %1524  ;;  %v1141_v42 = vmul.f32 %v1794_v31, %v1127_v48 }
 0x403   : > { %v1527_v36 = vpop.eup %1526  ;;  %v1353_v55 = vpack.c.bf16 %v1173_v50, %v1173_v50  ;;  %v1158_v1 = vadd.f32 %v1800_v38, %v1144_v51  ;;  %v1128_v57 = vmul.f32 %v1525_v52, %v1762_v45 }
 0x404   : > { %v1155_v58 = vadd.f32 %v1800_v38, %v1141_v42  ;;  %v1131_v59 = vmul.f32 %v1527_v36, %v1770_v53 }
 0x405   : > { %1214 = vst.msk [vmem:[%s1814_s25 + $0x8] sm:$0xf] %vm1211_vm1, %v1353_v55  ;;  %v1174_v62 = vadd.f32 %v1166_v49, %v1158_v1  ;;  %v1142_v0 = vmul.f32 %v1794_v31, %v1128_v57 }
 0x406   : > { %v1529_v4 = vpop.eup %1528  ;;  %v1171_v7 = vadd.f32 %v1163_v54, %v1155_v58  ;;  %v1145_v8 = vmul.f32 %v1794_v31, %v1131_v59 }
 0x407   : > { %v1531_v45 = vpop.eup %1530  ;;  %v1354_v9 = vpack.c.bf16 %v1174_v62, %v1174_v62  ;;  %v1156_v10 = vadd.f32 %v1800_v38, %v1142_v0  ;;  %v1132_v53 = vmul.f32 %v1529_v4, %v1772_v56 }
 0x408   : > { %v1351_v63 = vpack.c.bf16 %v1171_v7, %v1171_v7  ;;  %v1159_v11 = vadd.f32 %v1800_v38, %v1145_v8  ;;  %v1133_v12 = vmul.f32 %v1531_v45, %v1777_v61 }
 0x409   : > { %1215 = vst.msk [vmem:[%s1814_s25 + $0xc] sm:$0xf] %vm1211_vm1, %v1354_v9  ;;  %v1172_v14 = vadd.f32 %v1164_v60, %v1156_v10  ;;  %v1146_v15 = vmul.f32 %v1794_v31, %v1132_v53 }
 0x40a   : > { %v1533_v16 = vpop.eup %1532  ;;  %1212 = vst.msk [vmem:[%s1814_s25] sm:$0xf] %vm1211_vm1, %v1351_v63  ;;  %v1175_v56 = vadd.f32 %v1167_v6, %v1159_v11  ;;  %v1147_v18 = vmul.f32 %v1794_v31, %v1133_v12 }
 0x40b   : > { %v1352_v19 = vpack.c.bf16 %v1172_v14, %v1172_v14  ;;  %v1160_v61 = vadd.f32 %v1800_v38, %v1146_v15  ;;  %v1134_v2 = vmul.f32 %v1533_v16, %v1782_v5 }
 0x40c   : > { %v1355_v20 = vpack.c.bf16 %v1175_v56, %v1175_v56  ;;  %v1161_v21 = vadd.f32 %v1800_v38, %v1147_v18 }
 0x40d   : > { %1213 = vst.msk [vmem:[%s1814_s25 + $0x4] sm:$0xf] %vm1211_vm1, %v1352_v19  ;;  %v1176_v23 = vadd.f32 %v1168_v13, %v1160_v61  ;;  %v1148_v24 = vmul.f32 %v1794_v31, %v1134_v2 }
 0x40e   : > { %1216 = vst.msk [vmem:[%s1814_s25 + $0x10] sm:$0xf] %vm1211_vm1, %v1355_v20  ;;  %v1177_v25 = vadd.f32 %v1169_v17, %v1161_v21 }
 0x40f   : > { %v1356_v26 = vpack.c.bf16 %v1176_v23, %v1176_v23  ;;  %v1162_v27 = vadd.f32 %v1800_v38, %v1148_v24 }
 0x410   : > { %v1357_v28 = vpack.c.bf16 %v1177_v25, %v1177_v25 }
 0x411   : > { %1217 = vst.msk [vmem:[%s1814_s25 + $0x14] sm:$0xf] %vm1211_vm1, %v1356_v26  ;;  %v1178_v5 = vadd.f32 %v1170_v22, %v1162_v27 }
 0x412   : > { %1218 = vst.msk [vmem:[%s1814_s25 + $0x18] sm:$0xf] %vm1211_vm1, %v1357_v28 }
 0x413   : > { %v1358_v29 = vpack.c.bf16 %v1178_v5, %v1178_v5 }
 0x415   : > { %1219 = vst.msk [vmem:[%s1814_s25 + $0x1c] sm:$0xf] %vm1211_vm1, %v1358_v29 }
 0x416 PF: > { %p18_p9 = scmp.ge.s32.totalorder %s1635_s21, 4   ;;  %s1878_s17 = smov %s1552_s18 }
 0x417   : > { %s1879_s18 = smov %s1644_s24  ;;  %s1880_s19 = smov %s1635_s21 }
 0x418   :  { %20 = sbr.rel (!%p18_p9) target bundleno = 2 (0x2), region = 143 }

// kernel: model_forward.11
= control target key start
LH: loop header
LB: loop body
LE: loop exit
PB: predicated region body
PF: predicated region fallthrough
CT: control target
= control target key end

     0   :  { %15 = vsyncpa [#allocation4], 0  ;;  %s1138_s30 = smov 0   ;;  %s1278_s0 = inlined_call_operand.vmem [shape: bf16[128,32], index: 0, kind: input, shape index: {}]   ;;  %s1279_s1 = inlined_call_operand.vmem [shape: f32[128,2], index: 1, kind: input, shape index: {}]   ;;  %s1280_s2 = inlined_call_operand.vmem [shape: bf16[32,32], index: 2, kind: input, shape index: {}]   ;;  %s1281_s3 = inlined_call_operand.vmem [shape: f32[1,32], index: 3, kind: input, shape index: {}]   ;;  %s1282_s4 = inlined_call_operand.vmem [shape: bf16[32,32], index: 4, kind: input, shape index: {}]   ;;  %s1283_s5 = inlined_call_operand.vmem [shape: f32[1,32], index: 5, kind: input, shape index: {}]   ;;  %s1284_s6 = inlined_call_operand.vmem [shape: bf16[32,2], index: 6, kind: input, shape index: {}]   ;;  %s1285_s7 = inlined_call_operand.vmem [shape: f32[1,2], index: 7, kind: input, shape index: {}]   ;;  %s1286_s8 = inlined_call_operand.vmem [shape: f32[128,2], index: 8, kind: output, shape index: {0}]   ;;  %s1287_s9 = inlined_call_operand.hbm [shape: f32[1], index: 9, kind: output, shape index: {1}]  }
   0x1 LB: > { %s1144_s10 = sadd.s32 4294967295, %s1084_s30   ;;  %p931_p0 = scmp.ge.s32.totalorder %s1084_s30, 1  ;;  %s1084_s30 = sphi %s1138_s30, %s21_s30  }
   0x2   : > { %p298_p1 = scmp.lt.s32.totalorder %s1084_s30, 3 }
   0x4   : > { %p299_p2 = pnand %p931_p0, %p298_p1 }
   0x5   : > { %v1052_v0 = vld [vmem:[%s1280_s2] sm:$0xff] (!%p299_p2)   ;;  %v1053_v1 = vld [vmem:[%s1280_s2 + $0x8] sm:$0xff] (!%p299_p2)   ;;  %s932_s15 = sshll.u32 (!%p299_p2), %s1144_s10, 3  ;;  %vm425_vm0 = vcmask (!%p299_p2), 261120   ;;  %s964_s13 = sshll.u32 (!%p299_p2), %s1144_s10, 6  ;;  %vm717_vm1 = vcmask (!%p299_p2), 15360  }
   0x6   : > { %302 = sbr.rel (%p299_p2) target bundleno = 913 (0x391), region = 52  ;;  %988 = vmatprep.subr.bf16.mxu0 (!%p299_p2), %v1052_v0  ;;  %1024 = vmatprep.subr.bf16.mxu1 (!%p299_p2), %v1052_v0  ;;  %p340_p3 = scmp.lt.s32.totalorder (!%p299_p2), %s932_s15, 15  ;;  %v1058_v6 = vld [vmem:[%s1282_s4] sm:$0xff] (!%p299_p2)   ;;  %v1059_v7 = vld [vmem:[%s1282_s4 + $0x8] sm:$0xff] (!%p299_p2)  }
   0x7   : > { %989 = vmatpush3.bf16.msra.mxu0 (!%p299_p2), %v1052_v0  ;;  %1026 = vmatpush3.bf16.msra.mxu1 (!%p299_p2), %v1052_v0  ;;  %v939_v8 = vld [vmem:[%s1281_s3] ss:$0 sm:$0xff] (!%p299_p2)  ;;  %v1061_v38 = vld [vmem:[%s1284_s6 + $0x8] sm:$0xff] (!%p299_p2)   ;;  %p1038_p4 = scmp.eq.s32.totalorder (!%p299_p2), %s1144_s10, 0  ;;  %s1086_s23 = smov (!%p299_p2), 0.0  }
   0x8   : > { %990 = vmatprep.subr.bf16.mxu0 (!%p299_p2), %v1053_v1  ;;  %1025 = vmatprep.subr.bf16.mxu1 (!%p299_p2), %v1053_v1  ;;  %v1060_v37 = vld [vmem:[%s1284_s6] sm:$0xff] (!%p299_p2)   ;;  %p1039_p5 = scmp.eq.s32.totalorder (!%p299_p2), %s1144_s10, 1  ;;  %s1062_s29 = scalar_lea.hbm (!%p299_p2), %s1287_s9, 16 }
   0x9   : > { %v950_v39 = vld [vmem:[%s1283_s5] ss:$0 sm:$0xff] (!%p299_p2)  ;;  %p1063_p6 = scmp.ne.s32.totalorder (!%p299_p2), %s1287_s9, %s1062_s29  ;;  %p1068_p9 = scmp.lt.u32.totalorder (!%p299_p2), %s1062_s29, %s1287_s9 }
   0xb   : > { %991 = vmatpush3.bf16.msra.mxu0 (!%p299_p2), %v1053_v1  ;;  %1027 = vmatpush3.bf16.msra.mxu1 (!%p299_p2), %v1053_v1  ;;  %p1064_p7 = pnand (!%p299_p2), %p1063_p6, %p1039_p5 }
   0xc   : > { %1000 = vmatprep.subr.bf16.mxu1 (!%p299_p2), %v1058_v6  ;;  %1012 = vmatprep.subr.bf16.mxu0 (!%p299_p2), %v1060_v37 }
   0xd   : > { %s1289_s15 = smov (!%p340_p3, %s932_s15), 15  ;;  %1031 = sst [smem:[#allocation2]] (%p1038_p4), %s1086_s23 }
   0xe   : > { %s933_s16 = sshll.u32 %s1289_s15, 2  ;;  %s935_s14 = sshll.u32 %s1289_s15, 3 }
   0xf   : > { %s343_s19 = scalar_lea.vmem %s1278_s0, %s933_s16  ;;  %s1196_s18 = scalar_lea.vmem %s1279_s1, %s935_s14 }
  0x10   : > { %v1054_v2 = vld [vmem:[%s343_s19] sm:$0xff]   ;;  %v1055_v3 = vld [vmem:[%s343_s19 + $0x8] sm:$0xff]   ;;  %v1056_v4 = vld [vmem:[%s343_s19 + $0x10] sm:$0xff]   ;;  %s1206_s22 = scalar_lea.vmem %s1286_s8, %s935_s14  ;;  %s793_s24 = sld [smem:[#allocation2]] }
  0x11   : > { %992 = vmatprep.mubr.msk.bf16.mxu0 %vm425_vm0, %v1054_v2  ;;  %v1057_v5 = vld [vmem:[%s343_s19 + $0x18] sm:$0xff]   ;;  %996 = vmatprep.mubr.msk.bf16.mxu1 %vm425_vm0, %v1056_v4  ;;  %v727_v4 = vlaneseq  ;;  %p1065_p8 = pneg %p1064_p7 }
  0x12   : > { %993 = vmatmul.mubr.msk.bf16.vlgmr.msra.gmra.mrb[0].mxu0 %vm425_vm0, %v1055_v3  ;;  %997 = vmatmul.mubr.msk.bf16.vlgmr.msra.gmra.mrb[0].mxu1 %vm425_vm0, %v1057_v5 }
  0x13   : > { %1001 = vmatpush3.bf16.msra.mxu1 %v1058_v6  ;;  %1013 = vmatpush3.bf16.msra.mxu0 %v1060_v37  ;;  %v728_v5 = vshrl.u32 %v727_v4, 7  ;;  %p1070_p10 = pnand %p1068_p9, %p1065_p8 }
  0x14   : > { %1002 = vmatprep.subr.bf16.mxu1 %v1059_v7  ;;  %1014 = vmatprep.subr.bf16.mxu0 %v1061_v38 }
  0x15   : > { %v730_v6 = vadd.s32 16, %v728_v5 }
  0x17   : > { %1003 = vmatpush3.bf16.msra.mxu1 %v1059_v7  ;;  %1015 = vmatpush3.bf16.msra.mxu0 %v1061_v38  ;;  %v736_v7 = vstv %s964_s13 }
  0xe5   : > { %v994_v9 = vpop.f32.mrb[0].mxu0  ;;  %v998_v14 = vpop.f32.mrb[0].mxu1 }
  0xe6   : > { %v481_v10 = vadd.f32 %v994_v9, %v939_v8  ;;  %v472_v11 = vpop.f32.mrb[1].mxu0  ;;  %v497_v17 = vadd.f32 %v998_v14, %v939_v8  ;;  %v488_v18 = vpop.f32.mrb[1].mxu1  ;;  %v729_v9 = vadd.s32 8, %v728_v5  ;;  %v755_v14 = vld [vmem:[%s1196_s18 + $0x10] sm:$0xff] }
  0xe7   : > { %v473_v12 = vadd.f32 %v939_v8, %v472_v11  ;;  %v995_v13 = vpop.f32.mrb[2].mxu0  ;;  %v489_v20 = vadd.f32 %v939_v8, %v488_v18  ;;  %v999_v21 = vpop.f32.mrb[2].mxu1  ;;  %v739_v11 = vadd.s32 %v736_v7, %v730_v6  ;;  %v753_v18 = vld [vmem:[%s1196_s18] sm:$0xff] }
  0xe8   : > { %v484_v15 = vadd.f32 %v995_v13, %v939_v8  ;;  %v475_v16 = vpop.f32.mrb[3].mxu0  ;;  %v505_v22 = vmax.f32 %v481_v10, 0.0  ;;  %v509_v24 = vmax.f32 %v497_v17, 0.0  ;;  %v500_v25 = vadd.f32 %v999_v21, %v939_v8  ;;  %v491_v26 = vpop.f32.mrb[3].mxu1  ;;  %v1201_v10 = vld [vmem:[%s1285_s7] ss:$0 sm:$0xff] }
  0xe9   : > { %v476_v19 = vadd.f32 %v939_v8, %v475_v16  ;;  %v503_v27 = vmax.f32 %v473_v12, 0.0  ;;  %v507_v29 = vmax.f32 %v489_v20, 0.0  ;;  %v492_v30 = vadd.f32 %v939_v8, %v491_v26 }
  0xea   : > { %v506_v23 = vmax.f32 %v484_v15, 0.0  ;;  %v510_v32 = vmax.f32 %v500_v25, 0.0  ;;  %v731_v8 = vadd.s32 24, %v728_v5  ;;  %v737_v12 = vadd.s32 %v736_v7, %v728_v5 }
  0xeb   : > { %v504_v28 = vmax.f32 %v476_v19, 0.0  ;;  %v508_v34 = vmax.f32 %v492_v30, 0.0  ;;  %v738_v19 = vadd.s32 %v736_v7, %v729_v9  ;;  %v734_v20 = vadd.s32 48, %v728_v5 }
  0xec   : > { %v512_v31 = vpack.c.bf16 %v506_v23, %v505_v22  ;;  %v514_v35 = vpack.c.bf16 %v510_v32, %v509_v24  ;;  %v740_v15 = vadd.s32 %v736_v7, %v731_v8  ;;  %v756_v23 = vld [vmem:[%s1196_s18 + $0x18] sm:$0xff]  ;;  %v732_v24 = vadd.s32 32, %v728_v5 }
  0xed   : > { %v511_v33 = vpack.c.bf16 %v504_v28, %v503_v27  ;;  %v513_v36 = vpack.c.bf16 %v508_v34, %v507_v29  ;;  %vm747_vm2 = vcmp.lt.s32.totalorder %v739_v11, 128  ;;  %vm745_vm3 = vcmp.lt.s32.totalorder %v737_v12, 128  ;;  %v754_v28 = vld [vmem:[%s1196_s18 + $0x8] sm:$0xff] }
  0xee   : > { %vm748_vm4 = vcmp.lt.s32.totalorder %v740_v15, 128  ;;  %vm746_vm5 = vcmp.lt.s32.totalorder %v738_v19, 128  ;;  %v733_v34 = vadd.s32 40, %v728_v5  ;;  %v741_v38 = vadd.s32 %v736_v7, %v732_v24 }
  0xef   : > { %1004 = vmatprep.mubr.msk.bf16.mxu1 %vm425_vm0, %v511_v33  ;;  %v743_v33 = vadd.s32 %v736_v7, %v734_v20 }
  0xf0   : > { %1005 = vmatmul.mubr.msk.bf16.vlgmr.msra.gmra.mrb[4].mxu1 %vm425_vm0, %v512_v31  ;;  %v735_v31 = vadd.s32 56, %v728_v5  ;;  %vm749_vm7 = vcmp.lt.s32.totalorder %v741_v38, 128 }
  0xf1   : > { %1008 = vmatprep.mubr.msk.bf16.mxu1 %vm425_vm0, %v513_v36  ;;  %vm751_vm6 = vcmp.lt.s32.totalorder %v743_v33, 128 }
  0xf8   : > { %1009 = vmatmul.mubr.msk.bf16.gmra.mrb[8].mxu1 %vm425_vm0, %v514_v35 }
 0x1c3   : > { %v1006_v40 = vpop.f32.mrb[4].mxu1 }
 0x1c4   : > { %v588_v41 = vadd.f32 %v1006_v40, %v950_v39  ;;  %v579_v42 = vpop.f32.mrb[5].mxu1 }
 0x1c5   : > { %v580_v43 = vadd.f32 %v950_v39, %v579_v42  ;;  %v1007_v44 = vpop.f32.mrb[6].mxu1 }
 0x1c6   : > { %v591_v45 = vadd.f32 %v1007_v44, %v950_v39  ;;  %v582_v46 = vpop.f32.mrb[7].mxu1  ;;  %v612_v48 = vmax.f32 %v588_v41, 0.0  ;;  %v744_v44 = vadd.s32 %v736_v7, %v735_v31 }
 0x1c7   : > { %v583_v47 = vadd.f32 %v950_v39, %v582_v46  ;;  %v610_v50 = vmax.f32 %v580_v43, 0.0  ;;  %v759_v43 = vld [vmem:[%s1196_s18 + $0x30] sm:$0xff] }
 0x1c8   : > { %v613_v49 = vmax.f32 %v591_v45, 0.0  ;;  %vm752_vm9 = vcmp.lt.s32.totalorder %v744_v44, 128 }
 0x1c9   : > { %v611_v51 = vmax.f32 %v583_v47, 0.0 }
 0x1ca   : > { %v619_v52 = vpack.c.bf16 %v613_v49, %v612_v48  ;;  %v757_v49 = vld [vmem:[%s1196_s18 + $0x20] sm:$0xff] }
 0x1cb   : > { %v618_v53 = vpack.c.bf16 %v611_v51, %v610_v50  ;;  %v1010_v54 = vpop.f32.mrb[8].mxu1  ;;  %v742_v50 = vadd.s32 %v736_v7, %v733_v34 }
 0x1cc   : > { %v604_v55 = vadd.f32 %v1010_v54, %v950_v39  ;;  %v595_v56 = vpop.f32.mrb[9].mxu1  ;;  %v760_v54 = vld [vmem:[%s1196_s18 + $0x38] sm:$0xff] }
 0x1cd   : > { %v596_v57 = vadd.f32 %v950_v39, %v595_v56  ;;  %v1011_v58 = vpop.f32.mrb[10].mxu1  ;;  %1016 = vmatprep.mubr.msk.bf16.mxu0 %vm425_vm0, %v618_v53  ;;  %vm750_vm8 = vcmp.lt.s32.totalorder %v742_v50, 128 }
 0x1ce   : > { %v607_v59 = vadd.f32 %v1011_v58, %v950_v39  ;;  %v598_v60 = vpop.f32.mrb[11].mxu1  ;;  %1017 = vmatmul.mubr.msk.bf16.vlgmr.msra.gmra.mrb[4].mxu0 %vm425_vm0, %v619_v52  ;;  %v616_v62 = vmax.f32 %v604_v55, 0.0 }
 0x1cf   : > { %v599_v61 = vadd.f32 %v950_v39, %v598_v60  ;;  %v614_v0 = vmax.f32 %v596_v57, 0.0  ;;  %v758_v60 = vld [vmem:[%s1196_s18 + $0x28] sm:$0xff] }
 0x1d0   : > { %v617_v63 = vmax.f32 %v607_v59, 0.0 }
 0x1d1   : > { %v615_v1 = vmax.f32 %v599_v61, 0.0 }
 0x1d2   : > { %v621_v2 = vpack.c.bf16 %v617_v63, %v616_v62 }
 0x1d3   : > { %v620_v3 = vpack.c.bf16 %v615_v1, %v614_v0 }
 0x1d5   : > { %1020 = vmatprep.mubr.msk.bf16.mxu0 %vm425_vm0, %v620_v3 }
 0x1d6   : > { %1021 = vmatmul.mubr.msk.bf16.gmra.mrb[8].mxu0 %vm425_vm0, %v621_v2 }
 0x2a1   : > { %v1018_v13 = vpop.f32.mrb[4].mxu0 }
 0x2a2   : > { %v695_v16 = vadd.f32 %v1018_v13, %v1201_v10  ;;  %v686_v17 = vpop.f32.mrb[5].mxu0 }
 0x2a3   : > { %v687_v21 = vadd.f32 %v1201_v10, %v686_v17  ;;  %v1019_v22 = vpop.f32.mrb[6].mxu0 }
 0x2a4   : > { %720 = vst.msk [vmem:[%s1206_s22 + $0x10] sm:$0xff] %vm717_vm1, %v695_v16  ;;  %v763_v25 = vsub.f32 %v695_v16, %v755_v14  ;;  %v698_v26 = vadd.f32 %v1019_v22, %v1201_v10  ;;  %v689_v27 = vpop.f32.mrb[7].mxu0 }
 0x2a5   : > { %718 = vst.msk [vmem:[%s1206_s22] sm:$0xff] %vm717_vm1, %v687_v21  ;;  %v761_v29 = vsub.f32 %v687_v21, %v753_v18  ;;  %v690_v30 = vadd.f32 %v1201_v10, %v689_v27 }
 0x2a6   : > { %721 = vst.msk [vmem:[%s1206_s22 + $0x18] sm:$0xff] %vm717_vm1, %v698_v26  ;;  %v764_v32 = vsub.f32 %v698_v26, %v756_v23  ;;  %v787_v35 = vsel %vm747_vm2, %v763_v25, 0.0 }
 0x2a7   : > { %v785_v36 = vsel %vm745_vm3, %v761_v29, 0.0  ;;  %719 = vst.msk [vmem:[%s1206_s22 + $0x8] sm:$0xff] %vm717_vm1, %v690_v30  ;;  %v762_v37 = vsub.f32 %v690_v30, %v754_v28  ;;  %v796_v45 = vmul.f32 %v787_v35, %v787_v35 }
 0x2a8   : > { %v794_v39 = vmul.f32 %v785_v36, %v785_v36  ;;  %v788_v40 = vsel %vm748_vm4, %v764_v32, 0.0 }
 0x2a9   : > { %v786_v41 = vsel %vm746_vm5, %v762_v37, 0.0  ;;  %v1022_v42 = vpop.f32.mrb[8].mxu0  ;;  %v797_v51 = vmul.f32 %v788_v40, %v788_v40  ;;  %v805_v0 = vsel %vm717_vm1, %v796_v45, 0.0 }
 0x2aa   : > { %v795_v46 = vmul.f32 %v786_v41, %v786_v41  ;;  %v711_v47 = vadd.f32 %v1022_v42, %v1201_v10  ;;  %v702_v48 = vpop.f32.mrb[9].mxu0  ;;  %v802_v55 = vsel %vm717_vm1, %v794_v39, 0.0 }
 0x2ab   : > { %v703_v52 = vadd.f32 %v1201_v10, %v702_v48  ;;  %v1023_v53 = vpop.f32.mrb[10].mxu0  ;;  %v807_v6 = vsel %vm717_vm1, %v797_v51, 0.0 }
 0x2ac   : > { %v803_v56 = vsel %vm717_vm1, %v795_v46, 0.0  ;;  %724 = vst.msk [vmem:[%s1206_s22 + $0x30] sm:$0xff] %vm717_vm1, %v711_v47  ;;  %v767_v57 = vsub.f32 %v711_v47, %v759_v43  ;;  %v714_v58 = vadd.f32 %v1023_v53, %v1201_v10  ;;  %v705_v59 = vpop.f32.mrb[11].mxu0 }
 0x2ad   : > { %v804_v61 = vadd.f32 %v803_v56, %v802_v55  ;;  %722 = vst.msk [vmem:[%s1206_s22 + $0x20] sm:$0xff] %vm717_vm1, %v703_v52  ;;  %v765_v62 = vsub.f32 %v703_v52, %v757_v49  ;;  %v706_v63 = vadd.f32 %v1201_v10, %v705_v59 }
 0x2ae   : > { %725 = vst.msk [vmem:[%s1206_s22 + $0x38] sm:$0xff] %vm717_vm1, %v714_v58  ;;  %v768_v1 = vsub.f32 %v714_v58, %v760_v54  ;;  %v791_v3 = vsel %vm751_vm6, %v767_v57, 0.0 }
 0x2af   : > { %v806_v2 = vadd.f32 %v805_v0, %v804_v61  ;;  %v789_v4 = vsel %vm749_vm7, %v765_v62, 0.0  ;;  %723 = vst.msk [vmem:[%s1206_s22 + $0x28] sm:$0xff] %vm717_vm1, %v706_v63  ;;  %v766_v5 = vsub.f32 %v706_v63, %v758_v60  ;;  %v800_v11 = vmul.f32 %v791_v3, %v791_v3 }
 0x2b0   : > { %v798_v7 = vmul.f32 %v789_v4, %v789_v4  ;;  %v792_v9 = vsel %vm752_vm9, %v768_v1, 0.0 }
 0x2b1   : > { %v790_v8 = vsel %vm750_vm8, %v766_v5, 0.0  ;;  %v808_v10 = vadd.f32 %v807_v6, %v806_v2  ;;  %v801_v15 = vmul.f32 %v792_v9, %v792_v9  ;;  %v813_v18 = vsel %vm717_vm1, %v800_v11, 0.0 }
 0x2b2   : > { %v809_v12 = vsel %vm717_vm1, %v798_v7, 0.0  ;;  %v799_v13 = vmul.f32 %v790_v8, %v790_v8 }
 0x2b3   : > { %v810_v14 = vadd.f32 %v809_v12, %v808_v10  ;;  %v815_v20 = vsel %vm717_vm1, %v801_v15, 0.0 }
 0x2b4   : > { %v811_v16 = vsel %vm717_vm1, %v799_v13, 0.0 }
 0x2b5   : > { %v812_v17 = vadd.f32 %v811_v16, %v810_v14 }
 0x2b7   : > { %v814_v19 = vadd.f32 %v813_v18, %v812_v17 }
 0x2b9   : > { %v816_v21 = vadd.f32 %v815_v20, %v814_v19 }
 0x2bb   : > { %817 = vadd.xlane.f32.xlu0 %v816_v21 }
 0x348   : > { %v818_v22 = vpop.xlane.xlu0 %817 }
 0x349   : > { %v819_v23 = vrot.slane %v818_v22, 4 }
 0x34b   : > { %v820_v24 = vadd.f32 %v819_v23, %v818_v22 }
 0x34d   : > { %v821_v25 = vrot.slane %v820_v24, 2 }
 0x34f   : > { %v822_v26 = vadd.f32 %v821_v25, %v820_v24 }
 0x351   : > { %v823_v27 = vrot.slane %v822_v26, 1 }
 0x353   : > { %v824_v28 = vadd.f32 %v823_v27, %v822_v26 }
 0x355   : > { %1028 = vpush %v824_v28 }
 0x386   : > { %s1029_s25 = spop %1028 }
 0x387   : > { %s826_s26 = sadd.f32 %s1029_s25, %s793_s24 }
 0x389   : > { %828 = sst [smem:[#allocation2]] %s826_s26 }
 0x38a   : > { %1033 = sst [smem:[#allocation3]] (%p1039_p5), %s826_s26 }
 0x38b   : > { %1073 = shalt.err (!%p1070_p10)
}
 0x38c   : > { %s1087_s16 = smov [#allocation3]  }
 0x38d   : > { %1035 = dma.smem_to_hbm (%p1039_p5), %s1087_s16, 16, %s1287_s9, [#allocation4]  }
 0x38e   : > { %1079 = dma.done.wait (%p1039_p5), [#allocation4], 16  }
 0x38f   : > { %1081 = vsyncadd (%p1039_p5), [#allocation4], 4294967280 }
 0x390   : > { %858 = sfence }
 0x391 PF: > { %s21_s30 = sadd.s32 1, %s1084_s30  }
 0x392   : > { %p18_p11 = scmp.ge.s32.totalorder %s21_s30, 4  }
 0x394   :  { %20 = sbr.rel (!%p18_p11) target bundleno = 1 (0x1), region = 105 }
 0x39b   :  { %872 = vsyncpa [#allocation4], 1 }
 0x39c   :  { %874 = vsyncpa [#allocation4 + $0x1], 1 }

// kernel: model_forward.7
= control target key start
LH: loop header
LB: loop body
LE: loop exit
PB: predicated region body
PF: predicated region fallthrough
CT: control target
= control target key end

     0   :  { %s2794_s29 = smov 0   ;;  %s2796_s30 = smov 0   ;;  %s3267_s0 = inlined_call_operand.vmem [shape: s32[1,256], index: 0, kind: input, shape index: {}]   ;;  %s3268_s1 = inlined_call_operand.vmem [shape: bf16[256,32], index: 1, kind: input, shape index: {}]   ;;  %s3269_s2 = inlined_call_operand.vmem [shape: bf16[256,32], index: 2, kind: input, shape index: {}]   ;;  %s3270_s3 = inlined_call_operand.vmem [shape: bf16[256,2], index: 3, kind: input, shape index: {}]   ;;  %s3271_s4 = inlined_call_operand.vmem [shape: bf16[32,32], index: 4, kind: input, shape index: {}]   ;;  %s3272_s5 = inlined_call_operand.vmem [shape: bf16[32,32], index: 5, kind: input, shape index: {}]   ;;  %s3273_s6 = inlined_call_operand.vmem [shape: bf16[2,32], index: 6, kind: input, shape index: {}]   ;;  %s3274_s7 = inlined_call_operand.vmem [shape: f32[1,32], index: 7, kind: input, shape index: {}]   ;;  %s3275_s8 = inlined_call_operand.vmem [shape: bf16[32,32], index: 8, kind: input, shape index: {}]   ;;  %s3276_s9 = inlined_call_operand.vmem [shape: f32[1,32], index: 9, kind: input, shape index: {}]   ;;  %s3277_s10 = inlined_call_operand.vmem [shape: bf16[32,32], index: 10, kind: input, shape index: {}]   ;;  %s3278_s11 = inlined_call_operand.vmem [shape: f32[1,32], index: 11, kind: input, shape index: {}]   ;;  %s3279_s12 = inlined_call_operand.vmem [shape: f32[1,32], index: 12, kind: input, shape index: {}]   ;;  %s3280_s13 = inlined_call_operand.vmem [shape: f32[1,32], index: 13, kind: input, shape index: {}]   ;;  %s3281_s14 = inlined_call_operand.vmem [shape: bf16[2,128,32], index: 14, kind: output, shape index: {}]  }
   0x1   :  { %s2798_s15 = smov 0  }
   0x2 LB: > { %s36_s16 = sadd.s32 1, %s2711_s30  ;;  %p2221_p0 = scmp.ge.s32.totalorder %s2715_s15, 1  ;;  %s2715_s15 = sphi %s2798_s15, %s24_s15   ;;  %s2711_s30 = sphi %s2796_s30, %s3297_s30   ;;  %s2707_s29 = sphi %s2794_s29, %s3296_s29  }
   0x3   : > { %p38_p1 = scmp.ge.s32.totalorder %s36_s16, 2  ;;  %p471_p2 = scmp.lt.s32.totalorder %s2715_s15, 3 }
   0x5   : > { %s3299_s16 = smov (%p38_p1, %s36_s16), 0  ;;  %p472_p3 = pnand %p2221_p0, %p471_p2 }
   0x6   : > { %v2629_v0 = vld [vmem:[%s3272_s5] sm:$0xff] (!%p472_p3)   ;;  %s2222_s19 = sshll.u32 (!%p472_p3), %s2707_s29, 4  ;;  %v2630_v1 = vld [vmem:[%s3272_s5 + $0x8] sm:$0xff] (!%p472_p3)   ;;  %vm595_vm0 = vcmask (!%p472_p3), 261120   ;;  %vm1072_vm1 = vcmask (!%p472_p3), 1040384   ;;  %vm1047_vm2 = vcmask (!%p472_p3), 15360  }
   0x7   : > { %475 = sbr.rel (%p472_p3) target bundleno = 1345 (0x541), region = 76  ;;  %p541_p4 = scmp.lt.s32.totalorder (!%p472_p3), %s2222_s19, 31  ;;  %2440 = vmatprep.subr.bf16.mxu0 (!%p472_p3), %v2629_v0  ;;  %v2633_v2 = vld [vmem:[%s3271_s4] sm:$0xff] (!%p472_p3)   ;;  %v2638_v3 = vld [vmem:[%s3271_s4 + $0x8] sm:$0xff] (!%p472_p3)  }
   0x8   : > { %2441 = vmatpush3.bf16.msra.mxu0 (!%p472_p3), %v2629_v0  ;;  %v577_v7 = vld [vmem:[%s3273_s6] sm:$0x1] (!%p472_p3)  ;;  %v2658_v31 = vld [vmem:[%s3275_s8 + $0x8] sm:$0xff] (!%p472_p3)   ;;  %p535_p5 = scmp.lt.s32.totalorder (!%p472_p3), %s2707_s29, 1 }
   0x9   : > { %2442 = vmatprep.subr.bf16.mxu0 (!%p472_p3), %v2630_v1  ;;  %v1074_v16 = vsel (!%p472_p3), %vm1072_vm1, %v577_v7, 0  ;;  %v2657_v30 = vld [vmem:[%s3275_s8] sm:$0xff] (!%p472_p3)   ;;  %v2660_v51 = vld [vmem:[%s3277_s10 + $0x8] sm:$0xff] (!%p472_p3)  }
   0xa   : > { %2498 = vmatprep.subr.bf16.mxu1 (!%p472_p3), %v2657_v30  ;;  %v2659_v32 = vld [vmem:[%s3277_s10] sm:$0xff] (!%p472_p3)  }
   0xb   : > { %2499 = vmatpush3.bf16.msra.mxu1 (!%p472_p3), %v2657_v30  ;;  %v2282_v33 = vld [vmem:[%s3274_s7] ss:$0 sm:$0xff] (!%p472_p3) }
   0xc   : > { %2443 = vmatpush3.bf16.msra.mxu0 (!%p472_p3), %v2630_v1  ;;  %2500 = vmatprep.subr.bf16.mxu1 (!%p472_p3), %v2658_v31 }
   0xd   : > { %2460 = vmatprep.subr.bf16.mxu0 (!%p472_p3), %v2633_v2 }
   0xe   : > { %s3301_s19 = smov (!%p541_p4, %s2222_s19), 31  ;;  %s3303_s29 = smov (!%p535_p5, %s2707_s29), 1 }
   0xf   : > { %s2223_s24 = sshll.u32 %s3301_s19, 2  ;;  %2501 = vmatpush3.bf16.msra.mxu1 %v2658_v31  ;;  %s537_s18 = scalar_lea.vmem %s3267_s0, %s3303_s29 }
  0x10   : > { %s552_s27 = scalar_lea.vmem %s3269_s2, %s2223_s24  ;;  %s544_s22 = scalar_lea.vmem %s3268_s1, %s2223_s24  ;;  %2518 = vmatprep.subr.bf16.mxu1 %v2659_v32 }
  0x11   : > { %v2631_v4 = vld [vmem:[%s552_s27] sm:$0xff]   ;;  %v2632_v5 = vld [vmem:[%s552_s27 + $0x8] sm:$0xff]   ;;  %v2634_v6 = vld [vmem:[%s552_s27 + $0x10] sm:$0xff]   ;;  %s2845_s26 = scalar_lea.vmem %s3270_s3, %s2223_s24  ;;  %s2358_s23 = sshll.u32 %s3303_s29, 6 }
  0x12   : > { %2444 = vmatprep.mubr.msk.bf16.mxu0 %vm595_vm0, %v2631_v4  ;;  %v2635_v8 = vld [vmem:[%s552_s27 + $0x18] sm:$0xff]   ;;  %v2636_v9 = vld [vmem:[%s552_s27 + $0x20] sm:$0xff]   ;;  %v2637_v10 = vld [vmem:[%s552_s27 + $0x28] sm:$0xff]   ;;  %s3212_s24 = scalar_lea.vmem %s3281_s14, %s2358_s23 }
  0x13   : > { %2445 = vmatmul.mubr.msk.bf16.vlgmr.msra.gmra.mrb[0].mxu0 %vm595_vm0, %v2632_v5  ;;  %v2639_v11 = vld [vmem:[%s552_s27 + $0x30] sm:$0xff]   ;;  %v2640_v12 = vld [vmem:[%s552_s27 + $0x38] sm:$0xff]   ;;  %v2641_v13 = vld [vmem:[%s544_s22] sm:$0xff]  }
  0x14   : > { %2461 = vmatpush3.bf16.msra.mxu0 %v2633_v2  ;;  %2448 = vmatprep.mubr.msk.bf16.mxu0 %vm595_vm0, %v2634_v6  ;;  %v2642_v14 = vld [vmem:[%s544_s22 + $0x8] sm:$0xff]   ;;  %v2643_v15 = vld [vmem:[%s544_s22 + $0x10] sm:$0xff]   ;;  %v2644_v17 = vld [vmem:[%s544_s22 + $0x18] sm:$0xff]  }
  0x15   : > { %2462 = vmatprep.subr.bf16.mxu0 %v2638_v3  ;;  %v2645_v18 = vld [vmem:[%s544_s22 + $0x20] sm:$0xff]   ;;  %v2646_v19 = vld [vmem:[%s544_s22 + $0x28] sm:$0xff]   ;;  %v2647_v20 = vld [vmem:[%s544_s22 + $0x30] sm:$0xff]  }
  0x16   : > { %v2648_v21 = vld [vmem:[%s544_s22 + $0x38] sm:$0xff]   ;;  %v2649_v22 = vld [vmem:[%s2845_s26] sm:$0xff]   ;;  %v2650_v23 = vld [vmem:[%s2845_s26 + $0x8] sm:$0xff]  }
  0x17   : > { %v2651_v24 = vld [vmem:[%s2845_s26 + $0x10] sm:$0xff]   ;;  %v2652_v25 = vld [vmem:[%s2845_s26 + $0x18] sm:$0xff]   ;;  %v2653_v26 = vld [vmem:[%s2845_s26 + $0x20] sm:$0xff]  }
  0x18   : > { %2463 = vmatpush3.bf16.msra.mxu0 %v2638_v3  ;;  %v2654_v27 = vld [vmem:[%s2845_s26 + $0x28] sm:$0xff]   ;;  %v2655_v28 = vld [vmem:[%s2845_s26 + $0x30] sm:$0xff]   ;;  %v2656_v29 = vld [vmem:[%s2845_s26 + $0x38] sm:$0xff]  }
  0x19   : > { %2602 = vmatprep.subr.msk.bf16.mxu0 %vm1072_vm1, %v577_v7 }
  0x1b   : > { %2449 = vmatmul.mubr.msk.bf16.gmra.mrb[4].mxu0 %vm595_vm0, %v2635_v8 }
  0x1c   : > { %2452 = vmatprep.mubr.msk.bf16.mxu0 %vm595_vm0, %v2636_v9 }
  0x23   : > { %2453 = vmatmul.mubr.msk.bf16.gmra.mrb[8].mxu0 %vm595_vm0, %v2637_v10 }
  0x24   : > { %2456 = vmatprep.mubr.msk.bf16.mxu0 %vm595_vm0, %v2639_v11 }
  0x2b   : > { %2457 = vmatmul.mubr.msk.bf16.gmra.mrb[12].mxu0 %vm595_vm0, %v2640_v12 }
  0x2c   : > { %2464 = vmatprep.mubr.msk.bf16.mxu0 %vm595_vm0, %v2641_v13 }
  0x33   : > { %2465 = vmatmul.mubr.msk.bf16.vlgmr.msra.gmra.mrb[0].mxu0 %vm595_vm0, %v2642_v14 }
  0x34   : > { %2481 = vmatpush3.bf16.msra.mxu0 %v1074_v16  ;;  %2468 = vmatprep.mubr.msk.bf16.mxu0 %vm595_vm0, %v2643_v15 }
  0x3b   : > { %2469 = vmatmul.mubr.msk.bf16.gmra.mrb[4].mxu0 %vm595_vm0, %v2644_v17 }
  0x3c   : > { %2472 = vmatprep.mubr.msk.bf16.mxu0 %vm595_vm0, %v2645_v18 }
  0x43   : > { %2473 = vmatmul.mubr.msk.bf16.gmra.mrb[8].mxu0 %vm595_vm0, %v2646_v19 }
  0x44   : > { %2476 = vmatprep.mubr.msk.bf16.mxu0 %vm595_vm0, %v2647_v20 }
  0x4b   : > { %2477 = vmatmul.mubr.msk.bf16.gmra.mrb[12].mxu0 %vm595_vm0, %v2648_v21 }
  0x4c   : > { %2482 = vmatprep.mubr.msk.bf16.mxu0 %vm1047_vm2, %v2649_v22 }
  0x53   : > { %2483 = vmatmul.mubr.msk.bf16.vlgmr.msra.gmra.mrb[0].mxu0 %vm1047_vm2, %v2650_v23 }
  0x54   : > { %2486 = vmatprep.mubr.msk.bf16.mxu0 %vm1047_vm2, %v2651_v24 }
  0x5b   : > { %2487 = vmatmul.mubr.msk.bf16.gmra.mrb[4].mxu0 %vm1047_vm2, %v2652_v25 }
  0x5c   : > { %2490 = vmatprep.mubr.msk.bf16.mxu0 %vm1047_vm2, %v2653_v26 }
  0x63   : > { %2491 = vmatmul.mubr.msk.bf16.gmra.mrb[8].mxu0 %vm1047_vm2, %v2654_v27  ;;  %v2283_v27 = vld [vmem:[%s3276_s9] ss:$0 sm:$0xff] }
  0x64   : > { %2494 = vmatprep.mubr.msk.bf16.mxu0 %vm1047_vm2, %v2655_v28 }
  0x6b   : > { %2495 = vmatmul.mubr.msk.bf16.gmra.mrb[12].mxu0 %vm1047_vm2, %v2656_v29 }
 0x126   : > { %v2484_v34 = vpop.f32.mrb[0].mxu0 }
 0x127   : > { %v1197_v35 = vadd.f32 %v2484_v34, %v2282_v33  ;;  %v1110_v36 = vpop.f32.mrb[1].mxu0 }
 0x128   : > { %v1195_v37 = vadd.f32 %v2282_v33, %v1110_v36  ;;  %v2485_v38 = vpop.f32.mrb[2].mxu0 }
 0x129   : > { %v1198_v39 = vadd.f32 %v2485_v38, %v2282_v33  ;;  %v1113_v40 = vpop.f32.mrb[3].mxu0  ;;  %v1213_v42 = vmax.f32 %v1197_v35, 0.0 }
 0x12a   : > { %v1196_v41 = vadd.f32 %v2282_v33, %v1113_v40  ;;  %v1211_v44 = vmax.f32 %v1195_v37, 0.0 }
 0x12b   : > { %v1214_v43 = vmax.f32 %v1198_v39, 0.0 }
 0x12c   : > { %v1212_v45 = vmax.f32 %v1196_v41, 0.0 }
 0x12d   : > { %v1228_v46 = vpack.c.bf16 %v1214_v43, %v1213_v42 }
 0x12e   : > { %v2488_v47 = vpop.f32.mrb[4].mxu0  ;;  %v1227_v48 = vpack.c.bf16 %v1212_v45, %v1211_v44 }
 0x12f   : > { %v1201_v49 = vadd.f32 %v2488_v47, %v2282_v33  ;;  %v1126_v50 = vpop.f32.mrb[5].mxu0 }
 0x130   : > { %v1199_v52 = vadd.f32 %v2282_v33, %v1126_v50  ;;  %v2489_v53 = vpop.f32.mrb[6].mxu0  ;;  %2502 = vmatprep.mubr.msk.bf16.mxu1 %vm595_vm0, %v1227_v48 }
 0x131   : > { %v1202_v54 = vadd.f32 %v2489_v53, %v2282_v33  ;;  %v1129_v55 = vpop.f32.mrb[7].mxu0  ;;  %2503 = vmatmul.mubr.msk.bf16.vlgmr.msra.gmra.mrb[0].mxu1 %vm595_vm0, %v1228_v46  ;;  %v1217_v57 = vmax.f32 %v1201_v49, 0.0 }
 0x132   : > { %v1200_v56 = vadd.f32 %v2282_v33, %v1129_v55  ;;  %2519 = vmatpush3.bf16.msra.mxu1 %v2659_v32  ;;  %v1215_v59 = vmax.f32 %v1199_v52, 0.0 }
 0x133   : > { %v1218_v58 = vmax.f32 %v1202_v54, 0.0  ;;  %2520 = vmatprep.subr.bf16.mxu1 %v2660_v51 }
 0x134   : > { %v1216_v60 = vmax.f32 %v1200_v56, 0.0 }
 0x135   : > { %v1230_v61 = vpack.c.bf16 %v1218_v58, %v1217_v57 }
 0x136   : > { %v1229_v62 = vpack.c.bf16 %v1216_v60, %v1215_v59  ;;  %v2492_v63 = vpop.f32.mrb[8].mxu0  ;;  %2521 = vmatpush3.bf16.msra.mxu1 %v2660_v51 }
 0x137   : > { %v1205_v0 = vadd.f32 %v2492_v63, %v2282_v33  ;;  %v1142_v1 = vpop.f32.mrb[9].mxu0 }
 0x138   : > { %v1203_v2 = vadd.f32 %v2282_v33, %v1142_v1  ;;  %v2493_v3 = vpop.f32.mrb[10].mxu0  ;;  %2506 = vmatprep.mubr.msk.bf16.mxu1 %vm595_vm0, %v1229_v62 }
 0x139   : > { %v1206_v4 = vadd.f32 %v2493_v3, %v2282_v33  ;;  %v1145_v5 = vpop.f32.mrb[11].mxu0  ;;  %2507 = vmatmul.mubr.msk.bf16.gmra.mrb[4].mxu1 %vm595_vm0, %v1230_v61  ;;  %v1221_v7 = vmax.f32 %v1205_v0, 0.0 }
 0x13a   : > { %v1204_v6 = vadd.f32 %v2282_v33, %v1145_v5  ;;  %v1219_v9 = vmax.f32 %v1203_v2, 0.0 }
 0x13b   : > { %v1222_v8 = vmax.f32 %v1206_v4, 0.0 }
 0x13c   : > { %v1220_v10 = vmax.f32 %v1204_v6, 0.0 }
 0x13d   : > { %v1232_v11 = vpack.c.bf16 %v1222_v8, %v1221_v7 }
 0x13e   : > { %v1231_v12 = vpack.c.bf16 %v1220_v10, %v1219_v9  ;;  %v2496_v13 = vpop.f32.mrb[12].mxu0 }
 0x13f   : > { %v1209_v14 = vadd.f32 %v2496_v13, %v2282_v33  ;;  %v1158_v15 = vpop.f32.mrb[13].mxu0 }
 0x140   : > { %v1207_v16 = vadd.f32 %v2282_v33, %v1158_v15  ;;  %v2497_v17 = vpop.f32.mrb[14].mxu0  ;;  %2510 = vmatprep.mubr.msk.bf16.mxu1 %vm595_vm0, %v1231_v12 }
 0x141   : > { %v1210_v18 = vadd.f32 %v2497_v17, %v2282_v33  ;;  %v1161_v19 = vpop.f32.mrb[15].mxu0  ;;  %2511 = vmatmul.mubr.msk.bf16.gmra.mrb[8].mxu1 %vm595_vm0, %v1232_v11  ;;  %v1225_v21 = vmax.f32 %v1209_v14, 0.0 }
 0x142   : > { %v1208_v20 = vadd.f32 %v2282_v33, %v1161_v19  ;;  %v1223_v23 = vmax.f32 %v1207_v16, 0.0 }
 0x143   : > { %v1226_v22 = vmax.f32 %v1210_v18, 0.0 }
 0x144   : > { %v1224_v24 = vmax.f32 %v1208_v20, 0.0  ;;  %v2294_v20 = vld [vmem:[%s3278_s11] ss:$0 sm:$0xff] }
 0x145   : > { %v1234_v25 = vpack.c.bf16 %v1226_v22, %v1225_v21 }
 0x146   : > { %v1233_v26 = vpack.c.bf16 %v1224_v24, %v1223_v23 }
 0x148   : > { %2514 = vmatprep.mubr.msk.bf16.mxu1 %vm595_vm0, %v1233_v26 }
 0x149   : > { %2515 = vmatmul.mubr.msk.bf16.gmra.mrb[12].mxu1 %vm595_vm0, %v1234_v25 }
 0x204   : > { %v2504_v28 = vpop.f32.mrb[0].mxu1 }
 0x205   : > { %v1320_v29 = vadd.f32 %v2504_v28, %v2283_v27  ;;  %v1311_v30 = vpop.f32.mrb[1].mxu1 }
 0x206   : > { %v1312_v31 = vadd.f32 %v2283_v27, %v1311_v30  ;;  %v2505_v32 = vpop.f32.mrb[2].mxu1 }
 0x207   : > { %v1323_v33 = vadd.f32 %v2505_v32, %v2283_v27  ;;  %v1314_v34 = vpop.f32.mrb[3].mxu1  ;;  %v1376_v36 = vmax.f32 %v1320_v29, 0.0 }
 0x208   : > { %v1315_v35 = vadd.f32 %v2283_v27, %v1314_v34  ;;  %v1374_v38 = vmax.f32 %v1312_v31, 0.0 }
 0x209   : > { %v1377_v37 = vmax.f32 %v1323_v33, 0.0 }
 0x20a   : > { %v1375_v39 = vmax.f32 %v1315_v35, 0.0 }
 0x20b   : > { %v1391_v40 = vpack.c.bf16 %v1377_v37, %v1376_v36 }
 0x20c   : > { %v1390_v41 = vpack.c.bf16 %v1375_v39, %v1374_v38  ;;  %v2508_v42 = vpop.f32.mrb[4].mxu1 }
 0x20d   : > { %v1336_v43 = vadd.f32 %v2508_v42, %v2283_v27  ;;  %v1327_v44 = vpop.f32.mrb[5].mxu1 }
 0x20e   : > { %v1328_v45 = vadd.f32 %v2283_v27, %v1327_v44  ;;  %v2509_v46 = vpop.f32.mrb[6].mxu1  ;;  %2522 = vmatprep.mubr.msk.bf16.mxu1 %vm595_vm0, %v1390_v41 }
 0x20f   : > { %v1339_v47 = vadd.f32 %v2509_v46, %v2283_v27  ;;  %v1330_v48 = vpop.f32.mrb[7].mxu1  ;;  %2523 = vmatmul.mubr.msk.bf16.vlgmr.msra.gmra.mrb[16].mxu1 %vm595_vm0, %v1391_v40  ;;  %v1380_v50 = vmax.f32 %v1336_v43, 0.0 }
 0x210   : > { %v1331_v49 = vadd.f32 %v2283_v27, %v1330_v48  ;;  %v1378_v52 = vmax.f32 %v1328_v45, 0.0 }
 0x211   : > { %v1381_v51 = vmax.f32 %v1339_v47, 0.0 }
 0x212   : > { %v1379_v53 = vmax.f32 %v1331_v49, 0.0 }
 0x213   : > { %v1393_v54 = vpack.c.bf16 %v1381_v51, %v1380_v50 }
 0x214   : > { %v1392_v55 = vpack.c.bf16 %v1379_v53, %v1378_v52  ;;  %v2512_v56 = vpop.f32.mrb[8].mxu1 }
 0x215   : > { %v1352_v57 = vadd.f32 %v2512_v56, %v2283_v27  ;;  %v1343_v58 = vpop.f32.mrb[9].mxu1 }
 0x216   : > { %v1344_v59 = vadd.f32 %v2283_v27, %v1343_v58  ;;  %v2513_v60 = vpop.f32.mrb[10].mxu1  ;;  %2526 = vmatprep.mubr.msk.bf16.mxu1 %vm595_vm0, %v1392_v55 }
 0x217   : > { %v1355_v61 = vadd.f32 %v2513_v60, %v2283_v27  ;;  %v1346_v62 = vpop.f32.mrb[11].mxu1  ;;  %2527 = vmatmul.mubr.msk.bf16.gmra.mrb[20].mxu1 %vm595_vm0, %v1393_v54  ;;  %v1384_v0 = vmax.f32 %v1352_v57, 0.0 }
 0x218   : > { %v1347_v63 = vadd.f32 %v2283_v27, %v1346_v62  ;;  %v1382_v2 = vmax.f32 %v1344_v59, 0.0 }
 0x219   : > { %v1385_v1 = vmax.f32 %v1355_v61, 0.0 }
 0x21a   : > { %v1383_v3 = vmax.f32 %v1347_v63, 0.0 }
 0x21b   : > { %v1395_v4 = vpack.c.bf16 %v1385_v1, %v1384_v0 }
 0x21c   : > { %v1394_v5 = vpack.c.bf16 %v1383_v3, %v1382_v2  ;;  %v2516_v6 = vpop.f32.mrb[12].mxu1 }
 0x21d   : > { %v1368_v7 = vadd.f32 %v2516_v6, %v2283_v27  ;;  %v1359_v8 = vpop.f32.mrb[13].mxu1 }
 0x21e   : > { %v1360_v9 = vadd.f32 %v2283_v27, %v1359_v8  ;;  %v2517_v10 = vpop.f32.mrb[14].mxu1  ;;  %2530 = vmatprep.mubr.msk.bf16.mxu1 %vm595_vm0, %v1394_v5 }
 0x21f   : > { %v1371_v11 = vadd.f32 %v2517_v10, %v2283_v27  ;;  %v1362_v12 = vpop.f32.mrb[15].mxu1  ;;  %2531 = vmatmul.mubr.msk.bf16.gmra.mrb[24].mxu1 %vm595_vm0, %v1395_v4  ;;  %v1388_v14 = vmax.f32 %v1368_v7, 0.0 }
 0x220   : > { %v1363_v13 = vadd.f32 %v2283_v27, %v1362_v12  ;;  %v1386_v16 = vmax.f32 %v1360_v9, 0.0 }
 0x221   : > { %v1389_v15 = vmax.f32 %v1371_v11, 0.0 }
 0x222   : > { %v1387_v17 = vmax.f32 %v1363_v13, 0.0 }
 0x223   : > { %v1397_v18 = vpack.c.bf16 %v1389_v15, %v1388_v14 }
 0x224   : > { %v1396_v19 = vpack.c.bf16 %v1387_v17, %v1386_v16 }
 0x226   : > { %2534 = vmatprep.mubr.msk.bf16.mxu1 %vm595_vm0, %v1396_v19 }
 0x227   : > { %2535 = vmatmul.mubr.msk.bf16.gmra.mrb[28].mxu1 %vm595_vm0, %v1397_v18 }
 0x2e2   : > { %v2524_v21 = vpop.f32.mrb[16].mxu1 }
 0x2e3   : > { %v2912_v22 = vadd.f32 %v2524_v21, %v2294_v20  ;;  %v1474_v23 = vpop.f32.mrb[17].mxu1 }
 0x2e4   : > { %v2914_v24 = vadd.f32 %v2294_v20, %v1474_v23  ;;  %v2525_v25 = vpop.f32.mrb[18].mxu1 }
 0x2e5   : > { %v2916_v26 = vadd.f32 %v2525_v25, %v2294_v20  ;;  %v1477_v27 = vpop.f32.mrb[19].mxu1  ;;  %v1543_v28 = vsel %vm595_vm0, %v2912_v22, 0.0 }
 0x2e6   : > { %v2920_v29 = vadd.f32 %v2294_v20, %v1477_v27  ;;  %1544 = vadd.xlane.f32.xlu1 %v1543_v28  ;;  %v1537_v30 = vsel %vm595_vm0, %v2914_v24, 0.0 }
 0x2e7   : > { %1538 = vadd.xlane.f32.xlu0 %v1537_v30  ;;  %v1546_v31 = vsel %vm595_vm0, %v2916_v26, 0.0 }
 0x2e8   : > { %v1540_v33 = vsel %vm595_vm0, %v2920_v29, 0.0 }
 0x2ea   : > { %1547 = vadd.xlane.f32.xlu1 %v1546_v31  ;;  %v2528_v32 = vpop.f32.mrb[20].mxu1 }
 0x2eb   : > { %v1490_v34 = vpop.f32.mrb[21].mxu1  ;;  %1541 = vadd.xlane.f32.xlu0 %v1540_v33  ;;  %v2930_v38 = vadd.f32 %v2528_v32, %v2294_v20 }
 0x2ec   : > { %v2928_v35 = vadd.f32 %v2294_v20, %v1490_v34  ;;  %v2529_v36 = vpop.f32.mrb[22].mxu1 }
 0x2ed   : > { %v1493_v37 = vpop.f32.mrb[23].mxu1  ;;  %v2936_v41 = vadd.f32 %v2529_v36, %v2294_v20  ;;  %v1555_v44 = vsel %vm595_vm0, %v2930_v38, 0.0 }
 0x2ee   : > { %v2932_v39 = vadd.f32 %v2294_v20, %v1493_v37  ;;  %v1549_v40 = vsel %vm595_vm0, %v2928_v35, 0.0 }
 0x2ef   : > { %1550 = vadd.xlane.f32.xlu0 %v1549_v40  ;;  %v1558_v48 = vsel %vm595_vm0, %v2936_v41, 0.0 }
 0x2f0   : > { %v1552_v42 = vsel %vm595_vm0, %v2932_v39, 0.0 }
 0x2f1   : > { %1553 = vadd.xlane.f32.xlu1 %v1552_v42 }
 0x2f2   : > { %v2532_v43 = vpop.f32.mrb[24].mxu1 }
 0x2f3   : > { %v1506_v45 = vpop.f32.mrb[25].mxu1  ;;  %1556 = vadd.xlane.f32.xlu0 %v1555_v44  ;;  %v2946_v50 = vadd.f32 %v2532_v43, %v2294_v20 }
 0x2f4   : > { %v2942_v46 = vadd.f32 %v2294_v20, %v1506_v45  ;;  %v2533_v47 = vpop.f32.mrb[26].mxu1 }
 0x2f5   : > { %v1509_v49 = vpop.f32.mrb[27].mxu1  ;;  %1559 = vadd.xlane.f32.xlu1 %v1558_v48  ;;  %v2952_v53 = vadd.f32 %v2533_v47, %v2294_v20  ;;  %v1567_v56 = vsel %vm595_vm0, %v2946_v50, 0.0 }
 0x2f6   : > { %v2948_v51 = vadd.f32 %v2294_v20, %v1509_v49  ;;  %v1561_v52 = vsel %vm595_vm0, %v2942_v46, 0.0 }
 0x2f7   : > { %1562 = vadd.xlane.f32.xlu0 %v1561_v52  ;;  %v1570_v60 = vsel %vm595_vm0, %v2952_v53, 0.0 }
 0x2f8   : > { %v1564_v54 = vsel %vm595_vm0, %v2948_v51, 0.0 }
 0x2f9   : > { %1565 = vadd.xlane.f32.xlu1 %v1564_v54 }
 0x2fa   : > { %v2536_v55 = vpop.f32.mrb[28].mxu1 }
 0x2fb   : > { %1568 = vadd.xlane.f32.xlu0 %v1567_v56  ;;  %v1522_v57 = vpop.f32.mrb[29].mxu1  ;;  %v2962_v62 = vadd.f32 %v2536_v55, %v2294_v20 }
 0x2fc   : > { %v2958_v58 = vadd.f32 %v2294_v20, %v1522_v57  ;;  %v2537_v59 = vpop.f32.mrb[30].mxu1 }
 0x2fd   : > { %1571 = vadd.xlane.f32.xlu1 %v1570_v60  ;;  %v1525_v61 = vpop.f32.mrb[31].mxu1  ;;  %v2968_v1 = vadd.f32 %v2537_v59, %v2294_v20  ;;  %v1579_v3 = vsel %vm595_vm0, %v2962_v62, 0.0 }
 0x2fe   : > { %v2964_v63 = vadd.f32 %v2294_v20, %v1525_v61  ;;  %v1573_v0 = vsel %vm595_vm0, %v2958_v58, 0.0 }
 0x2ff   : > { %1574 = vadd.xlane.f32.xlu0 %v1573_v0  ;;  %v1582_v4 = vsel %vm595_vm0, %v2968_v1, 0.0 }
 0x300   : > { %v1576_v2 = vsel %vm595_vm0, %v2964_v63, 0.0 }
 0x301   : > { %1577 = vadd.xlane.f32.xlu1 %v1576_v2 }
 0x303   : > { %1580 = vadd.xlane.f32.xlu0 %v1579_v3 }
 0x305   : > { %1583 = vadd.xlane.f32.xlu1 %v1582_v4 }
 0x373   : > { %v1545_v5 = vpop.xlane.xlu1 %1544 }
 0x374   : > { %v1588_v6 = vmul.f32 0.03125, %v1545_v5  ;;  %v1539_v7 = vpop.xlane.xlu0 %1538 }
 0x375   : > { %v1586_v8 = vmul.f32 0.03125, %v1539_v7 }
 0x376   : > { %v2977_v9 = vsub.f32 %v2912_v22, %v1588_v6 }
 0x377   : > { %v2980_v10 = vsub.f32 %v2914_v24, %v1586_v8  ;;  %v1548_v11 = vpop.xlane.xlu1 %1547 }
 0x378   : > { %v1589_v12 = vmul.f32 0.03125, %v1548_v11  ;;  %v1542_v13 = vpop.xlane.xlu0 %1541  ;;  %v1620_v19 = vmul.f32 %v2977_v9, %v2977_v9 }
 0x379   : > { %v1587_v14 = vmul.f32 0.03125, %v1542_v13  ;;  %v1618_v15 = vmul.f32 %v2980_v10, %v2980_v10 }
 0x37a   : > { %v2985_v16 = vsub.f32 %v2916_v26, %v1589_v12  ;;  %v1640_v28 = vsel %vm595_vm0, %v1620_v19, 0.0 }
 0x37b   : > { %v2988_v17 = vsub.f32 %v2920_v29, %v1587_v14  ;;  %v1634_v18 = vsel %vm595_vm0, %v1618_v15, 0.0 }
 0x37c   : > { %v1551_v20 = vpop.xlane.xlu0 %1550  ;;  %1635 = vadd.xlane.f32.xlu0 %v1634_v18  ;;  %v1621_v24 = vmul.f32 %v2985_v16, %v2985_v16 }
 0x37d   : > { %v1590_v21 = vmul.f32 0.03125, %v1551_v20  ;;  %v1619_v22 = vmul.f32 %v2988_v17, %v2988_v17 }
 0x37e   : > { %v1554_v23 = vpop.xlane.xlu1 %1553  ;;  %v1643_v34 = vsel %vm595_vm0, %v1621_v24, 0.0 }
 0x37f   : > { %v2998_v25 = vsub.f32 %v2928_v35, %v1590_v21  ;;  %v1591_v26 = vmul.f32 0.03125, %v1554_v23  ;;  %v1637_v27 = vsel %vm595_vm0, %v1619_v22, 0.0 }
 0x380   : > { %v1557_v29 = vpop.xlane.xlu0 %1556  ;;  %1638 = vadd.xlane.f32.xlu1 %v1637_v27  ;;  %1641 = vadd.xlane.f32.xlu0 %v1640_v28  ;;  %v1791_v27 = vlaneseq }
 0x381   : > { %v3003_v30 = vsub.f32 %v2932_v39, %v1591_v26  ;;  %v1592_v31 = vmul.f32 0.03125, %v1557_v29  ;;  %v1622_v32 = vmul.f32 %v2998_v25, %v2998_v25 }
 0x382   : > { %v1560_v33 = vpop.xlane.xlu1 %1559 }
 0x383   : > { %v3009_v35 = vsub.f32 %v2930_v38, %v1592_v31  ;;  %v1593_v36 = vmul.f32 0.03125, %v1560_v33  ;;  %v1646_v37 = vsel %vm595_vm0, %v1622_v32, 0.0  ;;  %v1623_v40 = vmul.f32 %v3003_v30, %v3003_v30  ;;  %v2307_v32 = vld [vmem:[%s537_s18] ss:$0 sm:$0xff] }
 0x384   : > { %v1563_v42 = vpop.xlane.xlu0 %1562  ;;  %1644 = vadd.xlane.f32.xlu1 %v1643_v34  ;;  %1647 = vadd.xlane.f32.xlu0 %v1646_v37 }
 0x385   : > { %v3015_v39 = vsub.f32 %v2936_v41, %v1593_v36  ;;  %v1594_v43 = vmul.f32 0.03125, %v1563_v42  ;;  %v1624_v44 = vmul.f32 %v3009_v35, %v3009_v35  ;;  %v1649_v38 = vsel %vm595_vm0, %v1623_v40, 0.0 }
 0x386   : > { %v1566_v45 = vpop.xlane.xlu1 %1565  ;;  %v2717_v36 = vmov 1.0|1.0  }
 0x387   : > { %v3021_v47 = vsub.f32 %v2942_v46, %v1594_v43  ;;  %v1595_v48 = vmul.f32 0.03125, %v1566_v45  ;;  %v1652_v49 = vsel %vm595_vm0, %v1624_v44, 0.0  ;;  %v1625_v52 = vmul.f32 %v3015_v39, %v3015_v39 }
 0x388   : > { %v1569_v54 = vpop.xlane.xlu0 %1568  ;;  %1650 = vadd.xlane.f32.xlu1 %v1649_v38  ;;  %1653 = vadd.xlane.f32.xlu0 %v1652_v49 }
 0x389   : > { %v3027_v41 = vsub.f32 %v2948_v51, %v1595_v48  ;;  %v1596_v55 = vmul.f32 0.03125, %v1569_v54  ;;  %v1626_v56 = vmul.f32 %v3021_v47, %v3021_v47  ;;  %v1655_v46 = vsel %vm595_vm0, %v1625_v52, 0.0 }
 0x38a   : > { %v1572_v57 = vpop.xlane.xlu1 %1571 }
 0x38b   : > { %v3033_v59 = vsub.f32 %v2946_v50, %v1596_v55  ;;  %v1597_v60 = vmul.f32 0.03125, %v1572_v57  ;;  %v1658_v61 = vsel %vm595_vm0, %v1626_v56, 0.0  ;;  %v1627_v0 = vmul.f32 %v3027_v41, %v3027_v41 }
 0x38c   : > { %1656 = vadd.xlane.f32.xlu1 %v1655_v46  ;;  %1659 = vadd.xlane.f32.xlu0 %v1658_v61  ;;  %v1575_v51 = vpop.xlane.xlu0 %1574 }
 0x38d   : > { %v3039_v2 = vsub.f32 %v2952_v53, %v1597_v60  ;;  %v1598_v3 = vmul.f32 0.03125, %v1575_v51  ;;  %v1628_v4 = vmul.f32 %v3033_v59, %v3033_v59  ;;  %v1661_v50 = vsel %vm595_vm0, %v1627_v0, 0.0 }
 0x38e   : > { %v1578_v5 = vpop.xlane.xlu1 %1577  ;;  %v2718_v0 = vmov 0.0  }
 0x38f   : > { %v3045_v6 = vsub.f32 %v2958_v58, %v1598_v3  ;;  %v1599_v7 = vmul.f32 0.03125, %v1578_v5  ;;  %v1664_v8 = vsel %vm595_vm0, %v1628_v4, 0.0  ;;  %v1629_v11 = vmul.f32 %v3039_v2, %v3039_v2  ;;  %598 = vst.msk [vmem:[#allocation2 + $0x10] sm:$0xff] %vm595_vm0, %v2718_v0  ;;  %596 = vst.msk [vmem:[#allocation2] sm:$0xff] %vm595_vm0, %v2718_v0 }
 0x390   : > { %1662 = vadd.xlane.f32.xlu1 %v1661_v50  ;;  %1665 = vadd.xlane.f32.xlu0 %v1664_v8  ;;  %v1581_v53 = vpop.xlane.xlu0 %1580  ;;  %597 = vst.msk [vmem:[#allocation2 + $0x8] sm:$0xff] %vm595_vm0, %v2718_v0  ;;  %599 = vst.msk [vmem:[#allocation2 + $0x18] sm:$0xff] %vm595_vm0, %v2718_v0 }
 0x391   : > { %v3051_v12 = vsub.f32 %v2964_v63, %v1599_v7  ;;  %v1600_v13 = vmul.f32 0.03125, %v1581_v53  ;;  %v1630_v14 = vmul.f32 %v3045_v6, %v3045_v6  ;;  %v1667_v58 = vsel %vm595_vm0, %v1629_v11, 0.0  ;;  %600 = vst.msk [vmem:[#allocation2 + $0x20] sm:$0xff] %vm595_vm0, %v2718_v0  ;;  %601 = vst.msk [vmem:[#allocation2 + $0x28] sm:$0xff] %vm595_vm0, %v2718_v0 }
 0x392   : > { %v1584_v15 = vpop.xlane.xlu1 %1583  ;;  %602 = vst.msk [vmem:[#allocation2 + $0x30] sm:$0xff] %vm595_vm0, %v2718_v0  ;;  %603 = vst.msk [vmem:[#allocation2 + $0x38] sm:$0xff] %vm595_vm0, %v2718_v0 }
 0x393   : > { %v3057_v18 = vsub.f32 %v2962_v62, %v1600_v13  ;;  %v1601_v19 = vmul.f32 0.03125, %v1584_v15  ;;  %v1670_v20 = vsel %vm595_vm0, %v1630_v14, 0.0  ;;  %v1631_v21 = vmul.f32 %v3051_v12, %v3051_v12  ;;  %604 = vst.msk [vmem:[#allocation2 + $0x40] sm:$0xff] %vm595_vm0, %v2718_v0  ;;  %605 = vst.msk [vmem:[#allocation2 + $0x48] sm:$0xff] %vm595_vm0, %v2718_v0 }
 0x394   : > { %1668 = vadd.xlane.f32.xlu1 %v1667_v58  ;;  %1671 = vadd.xlane.f32.xlu0 %v1670_v20  ;;  %606 = vst.msk [vmem:[#allocation2 + $0x50] sm:$0xff] %vm595_vm0, %v2718_v0  ;;  %607 = vst.msk [vmem:[#allocation2 + $0x58] sm:$0xff] %vm595_vm0, %v2718_v0 }
 0x395   : > { %v3063_v63 = vsub.f32 %v2968_v1, %v1601_v19  ;;  %v1632_v22 = vmul.f32 %v3057_v18, %v3057_v18  ;;  %v1673_v23 = vsel %vm595_vm0, %v1631_v21, 0.0  ;;  %v1792_v1 = vshrl.u32 %v1791_v27, 7  ;;  %608 = vst.msk [vmem:[#allocation2 + $0x60] sm:$0xff] %vm595_vm0, %v2718_v0  ;;  %609 = vst.msk [vmem:[#allocation2 + $0x68] sm:$0xff] %vm595_vm0, %v2718_v0 }
 0x396   : > { %610 = vst.msk [vmem:[#allocation2 + $0x70] sm:$0xff] %vm595_vm0, %v2718_v0  ;;  %611 = vst.msk [vmem:[#allocation2 + $0x78] sm:$0xff] %vm595_vm0, %v2718_v0  ;;  %v1868_v37 = vld [vmem:[#allocation2] sm:$0xff] }
 0x397   : > { %v1676_v62 = vsel %vm595_vm0, %v1632_v22, 0.0  ;;  %v1633_v24 = vmul.f32 %v3063_v63, %v3063_v63  ;;  %v1793_v28 = vadd.s32 8, %v1792_v1  ;;  %v1794_v29 = vadd.s32 16, %v1792_v1  ;;  %v1871_v44 = vld [vmem:[#allocation2 + $0x18] sm:$0xff] }
 0x398   : > { %1674 = vadd.xlane.f32.xlu1 %v1673_v23  ;;  %1677 = vadd.xlane.f32.xlu0 %v1676_v62  ;;  %v1795_v31 = vadd.s32 24, %v1792_v1  ;;  %vm1812_vm3 = vcmp.eq.s32.totalorder %v1792_v1, %v2307_v32  ;;  %v1796_v33 = vadd.s32 32, %v1792_v1  ;;  %v1797_v34 = vadd.s32 40, %v1792_v1  ;;  %v1872_v61 = vld [vmem:[#allocation2 + $0x20] sm:$0xff] }
 0x399   : > { %v1679_v26 = vsel %vm595_vm0, %v1633_v24, 0.0  ;;  %vm1813_vm4 = vcmp.eq.s32.totalorder %v1793_v28, %v2307_v32  ;;  %vm1814_vm5 = vcmp.eq.s32.totalorder %v1794_v29, %v2307_v32  ;;  %v1798_v40 = vadd.s32 48, %v1792_v1 }
 0x39a   : > { %vm1815_vm6 = vcmp.eq.s32.totalorder %v1795_v31, %v2307_v32  ;;  %vm2324_vm7 = vmpackc.low %vm1813_vm4, %vm1812_vm3  ;;  %v1799_v42 = vadd.s32 56, %v1792_v1  ;;  %vm1816_vm9 = vcmp.eq.s32.totalorder %v1796_v33, %v2307_v32  ;;  %vm1817_vm10 = vcmp.eq.s32.totalorder %v1797_v34, %v2307_v32  ;;  %v3129_v33 = vld [vmem:[%s3279_s12] ss:$0 sm:$0xff] }
 0x39b   : > { %2554 = vmatprep.mubr.msk.bf16.mxu1 %vm2324_vm7, %v2717_v36  ;;  %vm3081_vm8 = vmpackc.low %vm1815_vm6, %vm1814_vm5  ;;  %vm1818_vm12 = vcmp.eq.s32.totalorder %v1798_v40, %v2307_v32  ;;  %v1800_v45 = vadd.s32 64, %v1792_v1  ;;  %v1801_v38 = vadd.s32 72, %v1792_v1  ;;  %v1802_v48 = vadd.s32 80, %v1792_v1 }
 0x39c   : > { %1680 = vadd.xlane.f32.xlu1 %v1679_v26  ;;  %vm3085_vm11 = vmpackc.low %vm1817_vm10, %vm1816_vm9  ;;  %vm1819_vm13 = vcmp.eq.s32.totalorder %v1799_v42, %v2307_v32  ;;  %v1803_v49 = vadd.s32 88, %v1792_v1  ;;  %v1804_v55 = vadd.s32 96, %v1792_v1  ;;  %v1805_v56 = vadd.s32 104, %v1792_v1 }
 0x39d   : > { %vm3089_vm14 = vmpackc.low %vm1819_vm13, %vm1818_vm12  ;;  %vm1820_vm15 = vcmp.eq.s32.totalorder %v1800_v45, %v2307_v32  ;;  %vm1821_vm1 = vcmp.eq.s32.totalorder %v1801_v38, %v2307_v32  ;;  %vm1822_vm3 = vcmp.eq.s32.totalorder %v1802_v48, %v2307_v32  ;;  %v1806_v57 = vadd.s32 112, %v1792_v1 }
 0x39e   : > { %vm3093_vm2 = vmpackc.low %vm1821_vm1, %vm1820_vm15  ;;  %vm1823_vm4 = vcmp.eq.s32.totalorder %v1803_v49, %v2307_v32  ;;  %v1807_v46 = vadd.s32 120, %v1792_v1  ;;  %vm1824_vm6 = vcmp.eq.s32.totalorder %v1804_v55, %v2307_v32  ;;  %vm1825_vm7 = vcmp.eq.s32.totalorder %v1805_v56, %v2307_v32 }
 0x39f   : > { %vm3097_vm5 = vmpackc.low %vm1823_vm4, %vm1822_vm3  ;;  %vm1826_vm10 = vcmp.eq.s32.totalorder %v1806_v57, %v2307_v32  ;;  %v3136_v57 = vld [vmem:[%s3280_s13] ss:$0 sm:$0xff] }
 0x3a0   : > { %vm3101_vm9 = vmpackc.low %vm1825_vm7, %vm1824_vm6  ;;  %vm1827_vm12 = vcmp.eq.s32.totalorder %v1807_v46, %v2307_v32 }
 0x3a1   : > { %vm3105_vm13 = vmpackc.low %vm1827_vm12, %vm1826_vm10 }
 0x409   : > { %v1636_v51 = vpop.xlane.xlu0 %1635 }
 0x40a   : > { %v1682_v3 = vmul.f32 0.03125, %v1636_v51 }
 0x40c   : > { %v1698_v4 = vadd.f32 1e-05, %v1682_v3 }
 0x40d   : > { %v1639_v5 = vpop.xlane.xlu1 %1638  ;;  %v1642_v50 = vpop.xlane.xlu0 %1641 }
 0x40e   : > { %2661 = vrsqrt.f32 %v1698_v4  ;;  %v1683_v7 = vmul.f32 0.03125, %v1639_v5  ;;  %v1684_v8 = vmul.f32 0.03125, %v1642_v50 }
 0x410   : > { %v1699_v11 = vadd.f32 1e-05, %v1683_v7  ;;  %v1700_v53 = vadd.f32 1e-05, %v1684_v8 }
 0x411   : > { %v1645_v13 = vpop.xlane.xlu1 %1644  ;;  %v1648_v14 = vpop.xlane.xlu0 %1647 }
 0x412   : > { %2663 = vrsqrt.f32 %v1699_v11  ;;  %v1685_v15 = vmul.f32 0.03125, %v1645_v13  ;;  %v1686_v58 = vmul.f32 0.03125, %v1648_v14 }
 0x413   : > { %2665 = vrsqrt.f32 %v1700_v53 }
 0x414   : > { %v1701_v19 = vadd.f32 1e-05, %v1685_v15  ;;  %v1702_v20 = vadd.f32 1e-05, %v1686_v58 }
 0x415   : > { %v1651_v21 = vpop.xlane.xlu1 %1650  ;;  %v1654_v22 = vpop.xlane.xlu0 %1653 }
 0x416   : > { %2667 = vrsqrt.f32 %v1701_v19  ;;  %v1687_v23 = vmul.f32 0.03125, %v1651_v21  ;;  %v1688_v62 = vmul.f32 0.03125, %v1654_v22 }
 0x417   : > { %2669 = vrsqrt.f32 %v1702_v20 }
 0x418   : > { %v2662_v24 = vpop.eup %2661  ;;  %v1703_v26 = vadd.f32 1e-05, %v1687_v23  ;;  %v1704_v27 = vadd.f32 1e-05, %v1688_v62 }
 0x419   : > { %v1657_v1 = vpop.xlane.xlu1 %1656  ;;  %v1660_v28 = vpop.xlane.xlu0 %1659  ;;  %v1730_v29 = vmul.f32 %v2662_v24, %v2980_v10 }
 0x41a   : > { %2671 = vrsqrt.f32 %v1703_v26  ;;  %v1689_v31 = vmul.f32 0.03125, %v1657_v1  ;;  %v1690_v32 = vmul.f32 0.03125, %v1660_v28 }
 0x41b   : > { %2673 = vrsqrt.f32 %v1704_v27  ;;  %v1752_v55 = vmul.f32 %v3129_v33, %v1730_v29 }
 0x41c   : > { %v2664_v34 = vpop.eup %2663  ;;  %v1705_v40 = vadd.f32 1e-05, %v1689_v31  ;;  %v1706_v42 = vadd.f32 1e-05, %v1690_v32 }
 0x41d   : > { %v2666_v45 = vpop.eup %2665  ;;  %v1663_v38 = vpop.xlane.xlu1 %1662  ;;  %v1731_v49 = vmul.f32 %v2664_v34, %v2988_v17  ;;  %v1774_v7 = vadd.f32 %v3136_v57, %v1752_v55 }
 0x41e   : > { %v1666_v48 = vpop.xlane.xlu0 %1665  ;;  %2675 = vrsqrt.f32 %v1705_v40  ;;  %v1691_v10 = vmul.f32 0.03125, %v1663_v38  ;;  %v1732_v46 = vmul.f32 %v2666_v45, %v2977_v9 }
 0x41f   : > { %v1692_v56 = vmul.f32 0.03125, %v1666_v48  ;;  %2677 = vrsqrt.f32 %v1706_v42  ;;  %v1753_v0 = vmul.f32 %v3129_v33, %v1731_v49 }
 0x420   : > { %v2668_v51 = vpop.eup %2667  ;;  %v1707_v3 = vadd.f32 1e-05, %v1691_v10  ;;  %v1754_v53 = vmul.f32 %v3129_v33, %v1732_v46 }
 0x421   : > { %v1708_v4 = vadd.f32 1e-05, %v1692_v56  ;;  %v2670_v5 = vpop.eup %2669  ;;  %v1669_v17 = vpop.xlane.xlu1 %1668  ;;  %v1775_v8 = vadd.f32 %v3136_v57, %v1753_v0  ;;  %v1733_v11 = vmul.f32 %v2668_v51, %v2985_v16 }
 0x422   : > { %v1672_v50 = vpop.xlane.xlu0 %1671  ;;  %2679 = vrsqrt.f32 %v1707_v3  ;;  %v1693_v13 = vmul.f32 0.03125, %v1669_v17  ;;  %v1734_v58 = vmul.f32 %v2670_v5, %v2998_v25  ;;  %v1776_v16 = vadd.f32 %v3136_v57, %v1754_v53 }
 0x423   : > { %v1694_v9 = vmul.f32 0.03125, %v1672_v50  ;;  %2681 = vrsqrt.f32 %v1708_v4  ;;  %v1884_v14 = vpack.c.bf16 %v1775_v8, %v1774_v7  ;;  %v1755_v15 = vmul.f32 %v3129_v33, %v1733_v11 }
 0x424   : > { %v2672_v19 = vpop.eup %2671  ;;  %v1709_v20 = vadd.f32 1e-05, %v1693_v13  ;;  %v1756_v27 = vmul.f32 %v3129_v33, %v1734_v58 }
 0x425   : > { %v1710_v21 = vadd.f32 1e-05, %v1694_v9  ;;  %v2674_v22 = vpop.eup %2673  ;;  %v1675_v23 = vpop.xlane.xlu1 %1674  ;;  %2538 = vmatprep.subr.bf16.mxu1 %v1884_v14  ;;  %v1777_v24 = vadd.f32 %v3136_v57, %v1755_v15  ;;  %v1735_v26 = vmul.f32 %v2672_v19, %v3003_v30 }
 0x426   : > { %v1678_v62 = vpop.xlane.xlu0 %1677  ;;  %2683 = vrsqrt.f32 %v1709_v20  ;;  %v1695_v1 = vmul.f32 0.03125, %v1675_v23  ;;  %2539 = vmatpush3.bf16.msra.mxu1 %v1884_v14  ;;  %v1736_v25 = vmul.f32 %v2674_v22, %v3009_v35  ;;  %v1778_v30 = vadd.f32 %v3136_v57, %v1756_v27 }
 0x427   : > { %v1696_v28 = vmul.f32 0.03125, %v1678_v62  ;;  %2685 = vrsqrt.f32 %v1710_v21  ;;  %v1885_v29 = vpack.c.bf16 %v1777_v24, %v1776_v16  ;;  %v1757_v31 = vmul.f32 %v3129_v33, %v1735_v26 }
 0x428   : > { %v2676_v32 = vpop.eup %2675  ;;  %v1711_v34 = vadd.f32 1e-05, %v1695_v1  ;;  %v1758_v49 = vmul.f32 %v3129_v33, %v1736_v25 }
 0x429   : > { %v1712_v40 = vadd.f32 1e-05, %v1696_v28  ;;  %v2678_v42 = vpop.eup %2677  ;;  %v1681_v45 = vpop.xlane.xlu1 %1680  ;;  %2540 = vmatprep.subr.bf16.mxu1 %v1885_v29  ;;  %v1779_v38 = vadd.f32 %v3136_v57, %v1757_v31  ;;  %v1737_v48 = vmul.f32 %v2676_v32, %v3015_v39 }
 0x42a   : > { %2687 = vrsqrt.f32 %v1711_v34  ;;  %v1697_v35 = vmul.f32 0.03125, %v1681_v45  ;;  %2541 = vmatpush3.bf16.msra.mxu1 %v1885_v29  ;;  %v1738_v55 = vmul.f32 %v2678_v42, %v3021_v47  ;;  %v1780_v3 = vadd.f32 %v3136_v57, %v1758_v49 }
 0x42b   : > { %2689 = vrsqrt.f32 %v1712_v40  ;;  %v1886_v10 = vpack.c.bf16 %v1779_v38, %v1778_v30  ;;  %v1759_v56 = vmul.f32 %v3129_v33, %v1737_v48  ;;  %v1875_v40 = vld [vmem:[#allocation2 + $0x38] sm:$0xff]  ;;  %v1873_v30 = vld [vmem:[#allocation2 + $0x28] sm:$0xff] }
 0x42c   : > { %v2680_v46 = vpop.eup %2679  ;;  %v1713_v0 = vadd.f32 1e-05, %v1697_v35  ;;  %v1760_v5 = vmul.f32 %v3129_v33, %v1738_v55 }
 0x42d   : > { %v2682_v51 = vpop.eup %2681  ;;  %2542 = vmatprep.subr.bf16.mxu1 %v1886_v10  ;;  %v1781_v4 = vadd.f32 %v3136_v57, %v1759_v56  ;;  %v1739_v39 = vmul.f32 %v2680_v46, %v3027_v41 }
 0x42e   : > { %2691 = vrsqrt.f32 %v1713_v0  ;;  %2543 = vmatpush3.bf16.msra.mxu1 %v1886_v10  ;;  %v1740_v47 = vmul.f32 %v2682_v51, %v3033_v59  ;;  %v1782_v11 = vadd.f32 %v3136_v57, %v1760_v5  ;;  %v1878_v5 = vld [vmem:[#allocation2 + $0x50] sm:$0xff] }
 0x42f   : > { %v1887_v17 = vpack.c.bf16 %v1781_v4, %v1780_v3  ;;  %v1761_v50 = vmul.f32 %v3129_v33, %v1739_v39 }
 0x430   : > { %v2684_v7 = vpop.eup %2683  ;;  %v1762_v41 = vmul.f32 %v3129_v33, %v1740_v47  ;;  %v1876_v47 = vld [vmem:[#allocation2 + $0x40] sm:$0xff] }
 0x431   : > { %v2686_v8 = vpop.eup %2685  ;;  %2544 = vmatprep.subr.bf16.mxu1 %v1887_v17  ;;  %v1783_v53 = vadd.f32 %v3136_v57, %v1761_v50  ;;  %v1741_v13 = vmul.f32 %v2684_v7, %v3039_v2  ;;  %v1879_v50 = vld [vmem:[#allocation2 + $0x58] sm:$0xff] }
 0x432   : > { %2545 = vmatpush3.bf16.msra.mxu1 %v1887_v17  ;;  %v1742_v9 = vmul.f32 %v2686_v8, %v3045_v6  ;;  %v1784_v19 = vadd.f32 %v3136_v57, %v1762_v41 }
 0x433   : > { %v1888_v14 = vpack.c.bf16 %v1783_v53, %v1782_v11  ;;  %v1763_v59 = vmul.f32 %v3129_v33, %v1741_v13  ;;  %v1877_v11 = vld [vmem:[#allocation2 + $0x48] sm:$0xff] }
 0x434   : > { %v2688_v15 = vpop.eup %2687  ;;  %v1764_v22 = vmul.f32 %v3129_v33, %v1742_v9 }
 0x435   : > { %v2690_v58 = vpop.eup %2689  ;;  %2546 = vmatprep.subr.bf16.mxu1 %v1888_v14  ;;  %v1785_v20 = vadd.f32 %v3136_v57, %v1763_v59  ;;  %v1743_v21 = vmul.f32 %v2688_v15, %v3051_v12 }
 0x436   : > { %2547 = vmatpush3.bf16.msra.mxu1 %v1888_v14  ;;  %v1744_v2 = vmul.f32 %v2690_v58, %v3057_v18  ;;  %v1786_v16 = vadd.f32 %v3136_v57, %v1764_v22 }
 0x437   : > { %v1889_v23 = vpack.c.bf16 %v1785_v20, %v1784_v19  ;;  %v1765_v6 = vmul.f32 %v3129_v33, %v1743_v21 }
 0x438   : > { %v2692_v62 = vpop.eup %2691  ;;  %v1766_v27 = vmul.f32 %v3129_v33, %v1744_v2 }
 0x439   : > { %2548 = vmatprep.subr.bf16.mxu1 %v1889_v23  ;;  %v1787_v24 = vadd.f32 %v3136_v57, %v1765_v6  ;;  %v1745_v26 = vmul.f32 %v2692_v62, %v3063_v63  ;;  %v1870_v63 = vld [vmem:[#allocation2 + $0x10] sm:$0xff]  ;;  %v1880_v6 = vld [vmem:[#allocation2 + $0x60] sm:$0xff] }
 0x43a   : > { %2549 = vmatpush3.bf16.msra.mxu1 %v1889_v23  ;;  %v1788_v18 = vadd.f32 %v3136_v57, %v1766_v27  ;;  %v1882_v23 = vld [vmem:[#allocation2 + $0x70] sm:$0xff]  ;;  %v1881_v27 = vld [vmem:[#allocation2 + $0x68] sm:$0xff] }
 0x43b   : > { %v1890_v12 = vpack.c.bf16 %v1787_v24, %v1786_v16  ;;  %v1767_v1 = vmul.f32 %v3129_v33, %v1745_v26  ;;  %v1883_v16 = vld [vmem:[#allocation2 + $0x78] sm:$0xff] }
 0x43d   : > { %2550 = vmatprep.subr.bf16.mxu1 %v1890_v12  ;;  %v1789_v28 = vadd.f32 %v3136_v57, %v1767_v1  ;;  %v1869_v57 = vld [vmem:[#allocation2 + $0x8] sm:$0xff] }
 0x43e   : > { %2551 = vmatpush3.bf16.msra.mxu1 %v1890_v12 }
 0x43f   : > { %v1891_v25 = vpack.c.bf16 %v1789_v28, %v1788_v18 }
 0x441   : > { %2552 = vmatprep.subr.bf16.mxu1 %v1891_v25 }
 0x442   : > { %2553 = vmatpush3.bf16.msra.mxu1 %v1891_v25 }
 0x445   : > { %2555 = vmatmul.mubr.msk.bf16.vlgmr.msra.gmra.mrb[32].mxu1 %vm3081_vm8, %v2717_v36  ;;  %vm2104_vm8 = vcmask 257024  }
 0x446   : > { %2558 = vmatprep.mubr.msk.bf16.mxu1 %vm3085_vm11, %v2717_v36 }
 0x44d   : > { %2559 = vmatmul.mubr.msk.bf16.gmra.mrb[36].mxu1 %vm3089_vm14, %v2717_v36 }
 0x44e   : > { %2562 = vmatprep.mubr.msk.bf16.mxu1 %vm3093_vm2, %v2717_v36 }
 0x455   : > { %2563 = vmatmul.mubr.msk.bf16.gmra.mrb[40].mxu1 %vm3097_vm5, %v2717_v36 }
 0x456   : > { %2566 = vmatprep.mubr.msk.bf16.mxu1 %vm3101_vm9, %v2717_v36 }
 0x45d   : > { %2567 = vmatmul.mubr.msk.bf16.gmra.mrb[44].mxu1 %vm3105_vm13, %v2717_v36  ;;  %v1874_v36 = vld [vmem:[#allocation2 + $0x30] sm:$0xff] }
 0x518   : > { %v2556_v43 = vpop.f32.mrb[32].mxu1 }
 0x519   : > { %v1991_v33 = vadd.f32 %v2556_v43, %v1870_v63  ;;  %v1926_v52 = vpop.f32.mrb[33].mxu1 }
 0x51a   : > { %v1989_v29 = vadd.f32 %v1926_v52, %v1868_v37  ;;  %v2557_v31 = vpop.f32.mrb[34].mxu1 }
 0x51b   : > { %2007 = vst.msk [vmem:[#allocation2 + $0x10] sm:$0xff] %vm595_vm0, %v1991_v33  ;;  %v1992_v54 = vadd.f32 %v2557_v31, %v1871_v44  ;;  %v1929_v32 = vpop.f32.mrb[35].mxu1 }
 0x51c   : > { %2005 = vst.msk [vmem:[#allocation2] sm:$0xff] %vm595_vm0, %v1989_v29  ;;  %v1990_v60 = vadd.f32 %v1929_v32, %v1869_v57 }
 0x51d   : > { %2008 = vst.msk [vmem:[#allocation2 + $0x18] sm:$0xff] %vm595_vm0, %v1992_v54 }
 0x51e   : > { %2006 = vst.msk [vmem:[#allocation2 + $0x8] sm:$0xff] %vm595_vm0, %v1990_v60 }
 0x520   : > { %v2560_v34 = vpop.f32.mrb[36].mxu1 }
 0x521   : > { %v1995_v42 = vadd.f32 %v2560_v34, %v1874_v36  ;;  %v1942_v45 = vpop.f32.mrb[37].mxu1 }
 0x522   : > { %v2026_v38 = vld [vmem:[#allocation2 + $0x10] sm:$0xff]  ;;  %v1993_v48 = vadd.f32 %v1942_v45, %v1872_v61  ;;  %v2561_v49 = vpop.f32.mrb[38].mxu1 }
 0x523   : > { %v2361_v35 = vpack.c.bf16 %v2026_v38, %v2026_v38  ;;  %v2024_v55 = vld [vmem:[#allocation2] sm:$0xff]  ;;  %2011 = vst.msk [vmem:[#allocation2 + $0x30] sm:$0xff] %vm595_vm0, %v1995_v42  ;;  %v1996_v10 = vadd.f32 %v2561_v49, %v1875_v40  ;;  %v1945_v56 = vpop.f32.mrb[39].mxu1 }
 0x524   : > { %v2359_v46 = vpack.c.bf16 %v2024_v55, %v2024_v55  ;;  %v2027_v0 = vld [vmem:[#allocation2 + $0x18] sm:$0xff]  ;;  %2009 = vst.msk [vmem:[#allocation2 + $0x20] sm:$0xff] %vm595_vm0, %v1993_v48  ;;  %v1994_v51 = vadd.f32 %v1945_v56, %v1873_v30 }
 0x525   : > { %2107 = vst.msk [vmem:[%s3212_s24 + $0x8] sm:$0xf] %vm2104_vm8, %v2361_v35  ;;  %v2362_v3 = vpack.c.bf16 %v2027_v0, %v2027_v0  ;;  %v2025_v4 = vld [vmem:[#allocation2 + $0x8] sm:$0xff] }
 0x526   : > { %2012 = vst.msk [vmem:[#allocation2 + $0x38] sm:$0xff] %vm595_vm0, %v1996_v10  ;;  %v2360_v39 = vpack.c.bf16 %v2025_v4, %v2025_v4  ;;  %2010 = vst.msk [vmem:[#allocation2 + $0x28] sm:$0xff] %vm595_vm0, %v1994_v51 }
 0x527   : > { %2105 = vst.msk [vmem:[%s3212_s24] sm:$0xf] %vm2104_vm8, %v2359_v46  ;;  %2108 = vst.msk [vmem:[%s3212_s24 + $0xc] sm:$0xf] %vm2104_vm8, %v2362_v3 }
 0x528   : > { %2106 = vst.msk [vmem:[%s3212_s24 + $0x4] sm:$0xf] %vm2104_vm8, %v2360_v39  ;;  %v2564_v17 = vpop.f32.mrb[40].mxu1 }
 0x529   : > { %v1999_v7 = vadd.f32 %v2564_v17, %v1878_v5  ;;  %v1958_v8 = vpop.f32.mrb[41].mxu1 }
 0x52a   : > { %v2030_v53 = vld [vmem:[#allocation2 + $0x30] sm:$0xff]  ;;  %v1997_v13 = vadd.f32 %v1958_v8, %v1876_v47  ;;  %v2565_v41 = vpop.f32.mrb[42].mxu1 }
 0x52b   : > { %v2365_v9 = vpack.c.bf16 %v2030_v53, %v2030_v53  ;;  %v2028_v14 = vld [vmem:[#allocation2 + $0x20] sm:$0xff]  ;;  %2015 = vst.msk [vmem:[#allocation2 + $0x50] sm:$0xff] %vm595_vm0, %v1999_v7  ;;  %v2000_v59 = vadd.f32 %v2565_v41, %v1879_v50  ;;  %v1961_v15 = vpop.f32.mrb[43].mxu1 }
 0x52c   : > { %v2363_v58 = vpack.c.bf16 %v2028_v14, %v2028_v14  ;;  %2013 = vst.msk [vmem:[#allocation2 + $0x40] sm:$0xff] %vm595_vm0, %v1997_v13  ;;  %v1998_v20 = vadd.f32 %v1961_v15, %v1877_v11 }
 0x52d   : > { %v2031_v19 = vld [vmem:[#allocation2 + $0x38] sm:$0xff]  ;;  %2111 = vst.msk [vmem:[%s3212_s24 + $0x18] sm:$0xf] %vm2104_vm8, %v2365_v9  ;;  %v2029_v22 = vld [vmem:[#allocation2 + $0x28] sm:$0xff] }
 0x52e   : > { %v2366_v21 = vpack.c.bf16 %v2031_v19, %v2031_v19  ;;  %2016 = vst.msk [vmem:[#allocation2 + $0x58] sm:$0xff] %vm595_vm0, %v2000_v59  ;;  %v2364_v2 = vpack.c.bf16 %v2029_v22, %v2029_v22  ;;  %2014 = vst.msk [vmem:[#allocation2 + $0x48] sm:$0xff] %vm595_vm0, %v1998_v20 }
 0x52f   : > { %2109 = vst.msk [vmem:[%s3212_s24 + $0x10] sm:$0xf] %vm2104_vm8, %v2363_v58 }
 0x530   : > { %2112 = vst.msk [vmem:[%s3212_s24 + $0x1c] sm:$0xf] %vm2104_vm8, %v2366_v21  ;;  %2110 = vst.msk [vmem:[%s3212_s24 + $0x14] sm:$0xf] %vm2104_vm8, %v2364_v2  ;;  %v2568_v62 = vpop.f32.mrb[44].mxu1 }
 0x531   : > { %v2003_v24 = vadd.f32 %v2568_v62, %v1882_v23  ;;  %v1974_v26 = vpop.f32.mrb[45].mxu1 }
 0x532   : > { %v2034_v12 = vld [vmem:[#allocation2 + $0x50] sm:$0xff]  ;;  %v2001_v1 = vadd.f32 %v1974_v26, %v1880_v6  ;;  %v2569_v18 = vpop.f32.mrb[46].mxu1 }
 0x533   : > { %v2369_v28 = vpack.c.bf16 %v2034_v12, %v2034_v12  ;;  %v2032_v25 = vld [vmem:[#allocation2 + $0x40] sm:$0xff]  ;;  %2019 = vst.msk [vmem:[#allocation2 + $0x70] sm:$0xff] %vm595_vm0, %v2003_v24  ;;  %v2004_v63 = vadd.f32 %v2569_v18, %v1883_v16  ;;  %v1977_v37 = vpop.f32.mrb[47].mxu1 }
 0x534   : > { %v2367_v43 = vpack.c.bf16 %v2032_v25, %v2032_v25  ;;  %2017 = vst.msk [vmem:[#allocation2 + $0x60] sm:$0xff] %vm595_vm0, %v2001_v1  ;;  %v2002_v33 = vadd.f32 %v1977_v37, %v1881_v27 }
 0x535   : > { %v2035_v44 = vld [vmem:[#allocation2 + $0x58] sm:$0xff]  ;;  %2115 = vst.msk [vmem:[%s3212_s24 + $0x28] sm:$0xf] %vm2104_vm8, %v2369_v28  ;;  %v2033_v57 = vld [vmem:[#allocation2 + $0x48] sm:$0xff] }
 0x536   : > { %v2370_v52 = vpack.c.bf16 %v2035_v44, %v2035_v44  ;;  %2020 = vst.msk [vmem:[#allocation2 + $0x78] sm:$0xff] %vm595_vm0, %v2004_v63  ;;  %v2368_v29 = vpack.c.bf16 %v2033_v57, %v2033_v57  ;;  %2018 = vst.msk [vmem:[#allocation2 + $0x68] sm:$0xff] %vm595_vm0, %v2002_v33 }
 0x537   : > { %2113 = vst.msk [vmem:[%s3212_s24 + $0x20] sm:$0xf] %vm2104_vm8, %v2367_v43 }
 0x538   : > { %2116 = vst.msk [vmem:[%s3212_s24 + $0x2c] sm:$0xf] %vm2104_vm8, %v2370_v52  ;;  %2114 = vst.msk [vmem:[%s3212_s24 + $0x24] sm:$0xf] %vm2104_vm8, %v2368_v29 }
 0x53a   : > { %v2038_v31 = vld [vmem:[#allocation2 + $0x70] sm:$0xff] }
 0x53b   : > { %v2373_v54 = vpack.c.bf16 %v2038_v31, %v2038_v31  ;;  %v2036_v32 = vld [vmem:[#allocation2 + $0x60] sm:$0xff] }
 0x53c   : > { %v2371_v60 = vpack.c.bf16 %v2036_v32, %v2036_v32 }
 0x53d   : > { %v2039_v36 = vld [vmem:[#allocation2 + $0x78] sm:$0xff]  ;;  %2119 = vst.msk [vmem:[%s3212_s24 + $0x38] sm:$0xf] %vm2104_vm8, %v2373_v54  ;;  %v2037_v34 = vld [vmem:[#allocation2 + $0x68] sm:$0xff] }
 0x53e   : > { %v2374_v61 = vpack.c.bf16 %v2039_v36, %v2039_v36  ;;  %2117 = vst.msk [vmem:[%s3212_s24 + $0x30] sm:$0xf] %vm2104_vm8, %v2371_v60  ;;  %v2372_v40 = vpack.c.bf16 %v2037_v34, %v2037_v34 }
 0x540   : > { %2120 = vst.msk [vmem:[%s3212_s24 + $0x3c] sm:$0xf] %vm2104_vm8, %v2374_v61  ;;  %2118 = vst.msk [vmem:[%s3212_s24 + $0x34] sm:$0xf] %vm2104_vm8, %v2372_v40 }
 0x541 PF: > { %s24_s15 = sadd.s32 1, %s2715_s15   ;;  %s3296_s29 = smov %s2711_s30 }
 0x542   : > { %p21_p6 = scmp.ge.s32.totalorder %s24_s15, 4   ;;  %s3297_s30 = smov %s3299_s16 }
 0x544   :  { %23 = sbr.rel (!%p21_p6) target bundleno = 2 (0x2), region = 123 }

</bundles_post_ra>
